<compile_context>
chip_gen: v5e
topology: v5e:2x2
jax: 0.10.0
libtpu: 0.0.40
codegen_flags: <defaults>
</compile_context>

<pallas_src>
import math

import jax
import jax.numpy as jnp
from jax.experimental import pallas as pl
from jax.experimental.pallas import tpu as pltpu

# ----------------------------- model constants -----------------------------
BATCH = 2
INPUT_SIZE = 16          # sequence length L
VOCAB = 24
EMB_DIM = 8              # embeddings_static.shape[1]
CHANNELS = 16            # model_config['channels']
KERNEL = 3               # model_config['kernel_size']
LAYERS = 2               # model_config['layers']
Z_DIM = 448              # LinearPredictor input is hard-coded to 448
ZPAD = 512               # Z_DIM padded up to a lane-tile multiple
RATIO = 8                # GCNContextBlock ratio
MLP_DIMS = [448, 128, 32, 8, 7]   # LinearPredictor(448, [128, 32, 8], 7)
ROWS = 8                 # batch rows padded to one sublane tile


# ------------------------------ fused kernel --------------------------------

def _predictor_kernel(
    emb_ref, eps_ref, wt_ref, segc_ref, tilec_ref, expc_ref,
    mmask_ref, w1_ref, b1_ref, g_ref, be_ref, w2_ref, b2_ref,
    wc1_ref, bc1_ref, wc2_ref, bc2_ref, wc3_ref, bc3_ref, wc4_ref, bc4_ref,
    fc12w_ref, fc12b_ref,
    m0_ref, mb0_ref, m1_ref, mb1_ref, m2_ref, mb2_ref, m3_ref, mb3_ref,
    out_ref,
):
    def dot(a, b):
        return jnp.dot(a, b, preferred_element_type=jnp.float32)

    segc = segc_ref[...]      # (C*L, C)  sum over positions per channel
    tilec = tilec_ref[...]    # (L, C*L)  broadcast per-position value over channels
    expc = expc_ref[...]      # (C, C*L)  broadcast per-channel value over positions
    conv_w = (wc1_ref, wc2_ref, wc3_ref, wc4_ref)
    conv_b = (bc1_ref, bc2_ref, bc3_ref, bc4_ref)

    # triple_encoder: Conv1d(E -> C, k=3, pad=1, bias=False) as one matmul.
    h = dot(emb_ref[...], wt_ref[...])                           # (ROWS, C*L)

    for layer in range(LAYERS):
        residual = h
        # ---- GCNContextBlock: softmax spatial pooling + channel transform ----
        # TODO(synk): GCNContextBlock definition not provided; standard GCNet
        # context block assumed (planes = channels // ratio).  The scalar
        # conv_mask bias is dropped — it is softmax-invariant.
        logits = dot(h, mmask_ref[layer])                        # (ROWS, L)
        logits = logits - jnp.max(logits, axis=-1, keepdims=True)
        p = jnp.exp(logits)
        attn = p / jnp.sum(p, axis=-1, keepdims=True)            # (ROWS, L)
        attn_t = dot(attn, tilec)                                # (ROWS, C*L)
        ctx = dot(h * attn_t, segc)                              # (ROWS, C)
        t1 = dot(ctx, w1_ref[layer]) + b1_ref[layer]             # (ROWS, planes)
        mu_ = jnp.mean(t1, axis=-1, keepdims=True)               # LayerNorm([planes, 1])
        var_ = jnp.mean((t1 - mu_) ** 2, axis=-1, keepdims=True)
        t1 = (t1 - mu_) * jax.lax.rsqrt(var_ + 1e-5) * g_ref[layer] + be_ref[layer]
        t1 = jnp.maximum(t1, 0.0)
        delta = dot(t1, w2_ref[layer]) + b2_ref[layer]           # (ROWS, C)
        gc_out = h + dot(delta, expc)                            # x + channel_add term
        h = h + gc_out                                           # src += dropout1(gc(src)); dropout=id

        # ---- channel attention: 4 ConvolutionalBlocks (Conv1d k=3 + ReLU) ----
        # TODO(synk): ConvolutionalBlock internals not provided; assumed
        # Conv1d(padded) + ReLU with BatchNorm acting as identity at eval.
        for j in range(4):
            h = jnp.maximum(dot(h, conv_w[j][layer]) + conv_b[j][layer], 0.0)
        h = h + residual

    # ---- bottleneck: fused [fc1 | fc2] matmul + reparameterization ----
    y = dot(h, fc12w_ref[...]) + fc12b_ref[...]                  # (ROWS, 2*ZPAD)
    mu = y[:, :ZPAD]
    log_var = y[:, ZPAD:]
    z = mu + jnp.exp(0.5 * log_var) * eps_ref[...]               # (ROWS, ZPAD)

    # ---- LinearPredictor MLP head 448 -> 128 -> 32 -> 8 -> 7 ----
    # TODO(synk): LinearPredictor internals not provided; assumed ReLU MLP.
    o = jnp.maximum(dot(z, m0_ref[...]) + mb0_ref[...], 0.0)
    o = jnp.maximum(dot(o, m1_ref[...]) + mb1_ref[...], 0.0)
    o = jnp.maximum(dot(o, m2_ref[...]) + mb2_ref[...], 0.0)
    o = dot(o, m3_ref[...]) + mb3_ref[...]
    out_ref[...] = o.astype(out_ref.dtype)


# --------------------------- JAX-side construction ---------------------------

def conv1d_to_matrix(w):
    """Conv1d (stride=1, padding=K//2) as a (Cin*L, Cout*L) matrix acting on the
    flat channels-major layout flat[ci*L + t]."""
    Cout, Cin, K = w.shape
    L = INPUT_SIZE
    pad = K // 2
    s = jnp.arange(L)[:, None]
    t = jnp.arange(L)[None, :]
    k = s - t + pad
    valid = (k >= 0) & (k < K)
    kc = jnp.clip(k, 0, K - 1)
    wk = w[:, :, kc]                                  # (Cout, Cin, L, L)
    wk = jnp.where(valid[None, None], wk, 0.0)
    return wk.transpose(1, 2, 0, 3).reshape(Cin * L, Cout * L)


def conv_bias_flat(b):
    return jnp.repeat(b, INPUT_SIZE).reshape(1, -1)   # (1, Cout*L): b[c] tiled over t


def build_inputs(p, x_idx, eps):
    C, E, L = CHANNELS, EMB_DIM, INPUT_SIZE
    f32 = jnp.float32
    B = x_idx.shape[0]

    # Embedding gather + layout + batch padding (JAX glue).
    emb = jnp.take(p["embeddings"], x_idx, axis=0)             # (B, L, E)
    emb_flat = emb.transpose(0, 2, 1).reshape(B, E * L)        # flat index e*L + t
    emb_flat = jnp.zeros((ROWS, E * L), f32).at[:B].set(emb_flat)
    eps_pad = jnp.zeros((ROWS, ZPAD), f32).at[:B, :Z_DIM].set(eps)

    # Structured constant matrices for the flat layout.
    eye_c = jnp.eye(C, dtype=f32)
    eye_l = jnp.eye(L, dtype=f32)
    segc = jnp.repeat(eye_c, L, axis=0)                        # (C*L, C)
    expc = segc.T                                              # (C, C*L)
    tilec = jnp.tile(eye_l, (1, C))                            # (L, C*L)

    wt = conv1d_to_matrix(p["triple_w"])                       # (E*L, C*L)

    mmask, w1s, b1s, gs, bes, w2s, b2s = [], [], [], [], [], [], []
    wc = [[] for _ in range(4)]
    bc = [[] for _ in range(4)]
    for lp in p["encoder"]:
        wm = lp["gc_wm"].reshape(C)
        mmask.append((wm[:, None, None] * eye_l[None]).reshape(C * L, L))
        w1s.append(lp["gc_w1"]); b1s.append(lp["gc_b1"])
        gs.append(lp["gc_g"]); bes.append(lp["gc_be"])
        w2s.append(lp["gc_w2"]); b2s.append(lp["gc_b2"])
        for j, (w, b) in enumerate(lp["convs"]):
            wc[j].append(conv1d_to_matrix(w))
            bc[j].append(conv_bias_flat(b))
    stack = lambda xs: jnp.stack(xs, axis=0)

    # Fused [fc1 | fc2] weight, each half padded 448 -> 512 lanes (zeros in the
    # pad region keep log_var = 0 there; eps pad lanes are 0 so z pad stays 0).
    h_dim = L * C
    fc12w = jnp.zeros((h_dim, 2 * ZPAD), f32)
    fc12w = fc12w.at[:, :Z_DIM].set(p["fc1_w"]).at[:, ZPAD:ZPAD + Z_DIM].set(p["fc2_w"])
    fc12b = jnp.zeros((1, 2 * ZPAD), f32)
    fc12b = fc12b.at[0, :Z_DIM].set(p["fc1_b"]).at[0, ZPAD:ZPAD + Z_DIM].set(p["fc2_b"])

    m0 = jnp.zeros((ZPAD, MLP_DIMS[1]), f32).at[:Z_DIM].set(p["mlp"][0][0])
    mlp_ws = [m0] + [w for (w, _) in p["mlp"][1:]]
    mlp_bs = [b.reshape(1, -1) for (_, b) in p["mlp"]]

    args = [emb_flat, eps_pad, wt, segc, tilec, expc,
            stack(mmask), stack(w1s), stack(b1s), stack(gs), stack(bes),
            stack(w2s), stack(b2s)]
    for j in range(4):
        args += [stack(wc[j]), stack(bc[j])]
    args += [fc12w, fc12b]
    for w, b in zip(mlp_ws, mlp_bs):
        args += [w, b]
    return args


def predictor_forward(params, x_idx, eps):
    args = build_inputs(params, x_idx, eps)

    # Advisory cost estimate so XLA schedules around the single fused call.
    C, E, L = CHANNELS, EMB_DIM, INPUT_SIZE
    mm = lambda m, k, n: 2 * m * k * n
    flops = mm(ROWS, E * L, C * L)
    for _ in range(LAYERS):
        flops += mm(ROWS, C * L, L) + mm(ROWS, L, C * L) + mm(ROWS, C * L, C)
        flops += mm(ROWS, C, 2) + mm(ROWS, 2, C) + mm(ROWS, C, C * L)
        flops += (mm(ROWS, C * L, C * L // 2) + 2 * mm(ROWS, C * L // 2, C * L // 2)
                  + mm(ROWS, C * L // 2, C * L))
    flops += (mm(ROWS, C * L, 2 * ZPAD) + mm(ROWS, ZPAD, 128)
              + mm(ROWS, 128, 32) + mm(ROWS, 32, 8) + mm(ROWS, 8, 7))
    transcendentals = ROWS * (LAYERS * L + ZPAD)
    bytes_accessed = sum(int(a.size) * 4 for a in args) + ROWS * MLP_DIMS[-1] * 4

    vmem = pltpu.MemorySpace.VMEM
    out = pl.pallas_call(
        _predictor_kernel,
        out_shape=jax.ShapeDtypeStruct((ROWS, MLP_DIMS[-1]), jnp.float32),
        in_specs=[pl.BlockSpec(memory_space=vmem)] * len(args),
        out_specs=pl.BlockSpec(memory_space=vmem),
        cost_estimate=pl.CostEstimate(flops=int(flops),
                                      transcendentals=int(transcendentals),
                                      bytes_accessed=int(bytes_accessed)),
    )(*args)
    return out[:x_idx.shape[0]]


# ----------------------------- parameter setup ------------------------------

def _uniform(key, shape, fan_in):
    bound = 1.0 / math.sqrt(fan_in)
    return jax.random.uniform(key, shape, jnp.float32, -bound, bound)


def init_params(key):
    keys = iter(jax.random.split(key, 128))
    C, E, K, L = CHANNELS, EMB_DIM, KERNEL, INPUT_SIZE
    planes = C // RATIO
    p = {}
    p["embeddings"] = jax.random.normal(next(keys), (VOCAB, E), jnp.float32)
    p["triple_w"] = _uniform(next(keys), (C, E, K), E * K)        # no bias
    enc = []
    for _ in range(LAYERS):
        lp = {
            "gc_wm": _uniform(next(keys), (1, C), C),             # conv_mask weight
            "gc_w1": _uniform(next(keys), (C, planes), C),        # stored (Cin, Cout)
            "gc_b1": _uniform(next(keys), (1, planes), C),
            "gc_g": jnp.ones((1, planes), jnp.float32),           # LayerNorm gamma
            "gc_be": jnp.zeros((1, planes), jnp.float32),         # LayerNorm beta
            "gc_w2": _uniform(next(keys), (planes, C), planes),
            "gc_b2": _uniform(next(keys), (1, C), planes),
        }
        convs = []
        for (cin, cout) in [(C, C // 2), (C // 2, C // 2),
                            (C // 2, C // 2), (C // 2, C)]:
            convs.append((_uniform(next(keys), (cout, cin, K), cin * K),
                          _uniform(next(keys), (cout,), cin * K)))
        lp["convs"] = convs
        enc.append(lp)
    p["encoder"] = enc
    h_dim = L * C
    p["fc1_w"] = _uniform(next(keys), (h_dim, Z_DIM), h_dim)
    p["fc1_b"] = _uniform(next(keys), (Z_DIM,), h_dim)
    p["fc2_w"] = _uniform(next(keys), (h_dim, Z_DIM), h_dim)
    p["fc2_b"] = _uniform(next(keys), (Z_DIM,), h_dim)
    mlp = []
    for i in range(len(MLP_DIMS) - 1):
        din, dout = MLP_DIMS[i], MLP_DIMS[i + 1]
        mlp.append((_uniform(next(keys), (din, dout), din),
                    _uniform(next(keys), (dout,), din)))
    p["mlp"] = mlp
    return p


# ----------------------------------- main -----------------------------------

if __name__ == "__main__":
    root = jax.random.PRNGKey(0)
    k_param, k_x, k_eps = jax.random.split(root, 3)
    params = init_params(k_param)
    x_idx = jax.random.randint(k_x, (BATCH, INPUT_SIZE), 0, VOCAB, dtype=jnp.int32)
    # deterministic stand-in for the torch.randn used in `reparameterization`
    eps = jax.random.normal(k_eps, (BATCH, Z_DIM), jnp.float32)

    out = predictor_forward(params, x_idx, eps)
    out = jax.block_until_ready(out)
    assert out.shape == (BATCH, MLP_DIMS[-1]) and out.dtype == jnp.float32
    assert bool(jnp.all(jnp.isfinite(out)))
    print("KERNEL_OK")
</pallas_src>

<mosaic_0001>
module attributes {stable_mosaic.version = 11 : i64} {
  func.func @_predictor_kernel(%arg0: memref<8x128xf32, #tpu.memory_space<vmem>>, %arg1: memref<8x512xf32, #tpu.memory_space<vmem>>, %arg2: memref<128x256xf32, #tpu.memory_space<vmem>>, %arg3: memref<256x16xf32, #tpu.memory_space<vmem>>, %arg4: memref<16x256xf32, #tpu.memory_space<vmem>>, %arg5: memref<16x256xf32, #tpu.memory_space<vmem>>, %arg6: memref<2x256x16xf32, #tpu.memory_space<vmem>>, %arg7: memref<2x16x2xf32, #tpu.memory_space<vmem>>, %arg8: memref<2x1x2xf32, #tpu.memory_space<vmem>>, %arg9: memref<2x1x2xf32, #tpu.memory_space<vmem>>, %arg10: memref<2x1x2xf32, #tpu.memory_space<vmem>>, %arg11: memref<2x2x16xf32, #tpu.memory_space<vmem>>, %arg12: memref<2x1x16xf32, #tpu.memory_space<vmem>>, %arg13: memref<2x256x128xf32, #tpu.memory_space<vmem>>, %arg14: memref<2x1x128xf32, #tpu.memory_space<vmem>>, %arg15: memref<2x128x128xf32, #tpu.memory_space<vmem>>, %arg16: memref<2x1x128xf32, #tpu.memory_space<vmem>>, %arg17: memref<2x128x128xf32, #tpu.memory_space<vmem>>, %arg18: memref<2x1x128xf32, #tpu.memory_space<vmem>>, %arg19: memref<2x128x256xf32, #tpu.memory_space<vmem>>, %arg20: memref<2x1x256xf32, #tpu.memory_space<vmem>>, %arg21: memref<256x1024xf32, #tpu.memory_space<vmem>>, %arg22: memref<1x1024xf32, #tpu.memory_space<vmem>>, %arg23: memref<512x128xf32, #tpu.memory_space<vmem>>, %arg24: memref<1x128xf32, #tpu.memory_space<vmem>>, %arg25: memref<128x32xf32, #tpu.memory_space<vmem>>, %arg26: memref<1x32xf32, #tpu.memory_space<vmem>>, %arg27: memref<32x8xf32, #tpu.memory_space<vmem>>, %arg28: memref<1x8xf32, #tpu.memory_space<vmem>>, %arg29: memref<8x7xf32, #tpu.memory_space<vmem>>, %arg30: memref<1x7xf32, #tpu.memory_space<vmem>>, %arg31: memref<8x7xf32, #tpu.memory_space<vmem>>) attributes {dimension_semantics = [], scalar_prefetch = 0 : i64, scratch_operands = 0 : i64, tpu.core_type = #tpu.core_type<tc>} {
    %c0 = arith.constant 0 : index
    %c0_0 = arith.constant 0 : index
    %0 = vector.load %arg3[%c0, %c0_0] : memref<256x16xf32, #tpu.memory_space<vmem>>, vector<256x16xf32>
    %c0_1 = arith.constant 0 : index
    %c0_2 = arith.constant 0 : index
    %1 = vector.load %arg4[%c0_1, %c0_2] : memref<16x256xf32, #tpu.memory_space<vmem>>, vector<16x256xf32>
    %c0_3 = arith.constant 0 : index
    %c0_4 = arith.constant 0 : index
    %2 = vector.load %arg5[%c0_3, %c0_4] : memref<16x256xf32, #tpu.memory_space<vmem>>, vector<16x256xf32>
    %c0_5 = arith.constant 0 : index
    %c0_6 = arith.constant 0 : index
    %3 = vector.load %arg0[%c0_5, %c0_6] : memref<8x128xf32, #tpu.memory_space<vmem>>, vector<8x128xf32>
    %c0_7 = arith.constant 0 : index
    %c0_8 = arith.constant 0 : index
    %4 = vector.load %arg2[%c0_7, %c0_8] : memref<128x256xf32, #tpu.memory_space<vmem>>, vector<128x256xf32>
    %cst = arith.constant dense<0.000000e+00> : vector<8x256xf32>
    %5 = tpu.matmul %3, %4, %cst {dimension_numbers = #tpu.dot_dimension_numbers<[1], [0], [0], [1], [0, 0, 1, 1], [], []>} : vector<8x128xf32>, vector<128x256xf32>, vector<8x256xf32> -> vector<8x256xf32>
    %c0_9 = arith.constant 0 : index
    %c0_10 = arith.constant 0 : index
    %c0_11 = arith.constant 0 : index
    %6 = vector.load %arg6[%c0_9, %c0_10, %c0_11] : memref<2x256x16xf32, #tpu.memory_space<vmem>>, vector<1x256x16xf32>
    %7 = vector.shape_cast %6 : vector<1x256x16xf32> to vector<256x16xf32>
    %cst_12 = arith.constant dense<0.000000e+00> : vector<8x16xf32>
    %8 = tpu.matmul %5, %7, %cst_12 {dimension_numbers = #tpu.dot_dimension_numbers<[1], [0], [0], [1], [0, 0, 1, 1], [], []>} : vector<8x256xf32>, vector<256x16xf32>, vector<8x16xf32> -> vector<8x16xf32>
    %cst_13 = arith.constant dense<0xFF800000> : vector<8xf32>
    %9 = vector.multi_reduction <maximumf>, %8, %cst_13 [1] : vector<8x16xf32> to vector<8xf32>
    %10 = vector.shape_cast %9 : vector<8xf32> to vector<8x1xf32>
    %11 = vector.broadcast %10 : vector<8x1xf32> to vector<8x16xf32>
    %12 = arith.subf %8, %11 : vector<8x16xf32>
    %13 = math.exp %12 : vector<8x16xf32>
    %cst_14 = arith.constant dense<0.000000e+00> : vector<8xf32>
    %14 = vector.multi_reduction <add>, %13, %cst_14 [1] : vector<8x16xf32> to vector<8xf32>
    %15 = vector.shape_cast %14 : vector<8xf32> to vector<8x1xf32>
    %16 = vector.broadcast %15 : vector<8x1xf32> to vector<8x16xf32>
    %17 = arith.divf %13, %16 : vector<8x16xf32>
    %cst_15 = arith.constant dense<0.000000e+00> : vector<8x256xf32>
    %18 = tpu.matmul %17, %1, %cst_15 {dimension_numbers = #tpu.dot_dimension_numbers<[1], [0], [0], [1], [0, 0, 1, 1], [], []>} : vector<8x16xf32>, vector<16x256xf32>, vector<8x256xf32> -> vector<8x256xf32>
    %19 = arith.mulf %5, %18 : vector<8x256xf32>
    %cst_16 = arith.constant dense<0.000000e+00> : vector<8x16xf32>
    %20 = tpu.matmul %19, %0, %cst_16 {dimension_numbers = #tpu.dot_dimension_numbers<[1], [0], [0], [1], [0, 0, 1, 1], [], []>} : vector<8x256xf32>, vector<256x16xf32>, vector<8x16xf32> -> vector<8x16xf32>
    %c0_17 = arith.constant 0 : index
    %c0_18 = arith.constant 0 : index
    %c0_19 = arith.constant 0 : index
    %21 = vector.load %arg7[%c0_17, %c0_18, %c0_19] : memref<2x16x2xf32, #tpu.memory_space<vmem>>, vector<1x16x2xf32>
    %22 = vector.shape_cast %21 : vector<1x16x2xf32> to vector<16x2xf32>
    %cst_20 = arith.constant dense<0.000000e+00> : vector<8x2xf32>
    %23 = tpu.matmul %20, %22, %cst_20 {dimension_numbers = #tpu.dot_dimension_numbers<[1], [0], [0], [1], [0, 0, 1, 1], [], []>} : vector<8x16xf32>, vector<16x2xf32>, vector<8x2xf32> -> vector<8x2xf32>
    %c0_21 = arith.constant 0 : index
    %c0_22 = arith.constant 0 : index
    %c0_23 = arith.constant 0 : index
    %24 = vector.load %arg8[%c0_21, %c0_22, %c0_23] : memref<2x1x2xf32, #tpu.memory_space<vmem>>, vector<1x1x2xf32>
    %25 = vector.shape_cast %24 : vector<1x1x2xf32> to vector<1x2xf32>
    %26 = vector.broadcast %25 : vector<1x2xf32> to vector<8x2xf32>
    %27 = arith.addf %23, %26 : vector<8x2xf32>
    %cst_24 = arith.constant dense<0.000000e+00> : vector<8xf32>
    %28 = vector.multi_reduction <add>, %27, %cst_24 [1] : vector<8x2xf32> to vector<8xf32>
    %29 = vector.shape_cast %28 : vector<8xf32> to vector<8x1xf32>
    %cst_25 = arith.constant 2.000000e+00 : f32
    %30 = vector.broadcast %cst_25 : f32 to vector<8x1xf32>
    %31 = arith.divf %29, %30 : vector<8x1xf32>
    %32 = vector.broadcast %31 : vector<8x1xf32> to vector<8x2xf32>
    %33 = arith.subf %27, %32 : vector<8x2xf32>
    %34 = arith.mulf %33, %33 : vector<8x2xf32>
    %cst_26 = arith.constant dense<0.000000e+00> : vector<8xf32>
    %35 = vector.multi_reduction <add>, %34, %cst_26 [1] : vector<8x2xf32> to vector<8xf32>
    %36 = vector.shape_cast %35 : vector<8xf32> to vector<8x1xf32>
    %cst_27 = arith.constant 2.000000e+00 : f32
    %37 = vector.broadcast %cst_27 : f32 to vector<8x1xf32>
    %38 = arith.divf %36, %37 : vector<8x1xf32>
    %39 = vector.broadcast %31 : vector<8x1xf32> to vector<8x2xf32>
    %40 = arith.subf %27, %39 : vector<8x2xf32>
    %cst_28 = arith.constant 9.99999974E-6 : f32
    %41 = vector.broadcast %cst_28 : f32 to vector<8x1xf32>
    %42 = arith.addf %38, %41 : vector<8x1xf32>
    %43 = math.rsqrt %42 : vector<8x1xf32>
    %44 = vector.broadcast %43 : vector<8x1xf32> to vector<8x2xf32>
    %45 = arith.mulf %40, %44 : vector<8x2xf32>
    %c0_29 = arith.constant 0 : index
    %c0_30 = arith.constant 0 : index
    %c0_31 = arith.constant 0 : index
    %46 = vector.load %arg9[%c0_29, %c0_30, %c0_31] : memref<2x1x2xf32, #tpu.memory_space<vmem>>, vector<1x1x2xf32>
    %47 = vector.shape_cast %46 : vector<1x1x2xf32> to vector<1x2xf32>
    %48 = vector.broadcast %47 : vector<1x2xf32> to vector<8x2xf32>
    %49 = arith.mulf %45, %48 : vector<8x2xf32>
    %c0_32 = arith.constant 0 : index
    %c0_33 = arith.constant 0 : index
    %c0_34 = arith.constant 0 : index
    %50 = vector.load %arg10[%c0_32, %c0_33, %c0_34] : memref<2x1x2xf32, #tpu.memory_space<vmem>>, vector<1x1x2xf32>
    %51 = vector.shape_cast %50 : vector<1x1x2xf32> to vector<1x2xf32>
    %52 = vector.broadcast %51 : vector<1x2xf32> to vector<8x2xf32>
    %53 = arith.addf %49, %52 : vector<8x2xf32>
    %cst_35 = arith.constant 0.000000e+00 : f32
    %54 = vector.broadcast %cst_35 : f32 to vector<8x2xf32>
    %55 = arith.maximumf %53, %54 : vector<8x2xf32>
    %c0_36 = arith.constant 0 : index
    %c0_37 = arith.constant 0 : index
    %c0_38 = arith.constant 0 : index
    %56 = vector.load %arg11[%c0_36, %c0_37, %c0_38] : memref<2x2x16xf32, #tpu.memory_space<vmem>>, vector<1x2x16xf32>
    %57 = vector.shape_cast %56 : vector<1x2x16xf32> to vector<2x16xf32>
    %cst_39 = arith.constant dense<0.000000e+00> : vector<8x16xf32>
    %58 = tpu.matmul %55, %57, %cst_39 {dimension_numbers = #tpu.dot_dimension_numbers<[1], [0], [0], [1], [0, 0, 1, 1], [], []>} : vector<8x2xf32>, vector<2x16xf32>, vector<8x16xf32> -> vector<8x16xf32>
    %c0_40 = arith.constant 0 : index
    %c0_41 = arith.constant 0 : index
    %c0_42 = arith.constant 0 : index
    %59 = vector.load %arg12[%c0_40, %c0_41, %c0_42] : memref<2x1x16xf32, #tpu.memory_space<vmem>>, vector<1x1x16xf32>
    %60 = vector.shape_cast %59 : vector<1x1x16xf32> to vector<1x16xf32>
    %61 = vector.broadcast %60 : vector<1x16xf32> to vector<8x16xf32>
    %62 = arith.addf %58, %61 : vector<8x16xf32>
    %cst_43 = arith.constant dense<0.000000e+00> : vector<8x256xf32>
    %63 = tpu.matmul %62, %2, %cst_43 {dimension_numbers = #tpu.dot_dimension_numbers<[1], [0], [0], [1], [0, 0, 1, 1], [], []>} : vector<8x16xf32>, vector<16x256xf32>, vector<8x256xf32> -> vector<8x256xf32>
    %64 = arith.addf %5, %63 : vector<8x256xf32>
    %65 = arith.addf %5, %64 : vector<8x256xf32>
    %c0_44 = arith.constant 0 : index
    %c0_45 = arith.constant 0 : index
    %c0_46 = arith.constant 0 : index
    %66 = vector.load %arg13[%c0_44, %c0_45, %c0_46] : memref<2x256x128xf32, #tpu.memory_space<vmem>>, vector<1x256x128xf32>
    %67 = vector.shape_cast %66 : vector<1x256x128xf32> to vector<256x128xf32>
    %cst_47 = arith.constant dense<0.000000e+00> : vector<8x128xf32>
    %68 = tpu.matmul %65, %67, %cst_47 {dimension_numbers = #tpu.dot_dimension_numbers<[1], [0], [0], [1], [0, 0, 1, 1], [], []>} : vector<8x256xf32>, vector<256x128xf32>, vector<8x128xf32> -> vector<8x128xf32>
    %c0_48 = arith.constant 0 : index
    %c0_49 = arith.constant 0 : index
    %c0_50 = arith.constant 0 : index
    %69 = vector.load %arg14[%c0_48, %c0_49, %c0_50] : memref<2x1x128xf32, #tpu.memory_space<vmem>>, vector<1x1x128xf32>
    %70 = vector.shape_cast %69 : vector<1x1x128xf32> to vector<1x128xf32>
    %71 = vector.broadcast %70 : vector<1x128xf32> to vector<8x128xf32>
    %72 = arith.addf %68, %71 : vector<8x128xf32>
    %cst_51 = arith.constant 0.000000e+00 : f32
    %73 = vector.broadcast %cst_51 : f32 to vector<8x128xf32>
    %74 = arith.maximumf %72, %73 : vector<8x128xf32>
    %c0_52 = arith.constant 0 : index
    %c0_53 = arith.constant 0 : index
    %c0_54 = arith.constant 0 : index
    %75 = vector.load %arg15[%c0_52, %c0_53, %c0_54] : memref<2x128x128xf32, #tpu.memory_space<vmem>>, vector<1x128x128xf32>
    %76 = vector.shape_cast %75 : vector<1x128x128xf32> to vector<128x128xf32>
    %cst_55 = arith.constant dense<0.000000e+00> : vector<8x128xf32>
    %77 = tpu.matmul %74, %76, %cst_55 {dimension_numbers = #tpu.dot_dimension_numbers<[1], [0], [0], [1], [0, 0, 1, 1], [], []>} : vector<8x128xf32>, vector<128x128xf32>, vector<8x128xf32> -> vector<8x128xf32>
    %c0_56 = arith.constant 0 : index
    %c0_57 = arith.constant 0 : index
    %c0_58 = arith.constant 0 : index
    %78 = vector.load %arg16[%c0_56, %c0_57, %c0_58] : memref<2x1x128xf32, #tpu.memory_space<vmem>>, vector<1x1x128xf32>
    %79 = vector.shape_cast %78 : vector<1x1x128xf32> to vector<1x128xf32>
    %80 = vector.broadcast %79 : vector<1x128xf32> to vector<8x128xf32>
    %81 = arith.addf %77, %80 : vector<8x128xf32>
    %cst_59 = arith.constant 0.000000e+00 : f32
    %82 = vector.broadcast %cst_59 : f32 to vector<8x128xf32>
    %83 = arith.maximumf %81, %82 : vector<8x128xf32>
    %c0_60 = arith.constant 0 : index
    %c0_61 = arith.constant 0 : index
    %c0_62 = arith.constant 0 : index
    %84 = vector.load %arg17[%c0_60, %c0_61, %c0_62] : memref<2x128x128xf32, #tpu.memory_space<vmem>>, vector<1x128x128xf32>
    %85 = vector.shape_cast %84 : vector<1x128x128xf32> to vector<128x128xf32>
    %cst_63 = arith.constant dense<0.000000e+00> : vector<8x128xf32>
    %86 = tpu.matmul %83, %85, %cst_63 {dimension_numbers = #tpu.dot_dimension_numbers<[1], [0], [0], [1], [0, 0, 1, 1], [], []>} : vector<8x128xf32>, vector<128x128xf32>, vector<8x128xf32> -> vector<8x128xf32>
    %c0_64 = arith.constant 0 : index
    %c0_65 = arith.constant 0 : index
    %c0_66 = arith.constant 0 : index
    %87 = vector.load %arg18[%c0_64, %c0_65, %c0_66] : memref<2x1x128xf32, #tpu.memory_space<vmem>>, vector<1x1x128xf32>
    %88 = vector.shape_cast %87 : vector<1x1x128xf32> to vector<1x128xf32>
    %89 = vector.broadcast %88 : vector<1x128xf32> to vector<8x128xf32>
    %90 = arith.addf %86, %89 : vector<8x128xf32>
    %cst_67 = arith.constant 0.000000e+00 : f32
    %91 = vector.broadcast %cst_67 : f32 to vector<8x128xf32>
    %92 = arith.maximumf %90, %91 : vector<8x128xf32>
    %c0_68 = arith.constant 0 : index
    %c0_69 = arith.constant 0 : index
    %c0_70 = arith.constant 0 : index
    %93 = vector.load %arg19[%c0_68, %c0_69, %c0_70] : memref<2x128x256xf32, #tpu.memory_space<vmem>>, vector<1x128x256xf32>
    %94 = vector.shape_cast %93 : vector<1x128x256xf32> to vector<128x256xf32>
    %cst_71 = arith.constant dense<0.000000e+00> : vector<8x256xf32>
    %95 = tpu.matmul %92, %94, %cst_71 {dimension_numbers = #tpu.dot_dimension_numbers<[1], [0], [0], [1], [0, 0, 1, 1], [], []>} : vector<8x128xf32>, vector<128x256xf32>, vector<8x256xf32> -> vector<8x256xf32>
    %c0_72 = arith.constant 0 : index
    %c0_73 = arith.constant 0 : index
    %c0_74 = arith.constant 0 : index
    %96 = vector.load %arg20[%c0_72, %c0_73, %c0_74] : memref<2x1x256xf32, #tpu.memory_space<vmem>>, vector<1x1x256xf32>
    %97 = vector.shape_cast %96 : vector<1x1x256xf32> to vector<1x256xf32>
    %98 = vector.broadcast %97 : vector<1x256xf32> to vector<8x256xf32>
    %99 = arith.addf %95, %98 : vector<8x256xf32>
    %cst_75 = arith.constant 0.000000e+00 : f32
    %100 = vector.broadcast %cst_75 : f32 to vector<8x256xf32>
    %101 = arith.maximumf %99, %100 : vector<8x256xf32>
    %102 = arith.addf %101, %5 : vector<8x256xf32>
    %c1 = arith.constant 1 : index
    %c0_76 = arith.constant 0 : index
    %c0_77 = arith.constant 0 : index
    %103 = vector.load %arg6[%c1, %c0_76, %c0_77] : memref<2x256x16xf32, #tpu.memory_space<vmem>>, vector<1x256x16xf32>
    %104 = vector.shape_cast %103 : vector<1x256x16xf32> to vector<256x16xf32>
    %cst_78 = arith.constant dense<0.000000e+00> : vector<8x16xf32>
    %105 = tpu.matmul %102, %104, %cst_78 {dimension_numbers = #tpu.dot_dimension_numbers<[1], [0], [0], [1], [0, 0, 1, 1], [], []>} : vector<8x256xf32>, vector<256x16xf32>, vector<8x16xf32> -> vector<8x16xf32>
    %cst_79 = arith.constant dense<0xFF800000> : vector<8xf32>
    %106 = vector.multi_reduction <maximumf>, %105, %cst_79 [1] : vector<8x16xf32> to vector<8xf32>
    %107 = vector.shape_cast %106 : vector<8xf32> to vector<8x1xf32>
    %108 = vector.broadcast %107 : vector<8x1xf32> to vector<8x16xf32>
    %109 = arith.subf %105, %108 : vector<8x16xf32>
    %110 = math.exp %109 : vector<8x16xf32>
    %cst_80 = arith.constant dense<0.000000e+00> : vector<8xf32>
    %111 = vector.multi_reduction <add>, %110, %cst_80 [1] : vector<8x16xf32> to vector<8xf32>
    %112 = vector.shape_cast %111 : vector<8xf32> to vector<8x1xf32>
    %113 = vector.broadcast %112 : vector<8x1xf32> to vector<8x16xf32>
    %114 = arith.divf %110, %113 : vector<8x16xf32>
    %cst_81 = arith.constant dense<0.000000e+00> : vector<8x256xf32>
    %115 = tpu.matmul %114, %1, %cst_81 {dimension_numbers = #tpu.dot_dimension_numbers<[1], [0], [0], [1], [0, 0, 1, 1], [], []>} : vector<8x16xf32>, vector<16x256xf32>, vector<8x256xf32> -> vector<8x256xf32>
    %116 = arith.mulf %102, %115 : vector<8x256xf32>
    %cst_82 = arith.constant dense<0.000000e+00> : vector<8x16xf32>
    %117 = tpu.matmul %116, %0, %cst_82 {dimension_numbers = #tpu.dot_dimension_numbers<[1], [0], [0], [1], [0, 0, 1, 1], [], []>} : vector<8x256xf32>, vector<256x16xf32>, vector<8x16xf32> -> vector<8x16xf32>
    %c1_83 = arith.constant 1 : index
    %c0_84 = arith.constant 0 : index
    %c0_85 = arith.constant 0 : index
    %118 = vector.load %arg7[%c1_83, %c0_84, %c0_85] : memref<2x16x2xf32, #tpu.memory_space<vmem>>, vector<1x16x2xf32>
    %119 = vector.shape_cast %118 : vector<1x16x2xf32> to vector<16x2xf32>
    %cst_86 = arith.constant dense<0.000000e+00> : vector<8x2xf32>
    %120 = tpu.matmul %117, %119, %cst_86 {dimension_numbers = #tpu.dot_dimension_numbers<[1], [0], [0], [1], [0, 0, 1, 1], [], []>} : vector<8x16xf32>, vector<16x2xf32>, vector<8x2xf32> -> vector<8x2xf32>
    %c1_87 = arith.constant 1 : index
    %c0_88 = arith.constant 0 : index
    %c0_89 = arith.constant 0 : index
    %121 = vector.load %arg8[%c1_87, %c0_88, %c0_89] : memref<2x1x2xf32, #tpu.memory_space<vmem>>, vector<1x1x2xf32>
    %122 = vector.shape_cast %121 : vector<1x1x2xf32> to vector<1x2xf32>
    %123 = vector.broadcast %122 : vector<1x2xf32> to vector<8x2xf32>
    %124 = arith.addf %120, %123 : vector<8x2xf32>
    %cst_90 = arith.constant dense<0.000000e+00> : vector<8xf32>
    %125 = vector.multi_reduction <add>, %124, %cst_90 [1] : vector<8x2xf32> to vector<8xf32>
    %126 = vector.shape_cast %125 : vector<8xf32> to vector<8x1xf32>
    %cst_91 = arith.constant 2.000000e+00 : f32
    %127 = vector.broadcast %cst_91 : f32 to vector<8x1xf32>
    %128 = arith.divf %126, %127 : vector<8x1xf32>
    %129 = vector.broadcast %128 : vector<8x1xf32> to vector<8x2xf32>
    %130 = arith.subf %124, %129 : vector<8x2xf32>
    %131 = arith.mulf %130, %130 : vector<8x2xf32>
    %cst_92 = arith.constant dense<0.000000e+00> : vector<8xf32>
    %132 = vector.multi_reduction <add>, %131, %cst_92 [1] : vector<8x2xf32> to vector<8xf32>
    %133 = vector.shape_cast %132 : vector<8xf32> to vector<8x1xf32>
    %cst_93 = arith.constant 2.000000e+00 : f32
    %134 = vector.broadcast %cst_93 : f32 to vector<8x1xf32>
    %135 = arith.divf %133, %134 : vector<8x1xf32>
    %136 = vector.broadcast %128 : vector<8x1xf32> to vector<8x2xf32>
    %137 = arith.subf %124, %136 : vector<8x2xf32>
    %cst_94 = arith.constant 9.99999974E-6 : f32
    %138 = vector.broadcast %cst_94 : f32 to vector<8x1xf32>
    %139 = arith.addf %135, %138 : vector<8x1xf32>
    %140 = math.rsqrt %139 : vector<8x1xf32>
    %141 = vector.broadcast %140 : vector<8x1xf32> to vector<8x2xf32>
    %142 = arith.mulf %137, %141 : vector<8x2xf32>
    %c1_95 = arith.constant 1 : index
    %c0_96 = arith.constant 0 : index
    %c0_97 = arith.constant 0 : index
    %143 = vector.load %arg9[%c1_95, %c0_96, %c0_97] : memref<2x1x2xf32, #tpu.memory_space<vmem>>, vector<1x1x2xf32>
    %144 = vector.shape_cast %143 : vector<1x1x2xf32> to vector<1x2xf32>
    %145 = vector.broadcast %144 : vector<1x2xf32> to vector<8x2xf32>
    %146 = arith.mulf %142, %145 : vector<8x2xf32>
    %c1_98 = arith.constant 1 : index
    %c0_99 = arith.constant 0 : index
    %c0_100 = arith.constant 0 : index
    %147 = vector.load %arg10[%c1_98, %c0_99, %c0_100] : memref<2x1x2xf32, #tpu.memory_space<vmem>>, vector<1x1x2xf32>
    %148 = vector.shape_cast %147 : vector<1x1x2xf32> to vector<1x2xf32>
    %149 = vector.broadcast %148 : vector<1x2xf32> to vector<8x2xf32>
    %150 = arith.addf %146, %149 : vector<8x2xf32>
    %cst_101 = arith.constant 0.000000e+00 : f32
    %151 = vector.broadcast %cst_101 : f32 to vector<8x2xf32>
    %152 = arith.maximumf %150, %151 : vector<8x2xf32>
    %c1_102 = arith.constant 1 : index
    %c0_103 = arith.constant 0 : index
    %c0_104 = arith.constant 0 : index
    %153 = vector.load %arg11[%c1_102, %c0_103, %c0_104] : memref<2x2x16xf32, #tpu.memory_space<vmem>>, vector<1x2x16xf32>
    %154 = vector.shape_cast %153 : vector<1x2x16xf32> to vector<2x16xf32>
    %cst_105 = arith.constant dense<0.000000e+00> : vector<8x16xf32>
    %155 = tpu.matmul %152, %154, %cst_105 {dimension_numbers = #tpu.dot_dimension_numbers<[1], [0], [0], [1], [0, 0, 1, 1], [], []>} : vector<8x2xf32>, vector<2x16xf32>, vector<8x16xf32> -> vector<8x16xf32>
    %c1_106 = arith.constant 1 : index
    %c0_107 = arith.constant 0 : index
    %c0_108 = arith.constant 0 : index
    %156 = vector.load %arg12[%c1_106, %c0_107, %c0_108] : memref<2x1x16xf32, #tpu.memory_space<vmem>>, vector<1x1x16xf32>
    %157 = vector.shape_cast %156 : vector<1x1x16xf32> to vector<1x16xf32>
    %158 = vector.broadcast %157 : vector<1x16xf32> to vector<8x16xf32>
    %159 = arith.addf %155, %158 : vector<8x16xf32>
    %cst_109 = arith.constant dense<0.000000e+00> : vector<8x256xf32>
    %160 = tpu.matmul %159, %2, %cst_109 {dimension_numbers = #tpu.dot_dimension_numbers<[1], [0], [0], [1], [0, 0, 1, 1], [], []>} : vector<8x16xf32>, vector<16x256xf32>, vector<8x256xf32> -> vector<8x256xf32>
    %161 = arith.addf %102, %160 : vector<8x256xf32>
    %162 = arith.addf %102, %161 : vector<8x256xf32>
    %c1_110 = arith.constant 1 : index
    %c0_111 = arith.constant 0 : index
    %c0_112 = arith.constant 0 : index
    %163 = vector.load %arg13[%c1_110, %c0_111, %c0_112] : memref<2x256x128xf32, #tpu.memory_space<vmem>>, vector<1x256x128xf32>
    %164 = vector.shape_cast %163 : vector<1x256x128xf32> to vector<256x128xf32>
    %cst_113 = arith.constant dense<0.000000e+00> : vector<8x128xf32>
    %165 = tpu.matmul %162, %164, %cst_113 {dimension_numbers = #tpu.dot_dimension_numbers<[1], [0], [0], [1], [0, 0, 1, 1], [], []>} : vector<8x256xf32>, vector<256x128xf32>, vector<8x128xf32> -> vector<8x128xf32>
    %c1_114 = arith.constant 1 : index
    %c0_115 = arith.constant 0 : index
    %c0_116 = arith.constant 0 : index
    %166 = vector.load %arg14[%c1_114, %c0_115, %c0_116] : memref<2x1x128xf32, #tpu.memory_space<vmem>>, vector<1x1x128xf32>
    %167 = vector.shape_cast %166 : vector<1x1x128xf32> to vector<1x128xf32>
    %168 = vector.broadcast %167 : vector<1x128xf32> to vector<8x128xf32>
    %169 = arith.addf %165, %168 : vector<8x128xf32>
    %cst_117 = arith.constant 0.000000e+00 : f32
    %170 = vector.broadcast %cst_117 : f32 to vector<8x128xf32>
    %171 = arith.maximumf %169, %170 : vector<8x128xf32>
    %c1_118 = arith.constant 1 : index
    %c0_119 = arith.constant 0 : index
    %c0_120 = arith.constant 0 : index
    %172 = vector.load %arg15[%c1_118, %c0_119, %c0_120] : memref<2x128x128xf32, #tpu.memory_space<vmem>>, vector<1x128x128xf32>
    %173 = vector.shape_cast %172 : vector<1x128x128xf32> to vector<128x128xf32>
    %cst_121 = arith.constant dense<0.000000e+00> : vector<8x128xf32>
    %174 = tpu.matmul %171, %173, %cst_121 {dimension_numbers = #tpu.dot_dimension_numbers<[1], [0], [0], [1], [0, 0, 1, 1], [], []>} : vector<8x128xf32>, vector<128x128xf32>, vector<8x128xf32> -> vector<8x128xf32>
    %c1_122 = arith.constant 1 : index
    %c0_123 = arith.constant 0 : index
    %c0_124 = arith.constant 0 : index
    %175 = vector.load %arg16[%c1_122, %c0_123, %c0_124] : memref<2x1x128xf32, #tpu.memory_space<vmem>>, vector<1x1x128xf32>
    %176 = vector.shape_cast %175 : vector<1x1x128xf32> to vector<1x128xf32>
    %177 = vector.broadcast %176 : vector<1x128xf32> to vector<8x128xf32>
    %178 = arith.addf %174, %177 : vector<8x128xf32>
    %cst_125 = arith.constant 0.000000e+00 : f32
    %179 = vector.broadcast %cst_125 : f32 to vector<8x128xf32>
    %180 = arith.maximumf %178, %179 : vector<8x128xf32>
    %c1_126 = arith.constant 1 : index
    %c0_127 = arith.constant 0 : index
    %c0_128 = arith.constant 0 : index
    %181 = vector.load %arg17[%c1_126, %c0_127, %c0_128] : memref<2x128x128xf32, #tpu.memory_space<vmem>>, vector<1x128x128xf32>
    %182 = vector.shape_cast %181 : vector<1x128x128xf32> to vector<128x128xf32>
    %cst_129 = arith.constant dense<0.000000e+00> : vector<8x128xf32>
    %183 = tpu.matmul %180, %182, %cst_129 {dimension_numbers = #tpu.dot_dimension_numbers<[1], [0], [0], [1], [0, 0, 1, 1], [], []>} : vector<8x128xf32>, vector<128x128xf32>, vector<8x128xf32> -> vector<8x128xf32>
    %c1_130 = arith.constant 1 : index
    %c0_131 = arith.constant 0 : index
    %c0_132 = arith.constant 0 : index
    %184 = vector.load %arg18[%c1_130, %c0_131, %c0_132] : memref<2x1x128xf32, #tpu.memory_space<vmem>>, vector<1x1x128xf32>
    %185 = vector.shape_cast %184 : vector<1x1x128xf32> to vector<1x128xf32>
    %186 = vector.broadcast %185 : vector<1x128xf32> to vector<8x128xf32>
    %187 = arith.addf %183, %186 : vector<8x128xf32>
    %cst_133 = arith.constant 0.000000e+00 : f32
    %188 = vector.broadcast %cst_133 : f32 to vector<8x128xf32>
    %189 = arith.maximumf %187, %188 : vector<8x128xf32>
    %c1_134 = arith.constant 1 : index
    %c0_135 = arith.constant 0 : index
    %c0_136 = arith.constant 0 : index
    %190 = vector.load %arg19[%c1_134, %c0_135, %c0_136] : memref<2x128x256xf32, #tpu.memory_space<vmem>>, vector<1x128x256xf32>
    %191 = vector.shape_cast %190 : vector<1x128x256xf32> to vector<128x256xf32>
    %cst_137 = arith.constant dense<0.000000e+00> : vector<8x256xf32>
    %192 = tpu.matmul %189, %191, %cst_137 {dimension_numbers = #tpu.dot_dimension_numbers<[1], [0], [0], [1], [0, 0, 1, 1], [], []>} : vector<8x128xf32>, vector<128x256xf32>, vector<8x256xf32> -> vector<8x256xf32>
    %c1_138 = arith.constant 1 : index
    %c0_139 = arith.constant 0 : index
    %c0_140 = arith.constant 0 : index
    %193 = vector.load %arg20[%c1_138, %c0_139, %c0_140] : memref<2x1x256xf32, #tpu.memory_space<vmem>>, vector<1x1x256xf32>
    %194 = vector.shape_cast %193 : vector<1x1x256xf32> to vector<1x256xf32>
    %195 = vector.broadcast %194 : vector<1x256xf32> to vector<8x256xf32>
    %196 = arith.addf %192, %195 : vector<8x256xf32>
    %cst_141 = arith.constant 0.000000e+00 : f32
    %197 = vector.broadcast %cst_141 : f32 to vector<8x256xf32>
    %198 = arith.maximumf %196, %197 : vector<8x256xf32>
    %199 = arith.addf %198, %102 : vector<8x256xf32>
    %c0_142 = arith.constant 0 : index
    %c0_143 = arith.constant 0 : index
    %200 = vector.load %arg21[%c0_142, %c0_143] : memref<256x1024xf32, #tpu.memory_space<vmem>>, vector<256x1024xf32>
    %cst_144 = arith.constant dense<0.000000e+00> : vector<8x1024xf32>
    %201 = tpu.matmul %199, %200, %cst_144 {dimension_numbers = #tpu.dot_dimension_numbers<[1], [0], [0], [1], [0, 0, 1, 1], [], []>} : vector<8x256xf32>, vector<256x1024xf32>, vector<8x1024xf32> -> vector<8x1024xf32>
    %c0_145 = arith.constant 0 : index
    %c0_146 = arith.constant 0 : index
    %202 = vector.load %arg22[%c0_145, %c0_146] : memref<1x1024xf32, #tpu.memory_space<vmem>>, vector<1x1024xf32>
    %203 = vector.broadcast %202 : vector<1x1024xf32> to vector<8x1024xf32>
    %204 = arith.addf %201, %203 : vector<8x1024xf32>
    %205 = vector.extract_strided_slice %204 {offsets = [0, 0], sizes = [8, 512], strides = [1, 1]} : vector<8x1024xf32> to vector<8x512xf32>
    %206 = vector.extract_strided_slice %204 {offsets = [0, 512], sizes = [8, 512], strides = [1, 1]} : vector<8x1024xf32> to vector<8x512xf32>
    %cst_147 = arith.constant 5.000000e-01 : f32
    %207 = vector.broadcast %cst_147 : f32 to vector<8x512xf32>
    %208 = arith.mulf %207, %206 : vector<8x512xf32>
    %209 = math.exp %208 : vector<8x512xf32>
    %c0_148 = arith.constant 0 : index
    %c0_149 = arith.constant 0 : index
    %210 = vector.load %arg1[%c0_148, %c0_149] : memref<8x512xf32, #tpu.memory_space<vmem>>, vector<8x512xf32>
    %211 = arith.mulf %209, %210 : vector<8x512xf32>
    %212 = arith.addf %205, %211 : vector<8x512xf32>
    %c0_150 = arith.constant 0 : index
    %c0_151 = arith.constant 0 : index
    %213 = vector.load %arg23[%c0_150, %c0_151] : memref<512x128xf32, #tpu.memory_space<vmem>>, vector<512x128xf32>
    %cst_152 = arith.constant dense<0.000000e+00> : vector<8x128xf32>
    %214 = tpu.matmul %212, %213, %cst_152 {dimension_numbers = #tpu.dot_dimension_numbers<[1], [0], [0], [1], [0, 0, 1, 1], [], []>} : vector<8x512xf32>, vector<512x128xf32>, vector<8x128xf32> -> vector<8x128xf32>
    %c0_153 = arith.constant 0 : index
    %c0_154 = arith.constant 0 : index
    %215 = vector.load %arg24[%c0_153, %c0_154] : memref<1x128xf32, #tpu.memory_space<vmem>>, vector<1x128xf32>
    %216 = vector.broadcast %215 : vector<1x128xf32> to vector<8x128xf32>
    %217 = arith.addf %214, %216 : vector<8x128xf32>
    %cst_155 = arith.constant 0.000000e+00 : f32
    %218 = vector.broadcast %cst_155 : f32 to vector<8x128xf32>
    %219 = arith.maximumf %217, %218 : vector<8x128xf32>
    %c0_156 = arith.constant 0 : index
    %c0_157 = arith.constant 0 : index
    %220 = vector.load %arg25[%c0_156, %c0_157] : memref<128x32xf32, #tpu.memory_space<vmem>>, vector<128x32xf32>
    %cst_158 = arith.constant dense<0.000000e+00> : vector<8x32xf32>
    %221 = tpu.matmul %219, %220, %cst_158 {dimension_numbers = #tpu.dot_dimension_numbers<[1], [0], [0], [1], [0, 0, 1, 1], [], []>} : vector<8x128xf32>, vector<128x32xf32>, vector<8x32xf32> -> vector<8x32xf32>
    %c0_159 = arith.constant 0 : index
    %c0_160 = arith.constant 0 : index
    %222 = vector.load %arg26[%c0_159, %c0_160] : memref<1x32xf32, #tpu.memory_space<vmem>>, vector<1x32xf32>
    %223 = vector.broadcast %222 : vector<1x32xf32> to vector<8x32xf32>
    %224 = arith.addf %221, %223 : vector<8x32xf32>
    %cst_161 = arith.constant 0.000000e+00 : f32
    %225 = vector.broadcast %cst_161 : f32 to vector<8x32xf32>
    %226 = arith.maximumf %224, %225 : vector<8x32xf32>
    %c0_162 = arith.constant 0 : index
    %c0_163 = arith.constant 0 : index
    %227 = vector.load %arg27[%c0_162, %c0_163] : memref<32x8xf32, #tpu.memory_space<vmem>>, vector<32x8xf32>
    %cst_164 = arith.constant dense<0.000000e+00> : vector<8x8xf32>
    %228 = tpu.matmul %226, %227, %cst_164 {dimension_numbers = #tpu.dot_dimension_numbers<[1], [0], [0], [1], [0, 0, 1, 1], [], []>} : vector<8x32xf32>, vector<32x8xf32>, vector<8x8xf32> -> vector<8x8xf32>
    %c0_165 = arith.constant 0 : index
    %c0_166 = arith.constant 0 : index
    %229 = vector.load %arg28[%c0_165, %c0_166] : memref<1x8xf32, #tpu.memory_space<vmem>>, vector<1x8xf32>
    %230 = vector.broadcast %229 : vector<1x8xf32> to vector<8x8xf32>
    %231 = arith.addf %228, %230 : vector<8x8xf32>
    %cst_167 = arith.constant 0.000000e+00 : f32
    %232 = vector.broadcast %cst_167 : f32 to vector<8x8xf32>
    %233 = arith.maximumf %231, %232 : vector<8x8xf32>
    %c0_168 = arith.constant 0 : index
    %c0_169 = arith.constant 0 : index
    %234 = vector.load %arg29[%c0_168, %c0_169] : memref<8x7xf32, #tpu.memory_space<vmem>>, vector<8x7xf32>
    %cst_170 = arith.constant dense<0.000000e+00> : vector<8x7xf32>
    %235 = tpu.matmul %233, %234, %cst_170 {dimension_numbers = #tpu.dot_dimension_numbers<[1], [0], [0], [1], [0, 0, 1, 1], [], []>} : vector<8x8xf32>, vector<8x7xf32>, vector<8x7xf32> -> vector<8x7xf32>
    %c0_171 = arith.constant 0 : index
    %c0_172 = arith.constant 0 : index
    %236 = vector.load %arg30[%c0_171, %c0_172] : memref<1x7xf32, #tpu.memory_space<vmem>>, vector<1x7xf32>
    %237 = vector.broadcast %236 : vector<1x7xf32> to vector<8x7xf32>
    %238 = arith.addf %235, %237 : vector<8x7xf32>
    %c0_173 = arith.constant 0 : index
    %c0_174 = arith.constant 0 : index
    %239 = vector.load %arg31[%c0_173, %c0_174] : memref<8x7xf32, #tpu.memory_space<vmem>>, vector<8x7xf32>
    tpu.vector_store %arg31[%c0_173, %c0_174], %238 {strides = array<i32>} : memref<8x7xf32, #tpu.memory_space<vmem>>, vector<8x7xf32>,
    return
  }
}

</mosaic_0001>

<bundles_post_ra>
// kernel: tpu_custom_call.1
= control target key start
LH: loop header
LB: loop body
LE: loop exit
PB: predicated region body
PF: predicated region fallthrough
CT: control target
= control target key end

     0   :  { %s3408_s6 = smov 1   ;;  %s3409_s10 = smov 2   ;;  %s4320_s0 = inlined_call_operand.smem [shape: u32[32], index: -1, kind: input, shape index: {}] }
   0x1   :  { %s3479_s5 = sld [smem:[%s4320_s0]]   ;;  %s3410_s14 = smov 3  }
   0x2   :  { %s3484_s9 = sld [smem:[%s4320_s0 + %s3408_s6]]   ;;  %s3411_s18 = smov 4  }
   0x3   :  { %s3489_s13 = sld [smem:[%s4320_s0 + %s3409_s10]]   ;;  %s3412_s22 = smov 5  }
   0x4   :  { %s3494_s17 = sld [smem:[%s4320_s0 + %s3410_s14]]   ;;  %s3413_s26 = smov 6  }
   0x5   :  { %s3499_s21 = sld [smem:[%s4320_s0 + %s3411_s18]]   ;;  %s3414_s30 = smov 7  }
   0x6   :  { %s3504_s25 = sld [smem:[%s4320_s0 + %s3412_s22]]   ;;  %s3415_s4 = smov 8  }
   0x7   :  { %s3509_s29 = sld [smem:[%s4320_s0 + %s3413_s26]]   ;;  %s3416_s10 = smov 9  }
   0x8   :  { %s3514_s3 = sld [smem:[%s4320_s0 + %s3414_s30]]   ;;  %s3417_s15 = smov 10  }
   0x9   :  { %s3519_s8 = sld [smem:[%s4320_s0 + %s3415_s4]]   ;;  %s3418_s20 = smov 11  }
   0xa   :  { %4333 = sst [smem:[#allocation48_spill]] %s3494_s17  ;;  %s3419_s26 = smov 12  }
   0xb   :  { %s3524_s14 = sld [smem:[%s4320_s0 + %s3416_s10]]   ;;  %s3420_s1 = smov 13  }
   0xc   :  { %s3529_s19 = sld [smem:[%s4320_s0 + %s3417_s15]]   ;;  %s3421_s7 = smov 14  }
   0xd   :  { %4334 = sst [smem:[#allocation49_spill]] %s3509_s29  ;;  %s3422_s15 = smov 15  }
   0xe   :  { %4335 = sst [smem:[#allocation50_spill]] %s3514_s3  ;;  %s3423_s22 = smov 16  }
   0xf   :  { %s3534_s24 = sld [smem:[%s4320_s0 + %s3418_s20]]   ;;  %s3424_s28 = smov 17  }
  0x10   :  { %s3539_s30 = sld [smem:[%s4320_s0 + %s3419_s26]]  }
  0x11   :  { %s3544_s6 = sld [smem:[%s4320_s0 + %s3420_s1]]  }
  0x12   :  { %s3549_s12 = sld [smem:[%s4320_s0 + %s3421_s7]]   ;;  %s3425_s7 = smov 18  }
  0x13   :  { %s3554_s20 = sld [smem:[%s4320_s0 + %s3422_s15]]   ;;  %s3426_s15 = smov 19  }
  0x14   :  { %s3559_s27 = sld [smem:[%s4320_s0 + %s3423_s22]]   ;;  %s3427_s22 = smov 20  }
  0x15   :  { %s3564_s4 = sld [smem:[%s4320_s0 + %s3424_s28]]   ;;  %s3428_s28 = smov 21  }
  0x16   :  { %s3574_s3 = sld [smem:[%s4320_s0 + %s3426_s15]]   ;;  %s3430_s15 = smov 23  }
  0x17   :  { %4336 = sst [smem:[#allocation51_spill]] %s3544_s6 }
  0x18   :  { %4337 = sst [smem:[#allocation52_spill]] %s3549_s12 }
  0x19   :  { %s3569_s6 = sld [smem:[%s4320_s0 + %s3425_s7]]   ;;  %s3429_s7 = smov 22  }
  0x1a   :  { %4338 = sst [smem:[#allocation53_spill]] %s3559_s27 }
  0x1b   :  { %s3579_s17 = sld [smem:[%s4320_s0 + %s3427_s22]]   ;;  %s3431_s22 = smov 24  }
  0x1c   :  { %4340 = sst [smem:[#allocation55_spill]] %s3574_s3 }
  0x1d   :  { %s3584_s29 = sld [smem:[%s4320_s0 + %s3428_s28]]   ;;  %s3432_s28 = smov 25  }
  0x1e   :  { %s3594_s3 = sld [smem:[%s4320_s0 + %s3430_s15]]   ;;  %s3434_s15 = smov 27  }
  0x1f   :  { %4339 = sst [smem:[#allocation54_spill]] %s3569_s6 }
  0x20   :  { %s3589_s6 = sld [smem:[%s4320_s0 + %s3429_s7]]   ;;  %s3433_s7 = smov 26  }
  0x21   :  { %s3599_s27 = sld [smem:[%s4320_s0 + %s3431_s22]]   ;;  %s3435_s22 = smov 28  }
  0x22   :  { %s3609_s12 = sld [smem:[%s4320_s0 + %s3433_s7]]   ;;  %s3437_s7 = smov 30  }
  0x23   :  { %4341 = sst [smem:[#allocation56_spill]] %s3584_s29 }
  0x24   :  { %4342 = sst [smem:[#allocation57_spill]] %s3594_s3 }
  0x25   :  { %s3604_s29 = sld [smem:[%s4320_s0 + %s3432_s28]]   ;;  %s3436_s28 = smov 29  }
  0x26   :  { %s3614_s3 = sld [smem:[%s4320_s0 + %s3434_s15]]   ;;  %s3438_s15 = smov 31  }
  0x27   :  { %4343 = sst [smem:[#allocation58_spill]] %s3599_s27 }
  0x28   :  { %4345 = sst [smem:[#allocation60_spill]] %s3609_s12 }
  0x29   :  { %s3619_s27 = sld [smem:[%s4320_s0 + %s3435_s22]]  }
  0x2a   :  { %s3629_s12 = sld [smem:[%s4320_s0 + %s3437_s7]]  }
  0x2b   :  { %4344 = sst [smem:[#allocation59_spill]] %s3604_s29 }
  0x2c   :  { %4346 = sst [smem:[#allocation61_spill]] %s3614_s3 }
  0x2d   :  { %s3624_s29 = sld [smem:[%s4320_s0 + %s3436_s28]]  }
  0x2e   :  { %s3634_s3 = sld [smem:[%s4320_s0 + %s3438_s15]]  }
  0x2f   :  { %68 = vsyncpa [#allocation3], 0 }
  0x30   :  { %69 = vsyncpa [#allocation6], 0 }
  0x31   :  { %70 = vsyncpa [#allocation9], 0 }
  0x32   :  { %71 = vsyncpa [#allocation12], 0 }
  0x33   :  { %72 = vsyncpa [#allocation15], 0 }
  0x34   :  { %73 = vsyncpa [#allocation18], 0 }
  0x35   :  { %74 = vsyncpa [#allocation21], 0 }
  0x36   :  { %75 = vsyncpa [#allocation24], 0 }
  0x37   :  { %76 = vsyncpa [#allocation27], 0 }
  0x38   :  { %77 = vsyncpa [#allocation30], 0 }
  0x39   :  { %78 = vsyncpa [#allocation33], 0  ;;  %s96_s22 = sshll.u32 %s3484_s9, 4  ;;  %s97_s22 = int_to_ptr.hbm [resolvable:$true] %s96_s22 }
  0x3a   :  { %79 = vsyncpa [#allocation4], 0  ;;  %s3439_s23 = smov [#allocation5]   ;;  %s2856_s26 = sshra.s32 %s97_s22, 4  ;;  %s2857_s26 = int_to_ptr.hbm [resolvable:$true] %s2856_s26 }
  0x3b   :  { %s98_s0 = sshll.u32 %s3439_s23, 4  ;;  %s2858_s28 = scalar_lea.hbm %s2857_s26, 32  ;;  %s99_s0 = int_to_ptr.vmem [resolvable:$true] %s98_s0 }
  0x3c   :  { %p2859_p0 = scmp.ne.s32.totalorder %s2857_s26, %s2858_s28  ;;  %s2860_s1 = scalar_lea.hbm %s3484_s9, 32 }
  0x3d   :  { %p2861_p1 = scmp.lt.s32.totalorder %s2857_s26, %s3484_s9  ;;  %p2862_p2 = scmp.lt.s32.totalorder %s2860_s1, %s2858_s28 }
  0x3f   :  { %p2863_p3 = por %p2862_p2, %p2861_p1 }
  0x41   :  { %p2864_p4 = pnand %p2863_p3, %p2859_p0 }
  0x43   :  { %2867 = shalt.err (!%p2864_p4)
}
  0x44   :  { %101 = dma.hbm_to_vmem [thread:$0]  %s97_s22, 512, %s99_s0, [#allocation6]  }
  0x45   :  { %s121_s2 = sshll.u32 %s3499_s21, 4  ;;  %s3440_s7 = smov [#allocation8]   ;;  %s122_s2 = int_to_ptr.hbm [resolvable:$true] %s121_s2 }
  0x46   :  { %s123_s10 = sshll.u32 %s3440_s7, 4  ;;  %s151_s11 = sshll.u32 %s3519_s8, 4  ;;  %s124_s10 = int_to_ptr.vmem [resolvable:$true] %s123_s10  ;;  %s3641_s11 = int_to_ptr.hbm [resolvable:$true] %s151_s11 }
  0x47   :  { %s2880_s15 = sshra.s32 %s122_s2, 4  ;;  %s2884_s16 = scalar_lea.hbm %s3499_s21, 32  ;;  %s2881_s15 = int_to_ptr.hbm [resolvable:$true] %s2880_s15 }
  0x48   :  { %s2882_s9 = scalar_lea.hbm %s2881_s15, 32  ;;  %p2885_p6 = scmp.lt.s32.totalorder %s2881_s15, %s3499_s21 }
  0x49   :  { %p2883_p5 = scmp.ne.s32.totalorder %s2881_s15, %s2882_s9  ;;  %p2886_p7 = scmp.lt.s32.totalorder %s2884_s16, %s2882_s9 }
  0x4b   :  { %p2887_p8 = por %p2886_p7, %p2885_p6 }
  0x4d   :  { %p2888_p9 = pnand %p2887_p8, %p2883_p5 }
  0x4f   :  { %2891 = shalt.err (!%p2888_p9)
}
  0x50   :  { %s3441_s18 = smov 256   ;;  %s3442_s22 = smov 16  }
  0x51   :  { %129 = dma.hbm_to_vmem [thread:$0]  %s122_s2, 512, %s124_s10, [#allocation9], %s3441_s18, %s3441_s18, %s3442_s22  }
  0x52   :  { %s3443_s23 = smov [#allocation11]   ;;  %s177_s26 = sshll.u32 %s3529_s19, 4  ;;  %s3649_s26 = int_to_ptr.hbm [resolvable:$true] %s177_s26 }
  0x53   :  { %s153_s0 = sshll.u32 %s3443_s23, 4  ;;  %s2904_s21 = sshra.s32 %s3641_s11, 4  ;;  %s154_s0 = int_to_ptr.vmem [resolvable:$true] %s153_s0  ;;  %s2905_s21 = int_to_ptr.hbm [resolvable:$true] %s2904_s21 }
  0x54   :  { %s2906_s28 = scalar_lea.hbm %s2905_s21, 2  ;;  %s2908_s1 = scalar_lea.hbm %s3519_s8, 2 }
  0x55   :  { %p2907_p10 = scmp.ne.s32.totalorder %s2905_s21, %s2906_s28  ;;  %p2909_p11 = scmp.lt.s32.totalorder %s2905_s21, %s3519_s8 }
  0x56   :  { %p2910_p12 = scmp.lt.s32.totalorder %s2908_s1, %s2906_s28 }
  0x58   :  { %p2911_p13 = por %p2910_p12, %p2909_p11 }
  0x5a   :  { %p2912_p0 = pnand %p2911_p13, %p2907_p10 }
  0x5c   :  { %2915 = shalt.err (!%p2912_p0)
}
  0x5d   :  { %s3444_s7 = smov 1   ;;  %s203_s2 = sshll.u32 %s3539_s30, 4  ;;  %s3659_s2 = int_to_ptr.hbm [resolvable:$true] %s203_s2 }
  0x5e   :  { %159 = dma.hbm_to_vmem [thread:$0]  %s3641_s11, 32, %s154_s0, [#allocation12], %s3442_s22, %s3442_s22, %s3444_s7  }
  0x5f   :  { %s3445_s10 = smov [#allocation14]   ;;  %s2928_s8 = sshra.s32 %s3649_s26, 4  ;;  %s2929_s8 = int_to_ptr.hbm [resolvable:$true] %s2928_s8 }
  0x60   :  { %s179_s15 = sshll.u32 %s3445_s10, 4  ;;  %s2930_s9 = scalar_lea.hbm %s2929_s8, 2  ;;  %s180_s15 = int_to_ptr.vmem [resolvable:$true] %s179_s15 }
  0x61   :  { %p2931_p1 = scmp.ne.s32.totalorder %s2929_s8, %s2930_s9  ;;  %s2932_s16 = scalar_lea.hbm %s3529_s19, 2 }
  0x62   :  { %p2933_p2 = scmp.lt.s32.totalorder %s2929_s8, %s3529_s19  ;;  %p2934_p3 = scmp.lt.s32.totalorder %s2932_s16, %s2930_s9 }
  0x64   :  { %p2935_p4 = por %p2934_p3, %p2933_p2 }
  0x66   :  { %p2936_p5 = pnand %p2935_p4, %p2931_p1 }
  0x68   :  { %2939 = shalt.err (!%p2936_p5)
}
  0x69   :  { %185 = dma.hbm_to_vmem [thread:$0]  %s3649_s26, 32, %s180_s15, [#allocation15], %s3442_s22, %s3442_s22, %s3444_s7  }
  0x6a   :  { %s3446_s11 = smov [#allocation17]   ;;  %s231_s0 = sshll.u32 %s3554_s20, 4  ;;  %s3669_s0 = int_to_ptr.hbm [resolvable:$true] %s231_s0 }
  0x6b   :  { %s205_s23 = sshll.u32 %s3446_s11, 4  ;;  %s2952_s19 = sshra.s32 %s3659_s2, 4  ;;  %s206_s23 = int_to_ptr.vmem [resolvable:$true] %s205_s23  ;;  %s2953_s19 = int_to_ptr.hbm [resolvable:$true] %s2952_s19 }
  0x6c   :  { %s2954_s21 = scalar_lea.hbm %s2953_s19, 2  ;;  %s2956_s28 = scalar_lea.hbm %s3539_s30, 2 }
  0x6d   :  { %p2955_p6 = scmp.ne.s32.totalorder %s2953_s19, %s2954_s21  ;;  %p2957_p7 = scmp.lt.s32.totalorder %s2953_s19, %s3539_s30 }
  0x6e   :  { %p2958_p8 = scmp.lt.s32.totalorder %s2956_s28, %s2954_s21 }
  0x70   :  { %p2959_p9 = por %p2958_p8, %p2957_p7 }
  0x72   :  { %p2960_p10 = pnand %p2959_p9, %p2955_p6 }
  0x74   :  { %2963 = shalt.err (!%p2960_p10)
}
  0x75   :  { %211 = dma.hbm_to_vmem [thread:$0]  %s3659_s2, 32, %s206_s23, [#allocation18], %s3442_s22, %s3442_s22, %s3444_s7  }
  0x76   :  { %s3447_s26 = smov [#allocation20]   ;;  %s257_s10 = sshll.u32 %s3564_s4, 4  ;;  %s258_s10 = int_to_ptr.hbm [resolvable:$true] %s257_s10 }
  0x77   :  { %s233_s1 = sshll.u32 %s3447_s26, 4  ;;  %s2976_s15 = sshra.s32 %s3669_s0, 4  ;;  %s234_s1 = int_to_ptr.vmem [resolvable:$true] %s233_s1  ;;  %s2977_s15 = int_to_ptr.hbm [resolvable:$true] %s2976_s15 }
  0x78   :  { %s2978_s30 = scalar_lea.hbm %s2977_s15, 256  ;;  %s2980_s8 = scalar_lea.hbm %s3554_s20, 256 }
  0x79   :  { %p2979_p11 = scmp.ne.s32.totalorder %s2977_s15, %s2978_s30  ;;  %p2981_p12 = scmp.lt.s32.totalorder %s2977_s15, %s3554_s20 }
  0x7a   :  { %p2982_p13 = scmp.lt.s32.totalorder %s2980_s8, %s2978_s30 }
  0x7c   :  { %p2983_p0 = por %p2982_p13, %p2981_p12 }
  0x7e   :  { %p2984_p1 = pnand %p2983_p0, %p2979_p11 }
  0x80   :  { %2987 = shalt.err (!%p2984_p1)
}
  0x81   :  { %s3448_s9 = smov 128   ;;  %s3449_s16 = smov 8  }
  0x82   :  { %239 = dma.hbm_to_vmem [thread:$0]  %s3669_s0, 4096, %s234_s1, [#allocation21], %s3448_s9, %s3448_s9, %s3449_s16  }
  0x83   :  { %s3450_s2 = smov [#allocation23]   ;;  %s3000_s23 = sshra.s32 %s258_s10, 4  ;;  %s3001_s23 = int_to_ptr.hbm [resolvable:$true] %s3000_s23 }
  0x84   :  { %s259_s11 = sshll.u32 %s3450_s2, 4  ;;  %s3002_s20 = scalar_lea.hbm %s3001_s23, 256  ;;  %s260_s11 = int_to_ptr.vmem [resolvable:$true] %s259_s11 }
  0x85   :  { %p3003_p2 = scmp.ne.s32.totalorder %s3001_s23, %s3002_s20  ;;  %s3004_s19 = scalar_lea.hbm %s3564_s4, 256 }
  0x86   :  { %p3005_p3 = scmp.lt.s32.totalorder %s3001_s23, %s3564_s4  ;;  %p3006_p4 = scmp.lt.s32.totalorder %s3004_s19, %s3002_s20 }
  0x88   :  { %p3007_p5 = por %p3006_p4, %p3005_p3 }
  0x8a   :  { %p3008_p6 = pnand %p3007_p5, %p3003_p2 }
  0x8c   :  { %3011 = shalt.err (!%p3008_p6)
}
  0x8d   :  { %265 = dma.hbm_to_vmem [thread:$0]  %s258_s10, 4096, %s260_s11, [#allocation24], %s3448_s9, %s3448_s9, %s3449_s16  }
  0x8e   :  { %s285_s0 = sshll.u32 %s3579_s17, 4  ;;  %s3451_s21 = smov [#allocation26]   ;;  %s286_s0 = int_to_ptr.hbm [resolvable:$true] %s285_s0 }
  0x8f   :  { %s287_s28 = sshll.u32 %s3451_s21, 4  ;;  %s312_s26 = sshll.u32 %s3589_s6, 4  ;;  %s288_s28 = int_to_ptr.vmem [resolvable:$true] %s287_s28  ;;  %s313_s26 = int_to_ptr.hbm [resolvable:$true] %s312_s26 }
  0x90   :  { %s3024_s1 = sshra.s32 %s286_s0, 4  ;;  %s3028_s15 = scalar_lea.hbm %s3579_s17, 4  ;;  %s3025_s1 = int_to_ptr.hbm [resolvable:$true] %s3024_s1 }
  0x91   :  { %s3026_s4 = scalar_lea.hbm %s3025_s1, 4  ;;  %p3029_p8 = scmp.lt.s32.totalorder %s3025_s1, %s3579_s17 }
  0x92   :  { %p3027_p7 = scmp.ne.s32.totalorder %s3025_s1, %s3026_s4  ;;  %p3030_p9 = scmp.lt.s32.totalorder %s3028_s15, %s3026_s4 }
  0x94   :  { %p3031_p10 = por %p3030_p9, %p3029_p8 }
  0x96   :  { %p3032_p11 = pnand %p3031_p10, %p3027_p7 }
  0x98   :  { %3035 = shalt.err (!%p3032_p11)
}
  0x99   :  { %s3452_s30 = smov 32   ;;  %s3453_s10 = smov 2  }
  0x9a   :  { %293 = dma.hbm_to_vmem [thread:$0]  %s286_s0, 64, %s288_s28, [#allocation27], %s3452_s30, %s3452_s30, %s3453_s10  }
  0x9b   :  { %s3454_s8 = smov [#allocation29]   ;;  %s346_s11 = sshll.u32 %s3624_s29, 4  ;;  %s347_s11 = int_to_ptr.hbm [resolvable:$true] %s346_s11 }
  0x9c   :  { %s314_s2 = sshll.u32 %s3454_s8, 4  ;;  %s3048_s17 = sshra.s32 %s313_s26, 4  ;;  %s315_s2 = int_to_ptr.vmem [resolvable:$true] %s314_s2  ;;  %s3049_s17 = int_to_ptr.hbm [resolvable:$true] %s3048_s17 }
  0x9d   :  { %s3050_s23 = scalar_lea.hbm %s3049_s17, 8  ;;  %s3052_s20 = scalar_lea.hbm %s3589_s6, 8 }
  0x9e   :  { %p3051_p12 = scmp.ne.s32.totalorder %s3049_s17, %s3050_s23  ;;  %p3053_p13 = scmp.lt.s32.totalorder %s3049_s17, %s3589_s6 }
  0x9f   :  { %p3054_p0 = scmp.lt.s32.totalorder %s3052_s20, %s3050_s23 }
  0xa1   :  { %p3055_p1 = por %p3054_p0, %p3053_p13 }
  0xa3   :  { %p3056_p2 = pnand %p3055_p1, %p3051_p12 }
  0xa5   :  { %3059 = shalt.err (!%p3056_p2)
}
  0xa6   :  { %317 = dma.hbm_to_vmem [thread:$0]  %s313_s26, 128, %s315_s2, [#allocation30]  }
  0xa7   :  { %s85_s19 = sshll.u32 %s3479_s5, 4  ;;  %s3455_s0 = smov [#allocation32]   ;;  %s86_s19 = int_to_ptr.hbm [resolvable:$true] %s85_s19 }
  0xa8   :  { %s348_s21 = sshll.u32 %s3455_s0, 4  ;;  %s3072_s28 = sshra.s32 %s347_s11, 4  ;;  %s349_s21 = int_to_ptr.vmem [resolvable:$true] %s348_s21  ;;  %s3073_s28 = int_to_ptr.hbm [resolvable:$true] %s3072_s28 }
  0xa9   :  { %s3074_s1 = scalar_lea.hbm %s3073_s28, 8  ;;  %s3076_s4 = scalar_lea.hbm %s3624_s29, 8 }
  0xaa   :  { %p3075_p3 = scmp.ne.s32.totalorder %s3073_s28, %s3074_s1  ;;  %p3077_p4 = scmp.lt.s32.totalorder %s3073_s28, %s3624_s29 }
  0xab   :  { %p3078_p5 = scmp.lt.s32.totalorder %s3076_s4, %s3074_s1 }
  0xad   :  { %p3079_p6 = por %p3078_p5, %p3077_p4 }
  0xaf   :  { %p3080_p7 = pnand %p3079_p6, %p3075_p3 }
  0xb1   :  { %3083 = shalt.err (!%p3080_p7)
}
  0xb2   :  { %351 = dma.hbm_to_vmem [thread:$0]  %s347_s11, 128, %s349_s21, [#allocation33]  }
  0xb3   :  { %s3456_s6 = smov [#allocation2]   ;;  %s106_s15 = sshll.u32 %s3489_s13, 4  ;;  %s3705_s15 = int_to_ptr.hbm [resolvable:$true] %s106_s15 }
  0xb4   :  { %s87_s26 = sshll.u32 %s3456_s6, 4  ;;  %s3096_s8 = sshra.s32 %s86_s19, 4  ;;  %s88_s26 = int_to_ptr.vmem [resolvable:$true] %s87_s26  ;;  %s3097_s8 = int_to_ptr.hbm [resolvable:$true] %s3096_s8 }
  0xb5   :  { %s3098_s2 = scalar_lea.hbm %s3097_s8, 8  ;;  %s3100_s17 = scalar_lea.hbm %s3479_s5, 8 }
  0xb6   :  { %p3099_p8 = scmp.ne.s32.totalorder %s3097_s8, %s3098_s2  ;;  %p3101_p9 = scmp.lt.s32.totalorder %s3097_s8, %s3479_s5 }
  0xb7   :  { %p3102_p10 = scmp.lt.s32.totalorder %s3100_s17, %s3098_s2 }
  0xb9   :  { %p3103_p11 = por %p3102_p10, %p3101_p9 }
  0xbb   :  { %p3104_p12 = pnand %p3103_p11, %p3099_p8 }
  0xbd   :  { %3107 = shalt.err (!%p3104_p12)
}
  0xbe   :  { %90 = dma.hbm_to_vmem [thread:$0]  %s86_s19, 128, %s88_s26, [#allocation3]  }
  0xbf   :  { %s134_s29 = sshll.u32 %s3504_s25, 4  ;;  %s3457_s11 = smov [#allocation7]   ;;  %s3710_s29 = int_to_ptr.hbm [resolvable:$true] %s134_s29 }
  0xc0   :  { %s108_s23 = sshll.u32 %s3457_s11, 4  ;;  %s3120_s20 = sshra.s32 %s3705_s15, 4  ;;  %s109_s23 = int_to_ptr.vmem [resolvable:$true] %s108_s23  ;;  %s3121_s20 = int_to_ptr.hbm [resolvable:$true] %s3120_s20 }
  0xc1   :  { %s3122_s0 = scalar_lea.hbm %s3121_s20, 256  ;;  %s3124_s5 = scalar_lea.hbm %s3489_s13, 256 }
  0xc2   :  { %p3123_p13 = scmp.ne.s32.totalorder %s3121_s20, %s3122_s0  ;;  %p3125_p0 = scmp.lt.s32.totalorder %s3121_s20, %s3489_s13 }
  0xc3   :  { %p3126_p1 = scmp.lt.s32.totalorder %s3124_s5, %s3122_s0 }
  0xc5   :  { %p3127_p2 = por %p3126_p1, %p3125_p0 }
  0xc7   :  { %p3128_p3 = pnand %p3127_p2, %p3123_p13 }
  0xc9   :  { %3131 = shalt.err (!%p3128_p3)
}
  0xca   :  { %114 = dma.hbm_to_vmem [thread:$0]  %s3705_s15, 4096, %s109_s23, [#allocation6], %s3441_s18, %s3441_s18, %s3442_s22  }
  0xcb   :  { %s3458_s19 = smov [#allocation10]   ;;  %s164_s28 = sshll.u32 %s3524_s14, 4  ;;  %s3720_s28 = int_to_ptr.hbm [resolvable:$true] %s164_s28 }
  0xcc   :  { %s136_s21 = sshll.u32 %s3458_s19, 4  ;;  %s3144_s13 = sshra.s32 %s3710_s29, 4  ;;  %s137_s21 = int_to_ptr.vmem [resolvable:$true] %s136_s21  ;;  %s3145_s13 = int_to_ptr.hbm [resolvable:$true] %s3144_s13 }
  0xcd   :  { %s3146_s1 = scalar_lea.hbm %s3145_s13, 32  ;;  %s3148_s4 = scalar_lea.hbm %s3504_s25, 32 }
  0xce   :  { %p3147_p4 = scmp.ne.s32.totalorder %s3145_s13, %s3146_s1  ;;  %p3149_p5 = scmp.lt.s32.totalorder %s3145_s13, %s3504_s25 }
  0xcf   :  { %p3150_p6 = scmp.lt.s32.totalorder %s3148_s4, %s3146_s1 }
  0xd1   :  { %p3151_p7 = por %p3150_p6, %p3149_p5 }
  0xd3   :  { %p3152_p8 = pnand %p3151_p7, %p3147_p4 }
  0xd5   :  { %3155 = shalt.err (!%p3152_p8)
}
  0xd6   :  { %142 = dma.hbm_to_vmem [thread:$0]  %s3710_s29, 512, %s137_s21, [#allocation9], %s3441_s18, %s3441_s18, %s3442_s22  }
  0xd7   :  { %s190_s6 = sshll.u32 %s3534_s24, 4  ;;  %s3459_s26 = smov [#allocation13]   ;;  %s3730_s6 = int_to_ptr.hbm [resolvable:$true] %s190_s6 }
  0xd8   :  { %s166_s15 = sshll.u32 %s3459_s26, 4  ;;  %s3168_s25 = sshra.s32 %s3720_s28, 4  ;;  %s167_s15 = int_to_ptr.vmem [resolvable:$true] %s166_s15  ;;  %s3169_s25 = int_to_ptr.hbm [resolvable:$true] %s3168_s25 }
  0xd9   :  { %s3170_s8 = scalar_lea.hbm %s3169_s25, 2  ;;  %s3172_s2 = scalar_lea.hbm %s3524_s14, 2 }
  0xda   :  { %p3171_p9 = scmp.ne.s32.totalorder %s3169_s25, %s3170_s8  ;;  %p3173_p10 = scmp.lt.s32.totalorder %s3169_s25, %s3524_s14 }
  0xdb   :  { %p3174_p11 = scmp.lt.s32.totalorder %s3172_s2, %s3170_s8 }
  0xdd   :  { %p3175_p12 = por %p3174_p11, %p3173_p10 }
  0xdf   :  { %p3176_p13 = pnand %p3175_p12, %p3171_p9 }
  0xe1   :  { %3179 = shalt.err (!%p3176_p13)
}
  0xe2   :  { %s4347_s18 = sld [smem:[#allocation52_spill]]  ;;  %s3460_s17 = smov [#allocation16]  }
  0xe3   :  { %172 = dma.hbm_to_vmem [thread:$0]  %s3720_s28, 32, %s167_s15, [#allocation12], %s3442_s22, %s3442_s22, %s3444_s7  }
  0xe4   :  { %s192_s29 = sshll.u32 %s3460_s17, 4  ;;  %s3192_s14 = sshra.s32 %s3730_s6, 4  ;;  %s193_s29 = int_to_ptr.vmem [resolvable:$true] %s192_s29  ;;  %s3193_s14 = int_to_ptr.hbm [resolvable:$true] %s3192_s14 }
  0xe5   :  { %s3194_s23 = scalar_lea.hbm %s3193_s14, 4  ;;  %s3196_s20 = scalar_lea.hbm %s3534_s24, 4 }
  0xe6   :  { %p3195_p0 = scmp.ne.s32.totalorder %s3193_s14, %s3194_s23  ;;  %p3197_p1 = scmp.lt.s32.totalorder %s3193_s14, %s3534_s24 }
  0xe7   :  { %p3198_p2 = scmp.lt.s32.totalorder %s3196_s20, %s3194_s23 }
  0xe8   :  { %s218_s11 = sshll.u32 %s4347_s18, 4  ;;  %s3740_s11 = int_to_ptr.hbm [resolvable:$true] %s218_s11 }
  0xe9   :  { %p3199_p3 = por %p3198_p2, %p3197_p1 }
  0xeb   :  { %p3200_p4 = pnand %p3199_p3, %p3195_p0 }
  0xed   :  { %3203 = shalt.err (!%p3200_p4)
}
  0xee   :  { %s4348_s0 = sld [smem:[#allocation53_spill]]  ;;  %s3461_s19 = smov [#allocation19]  }
  0xef   :  { %198 = dma.hbm_to_vmem [thread:$0]  %s3730_s6, 64, %s193_s29, [#allocation15], %s3452_s30, %s3452_s30, %s3453_s10  }
  0xf0   :  { %s220_s21 = sshll.u32 %s3461_s19, 4  ;;  %s3216_s24 = sshra.s32 %s3740_s11, 4  ;;  %s221_s21 = int_to_ptr.vmem [resolvable:$true] %s220_s21  ;;  %s3217_s24 = int_to_ptr.hbm [resolvable:$true] %s3216_s24 }
  0xf1   :  { %s3218_s28 = scalar_lea.hbm %s3217_s24, 2  ;;  %s3220_s13 = scalar_lea.hbm %s4347_s18, 2 }
  0xf2   :  { %p3219_p5 = scmp.ne.s32.totalorder %s3217_s24, %s3218_s28  ;;  %p3221_p6 = scmp.lt.s32.totalorder %s3217_s24, %s4347_s18 }
  0xf3   :  { %p3222_p7 = scmp.lt.s32.totalorder %s3220_s13, %s3218_s28 }
  0xf4   :  { %s244_s5 = sshll.u32 %s4348_s0, 4  ;;  %s3750_s5 = int_to_ptr.hbm [resolvable:$true] %s244_s5 }
  0xf5   :  { %p3223_p8 = por %p3222_p7, %p3221_p6 }
  0xf7   :  { %p3224_p9 = pnand %p3223_p8, %p3219_p5 }
  0xf9   :  { %3227 = shalt.err (!%p3224_p9)
}
  0xfa   :  { %s4349_s30 = sld [smem:[#allocation54_spill]]  ;;  %s3462_s10 = smov [#allocation22]  }
  0xfb   :  { %226 = dma.hbm_to_vmem [thread:$0]  %s3740_s11, 32, %s221_s21, [#allocation18], %s3442_s22, %s3442_s22, %s3444_s7  }
  0xfc   :  { %s246_s1 = sshll.u32 %s3462_s10, 4  ;;  %s3240_s6 = sshra.s32 %s3750_s5, 4  ;;  %s247_s1 = int_to_ptr.vmem [resolvable:$true] %s246_s1  ;;  %s3241_s6 = int_to_ptr.hbm [resolvable:$true] %s3240_s6 }
  0xfd   :  { %s3242_s26 = scalar_lea.hbm %s3241_s6, 2  ;;  %s3244_s15 = scalar_lea.hbm %s4348_s0, 2 }
  0xfe   :  { %p3243_p10 = scmp.ne.s32.totalorder %s3241_s6, %s3242_s26  ;;  %p3245_p11 = scmp.lt.s32.totalorder %s3241_s6, %s4348_s0 }
  0xff   :  { %p3246_p12 = scmp.lt.s32.totalorder %s3244_s15, %s3242_s26 }
 0x100   :  { %s270_s4 = sshll.u32 %s4349_s30, 4  ;;  %s3760_s4 = int_to_ptr.hbm [resolvable:$true] %s270_s4 }
 0x101   :  { %p3247_p13 = por %p3246_p12, %p3245_p11 }
 0x103   :  { %p3248_p0 = pnand %p3247_p13, %p3243_p10 }
 0x105   :  { %3251 = shalt.err (!%p3248_p0)
}
 0x106   :  { %s4350_s25 = sld [smem:[#allocation56_spill]]  ;;  %s3463_s2 = smov [#allocation25]  }
 0x107   :  { %252 = dma.hbm_to_vmem [thread:$0]  %s3750_s5, 32, %s247_s1, [#allocation21], %s3442_s22, %s3442_s22, %s3444_s7  }
 0x108   :  { %s272_s18 = sshll.u32 %s3463_s2, 4  ;;  %s3264_s17 = sshra.s32 %s3760_s4, 4  ;;  %s273_s18 = int_to_ptr.vmem [resolvable:$true] %s272_s18  ;;  %s3265_s17 = int_to_ptr.hbm [resolvable:$true] %s3264_s17 }
 0x109   :  { %s3266_s29 = scalar_lea.hbm %s3265_s17, 2  ;;  %s3268_s11 = scalar_lea.hbm %s4349_s30, 2 }
 0x10a   :  { %p3267_p1 = scmp.ne.s32.totalorder %s3265_s17, %s3266_s29  ;;  %p3269_p2 = scmp.lt.s32.totalorder %s3265_s17, %s4349_s30 }
 0x10b   :  { %p3270_p3 = scmp.lt.s32.totalorder %s3268_s11, %s3266_s29 }
 0x10c   :  { %s298_s8 = sshll.u32 %s4350_s25, 4  ;;  %s3770_s8 = int_to_ptr.hbm [resolvable:$true] %s298_s8 }
 0x10d   :  { %p3271_p4 = por %p3270_p3, %p3269_p2 }
 0x10f   :  { %p3272_p5 = pnand %p3271_p4, %p3267_p1 }
 0x111   :  { %3275 = shalt.err (!%p3272_p5)
}
 0x112   :  { %278 = dma.hbm_to_vmem [thread:$0]  %s3760_s4, 32, %s273_s18, [#allocation24], %s3442_s22, %s3442_s22, %s3444_s7  }
 0x113   :  { %s3464_s14 = smov [#allocation28]   ;;  %s3288_s20 = sshra.s32 %s3770_s8, 4  ;;  %s3289_s20 = int_to_ptr.hbm [resolvable:$true] %s3288_s20 }
 0x114   :  { %s300_s23 = sshll.u32 %s3464_s14, 4  ;;  %s3290_s0 = scalar_lea.hbm %s3289_s20, 2048  ;;  %s301_s23 = int_to_ptr.vmem [resolvable:$true] %s300_s23 }
 0x115   :  { %p3291_p6 = scmp.ne.s32.totalorder %s3289_s20, %s3290_s0  ;;  %s3292_s5 = scalar_lea.hbm %s4350_s25, 2048 }
 0x116   :  { %p3293_p7 = scmp.lt.s32.totalorder %s3289_s20, %s4350_s25  ;;  %p3294_p8 = scmp.lt.s32.totalorder %s3292_s5, %s3290_s0 }
 0x118   :  { %p3295_p9 = por %p3294_p8, %p3293_p7 }
 0x11a   :  { %p3296_p10 = pnand %p3295_p9, %p3291_p6 }
 0x11c   :  { %3299 = shalt.err (!%p3296_p10)
}
 0x11d   :  { %s3465_s19 = smov 1024   ;;  %s4351_s21 = sld [smem:[#allocation57_spill]] }
 0x11e   :  { %s3466_s22 = smov 64   ;;  %s3467_s24 = smov [#allocation31]  }
 0x11f   :  { %306 = dma.hbm_to_vmem [thread:$0]  %s3770_s8, 32768, %s301_s23, [#allocation27], %s3465_s19, %s3465_s19, %s3466_s22  }
 0x120   :  { %s324_s28 = sshll.u32 %s3467_s24, 4  ;;  %s357_s13 = sshll.u32 %s3629_s12, 4  ;;  %s325_s28 = int_to_ptr.vmem [resolvable:$true] %s324_s28  ;;  %s358_s13 = int_to_ptr.hbm [resolvable:$true] %s357_s13 }
 0x123   :  { %s322_s7 = sshll.u32 %s4351_s21, 4  ;;  %s3316_s1 = scalar_lea.hbm %s4351_s21, 512  ;;  %s323_s7 = int_to_ptr.hbm [resolvable:$true] %s322_s7 }
 0x124   :  { %s3312_s30 = sshra.s32 %s323_s7, 4  ;;  %s3313_s30 = int_to_ptr.hbm [resolvable:$true] %s3312_s30 }
 0x125   :  { %s3314_s10 = scalar_lea.hbm %s3313_s30, 512  ;;  %p3317_p12 = scmp.lt.s32.totalorder %s3313_s30, %s4351_s21 }
 0x126   :  { %p3315_p11 = scmp.ne.s32.totalorder %s3313_s30, %s3314_s10  ;;  %p3318_p13 = scmp.lt.s32.totalorder %s3316_s1, %s3314_s10 }
 0x128   :  { %p3319_p0 = por %p3318_p13, %p3317_p12 }
 0x12a   :  { %p3320_p1 = pnand %p3319_p0, %p3315_p11 }
 0x12c   :  { %3323 = shalt.err (!%p3320_p1)
}
 0x12d   :  { %330 = dma.hbm_to_vmem [thread:$0]  %s323_s7, 8192, %s325_s28, [#allocation30], %s3448_s9, %s3448_s9, %s3449_s16  }
 0x12e   :  { %s3468_s4 = smov [#allocation34]   ;;  %s3336_s26 = sshra.s32 %s358_s13, 4  ;;  %s3337_s26 = int_to_ptr.hbm [resolvable:$true] %s3336_s26 }
 0x12f   :  { %s359_s6 = sshll.u32 %s3468_s4, 4  ;;  %s3338_s15 = scalar_lea.hbm %s3337_s26, 1  ;;  %s360_s6 = int_to_ptr.vmem [resolvable:$true] %s359_s6 }
 0x130   :  { %p3339_p2 = scmp.ne.s32.totalorder %s3337_s26, %s3338_s15  ;;  %s3340_s25 = scalar_lea.hbm %s3629_s12, 1 }
 0x131   :  { %p3341_p3 = scmp.lt.s32.totalorder %s3337_s26, %s3629_s12  ;;  %p3342_p4 = scmp.lt.s32.totalorder %s3340_s25, %s3338_s15 }
 0x133   :  { %p3343_p5 = por %p3342_p4, %p3341_p3 }
 0x135   :  { %p3344_p6 = pnand %p3343_p5, %p3339_p2 }
 0x137   :  { %3347 = shalt.err (!%p3344_p6)
}
 0x138   :  { %362 = dma.hbm_to_vmem [thread:$0]  %s358_s13, 16, %s360_s6, [#allocation33]  }
 0x139   :  { %3384 = dma.done.wait [#allocation3], 128  }
 0x13a   :  { %3385 = vsyncadd [#allocation3], 4294967168 }
 0x13b   :  { %3386 = dma.done.wait [#allocation6], 4608  }
 0x13c   :  { %3387 = vsyncadd [#allocation6], 4294962688 }
 0x13d   :  { %3388 = dma.done.wait [#allocation9], 1024  }
 0x13e   :  { %3389 = vsyncadd [#allocation9], 4294966272 }
 0x13f   :  { %3390 = dma.done.wait [#allocation12], 64  }
 0x140   :  { %3391 = vsyncadd [#allocation12], 4294967232 }
 0x141   :  { %3392 = dma.done.wait [#allocation15], 96  }
 0x142   :  { %3393 = vsyncadd [#allocation15], 4294967200 }
 0x143   :  { %3394 = dma.done.wait [#allocation18], 64  }
 0x144   :  { %3395 = vsyncadd [#allocation18], 4294967232 }
 0x145   :  { %3396 = dma.done.wait [#allocation21], 4128  }
 0x146   :  { %3397 = vsyncadd [#allocation21], 4294963168 }
 0x147   :  { %3398 = dma.done.wait [#allocation24], 4128  }
 0x148   :  { %3399 = vsyncadd [#allocation24], 4294963168 }
 0x149   :  { %3400 = dma.done.wait [#allocation27], 32832  }
 0x14a   :  { %3401 = vsyncadd [#allocation27], 4294934464 }
 0x14b   :  { %3402 = dma.done.wait [#allocation30], 8320  }
 0x14c   :  { %3403 = vsyncadd [#allocation30], 4294958976 }
 0x14d   :  { %3404 = dma.done.wait [#allocation33], 144  }
 0x14e   :  { %3405 = vsyncadd [#allocation33], 4294967152  ;;  %v518_v0 = vld [vmem:[#allocation7 + $0xf0] sm:$0xff]  ;;  %v519_v1 = vld [vmem:[#allocation7 + $0xf8] sm:$0xff]  ;;  %s4352_s12 = sld [smem:[#allocation49_spill]]  ;;  %vm632_vm0 = vcmask 130048  }
 0x14f   :  { %v516_v2 = vld [vmem:[#allocation7 + $0xe0] sm:$0xff]  ;;  %520 = vmatpush.msra.mxu0 %v518_v0  ;;  %540 = vmatpush.msra.mxu1 %v519_v1  ;;  %v517_v3 = vld [vmem:[#allocation7 + $0xe8] sm:$0xff]  ;;  %v514_v4 = vld [vmem:[#allocation7 + $0xd0] sm:$0xff]  ;;  %s4353_s9 = sld [smem:[#allocation48_spill]]  ;;  %vm771_vm5 = vcmask 15360   ;;  %vm820_vm7 = vcmask 1041408  }
 0x150   :  { %v515_v5 = vld [vmem:[#allocation7 + $0xd8] sm:$0xff]  ;;  %v512_v6 = vld [vmem:[#allocation7 + $0xc0] sm:$0xff]  ;;  %v513_v7 = vld [vmem:[#allocation7 + $0xc8] sm:$0xff]  ;;  %s4354_s16 = sld [smem:[#allocation50_spill]]  ;;  %s3470_s14 = smov [#allocation35]  }
 0x151   :  { %521 = vmatpush.msra.mxu0 %v516_v2  ;;  %541 = vmatpush.msra.mxu1 %v517_v3  ;;  %v510_v8 = vld [vmem:[#allocation7 + $0xb0] sm:$0xff]  ;;  %v511_v9 = vld [vmem:[#allocation7 + $0xb8] sm:$0xff]  ;;  %v508_v10 = vld [vmem:[#allocation7 + $0xa0] sm:$0xff]  ;;  %s4355_s8 = sld [smem:[#allocation51_spill]]  ;;  %s2586_s23 = sshll.u32 %s3470_s14, 4  ;;  %s2587_s23 = int_to_ptr.vmem [resolvable:$true] %s2586_s23 }
 0x152   :  { %v509_v11 = vld [vmem:[#allocation7 + $0xa8] sm:$0xff]  ;;  %v506_v12 = vld [vmem:[#allocation7 + $0x90] sm:$0xff]  ;;  %v507_v13 = vld [vmem:[#allocation7 + $0x98] sm:$0xff]  ;;  %s4356_s2 = sld [smem:[#allocation55_spill]]  ;;  %s2588_s20 = sshll.u32 %s3634_s3, 4  ;;  %s2589_s20 = int_to_ptr.hbm [resolvable:$true] %s2588_s20 }
 0x153   :  { %522 = vmatpush.msra.mxu0 %v514_v4  ;;  %542 = vmatpush.msra.mxu1 %v515_v5  ;;  %v504_v17 = vld [vmem:[#allocation7 + $0x80] sm:$0xff]  ;;  %v505_v18 = vld [vmem:[#allocation7 + $0x88] sm:$0xff]  ;;  %v502_v22 = vld [vmem:[#allocation7 + $0x70] sm:$0xff]  ;;  %s4357_s18 = sld [smem:[#allocation59_spill]]  ;;  %s3372_s0 = sshra.s32 %s2589_s20, 4  ;;  %s3373_s0 = int_to_ptr.hbm [resolvable:$true] %s3372_s0 }
 0x154   :  { %v575_v14 = vld [vmem:[%s4352_s12 + $0x78] sm:$0xff]  ;;  %v574_v16 = vld [vmem:[%s4352_s12 + $0x70] sm:$0xff]  ;;  %v573_v20 = vld [vmem:[%s4352_s12 + $0x68] sm:$0xff]  ;;  %s4358_s17 = sld [smem:[#allocation61_spill]]  ;;  %s3376_s5 = scalar_lea.hbm %s3634_s3, 8 }
 0x155   :  { %523 = vmatpush.msra.mxu0 %v512_v6  ;;  %543 = vmatpush.msra.mxu1 %v513_v7  ;;  %v591_v15 = vld [vmem:[%s4352_s12 + $0xf8] sm:$0xff]  ;;  %v590_v19 = vld [vmem:[%s4352_s12 + $0xf0] sm:$0xff]  ;;  %v589_v21 = vld [vmem:[%s4352_s12 + $0xe8] sm:$0xff]  ;;  %s4359_s29 = sld [smem:[#allocation58_spill]]  ;;  %p3377_p8 = scmp.lt.s32.totalorder %s3373_s0, %s3634_s3 }
 0x156   :  { %592 = vmatpush.msra.mxu2 %v575_v14  ;;  %612 = vmatpush.msra.mxu3 %v591_v15  ;;  %v503_v23 = vld [vmem:[#allocation7 + $0x78] sm:$0xff]  ;;  %v500_v26 = vld [vmem:[#allocation7 + $0x60] sm:$0xff]  ;;  %v501_v27 = vld [vmem:[#allocation7 + $0x68] sm:$0xff]  ;;  %s4360_s11 = sld [smem:[#allocation60_spill]] }
 0x157   :  { %524 = vmatpush.msra.mxu0 %v510_v8  ;;  %544 = vmatpush.msra.mxu1 %v511_v9  ;;  %v572_v24 = vld [vmem:[%s4352_s12 + $0x60] sm:$0xff]  ;;  %v571_v28 = vld [vmem:[%s4352_s12 + $0x58] sm:$0xff]  ;;  %v496_v32 = vld [vmem:[#allocation7 + $0x40] sm:$0xff] }
 0x158   :  { %593 = vmatpush.msra.mxu2 %v574_v16  ;;  %613 = vmatpush.msra.mxu3 %v590_v19  ;;  %v588_v25 = vld [vmem:[%s4352_s12 + $0xe0] sm:$0xff]  ;;  %v587_v29 = vld [vmem:[%s4352_s12 + $0xd8] sm:$0xff]  ;;  %v497_v33 = vld [vmem:[#allocation7 + $0x48] sm:$0xff] }
 0x159   :  { %525 = vmatpush.msra.mxu0 %v508_v10  ;;  %545 = vmatpush.msra.mxu1 %v509_v11  ;;  %v498_v30 = vld [vmem:[#allocation7 + $0x50] sm:$0xff]  ;;  %v499_v31 = vld [vmem:[#allocation7 + $0x58] sm:$0xff]  ;;  %v570_v34 = vld [vmem:[%s4352_s12 + $0x50] sm:$0xff] }
 0x15a   :  { %594 = vmatpush.msra.mxu2 %v573_v20  ;;  %614 = vmatpush.msra.mxu3 %v589_v21  ;;  %v586_v35 = vld [vmem:[%s4352_s12 + $0xd0] sm:$0xff]  ;;  %v494_v36 = vld [vmem:[#allocation7 + $0x30] sm:$0xff]  ;;  %v495_v37 = vld [vmem:[#allocation7 + $0x38] sm:$0xff] }
 0x15b   :  { %526 = vmatpush.msra.mxu0 %v506_v12  ;;  %546 = vmatpush.msra.mxu1 %v507_v13  ;;  %v569_v38 = vld [vmem:[%s4352_s12 + $0x48] sm:$0xff]  ;;  %v568_v40 = vld [vmem:[%s4352_s12 + $0x40] sm:$0xff]  ;;  %v493_v43 = vld [vmem:[#allocation7 + $0x28] sm:$0xff] }
 0x15c   :  { %595 = vmatpush.msra.mxu2 %v572_v24  ;;  %615 = vmatpush.msra.mxu3 %v588_v25  ;;  %v585_v39 = vld [vmem:[%s4352_s12 + $0xc8] sm:$0xff]  ;;  %v584_v41 = vld [vmem:[%s4352_s12 + $0xc0] sm:$0xff]  ;;  %v567_v44 = vld [vmem:[%s4352_s12 + $0x38] sm:$0xff] }
 0x15d   :  { %527 = vmatpush.msra.mxu0 %v504_v17  ;;  %547 = vmatpush.msra.mxu1 %v505_v18  ;;  %v492_v42 = vld [vmem:[#allocation7 + $0x20] sm:$0xff]  ;;  %v583_v45 = vld [vmem:[%s4352_s12 + $0xb8] sm:$0xff]  ;;  %v491_v47 = vld [vmem:[#allocation7 + $0x18] sm:$0xff] }
 0x15e   :  { %596 = vmatpush.msra.mxu2 %v571_v28  ;;  %616 = vmatpush.msra.mxu3 %v587_v29  ;;  %v490_v46 = vld [vmem:[#allocation7 + $0x10] sm:$0xff]  ;;  %v566_v48 = vld [vmem:[%s4352_s12 + $0x30] sm:$0xff]  ;;  %v488_v50 = vld [vmem:[#allocation7] sm:$0xff] }
 0x15f   :  { %528 = vmatpush.msra.mxu0 %v502_v22  ;;  %548 = vmatpush.msra.mxu1 %v503_v23  ;;  %v582_v49 = vld [vmem:[%s4352_s12 + $0xb0] sm:$0xff]  ;;  %v487_v52 = vld [vmem:[#allocation2] sm:$0xff]  ;;  %v565_v53 = vld [vmem:[%s4352_s12 + $0x28] sm:$0xff] }
 0x160   :  { %597 = vmatpush.msra.mxu2 %v570_v34  ;;  %617 = vmatpush.msra.mxu3 %v586_v35  ;;  %v489_v51 = vld [vmem:[#allocation7 + $0x8] sm:$0xff]  ;;  %v581_v54 = vld [vmem:[%s4352_s12 + $0xa8] sm:$0xff]  ;;  %v564_v55 = vld [vmem:[%s4352_s12 + $0x20] sm:$0xff] }
 0x161   :  { %529 = vmatpush.msra.mxu0 %v500_v26  ;;  %549 = vmatpush.msra.mxu1 %v501_v27  ;;  %v580_v56 = vld [vmem:[%s4352_s12 + $0xa0] sm:$0xff]  ;;  %v563_v57 = vld [vmem:[%s4352_s12 + $0x18] sm:$0xff]  ;;  %v562_v59 = vld [vmem:[%s4352_s12 + $0x10] sm:$0xff] }
 0x162   :  { %598 = vmatpush.msra.mxu2 %v569_v38  ;;  %618 = vmatpush.msra.mxu3 %v585_v39  ;;  %v579_v58 = vld [vmem:[%s4352_s12 + $0x98] sm:$0xff]  ;;  %v578_v60 = vld [vmem:[%s4352_s12 + $0x90] sm:$0xff]  ;;  %v561_v61 = vld [vmem:[%s4352_s12 + $0x8] sm:$0xff] }
 0x163   :  { %530 = vmatpush.msra.mxu0 %v498_v30  ;;  %550 = vmatpush.msra.mxu1 %v499_v31  ;;  %v577_v62 = vld [vmem:[%s4352_s12 + $0x88] sm:$0xff]  ;;  %v560_v63 = vld [vmem:[%s4352_s12] sm:$0xff]  ;;  %v3835_v12 = vld [vmem:[#allocation8 + $0x10] sm:$0xff] }
 0x164   :  { %599 = vmatpush.msra.mxu2 %v568_v40  ;;  %619 = vmatpush.msra.mxu3 %v584_v41  ;;  %v576_v0 = vld [vmem:[%s4352_s12 + $0x80] sm:$0xff]  ;;  %v3837_v13 = vld [vmem:[#allocation8] sm:$0xff]  ;;  %v3843_v15 = vld [vmem:[#allocation8 + $0x8] sm:$0xff] }
 0x165   :  { %531 = vmatpush.msra.mxu0 %v496_v32  ;;  %551 = vmatpush.msra.mxu1 %v497_v33  ;;  %v3841_v14 = vld [vmem:[#allocation8 + $0x18] sm:$0xff]  ;;  %v3848_v16 = vld [vmem:[%s4353_s9 + $0x78] sm:$0xff]  ;;  %v3851_v17 = vld [vmem:[%s4353_s9 + $0x70] sm:$0xff] }
 0x166   :  { %600 = vmatpush.msra.mxu2 %v567_v44  ;;  %620 = vmatpush.msra.mxu3 %v583_v45  ;;  %v3855_v18 = vld [vmem:[%s4353_s9 + $0xf8] sm:$0xff]  ;;  %v3858_v19 = vld [vmem:[%s4353_s9 + $0x68] sm:$0xff]  ;;  %v3862_v20 = vld [vmem:[%s4353_s9 + $0xf0] sm:$0xff] }
 0x167   :  { %532 = vmatpush.msra.mxu0 %v494_v36  ;;  %552 = vmatpush.msra.mxu1 %v495_v37  ;;  %v3866_v21 = vld [vmem:[%s4353_s9 + $0xe8] sm:$0xff]  ;;  %v3869_v23 = vld [vmem:[%s4353_s9 + $0x60] sm:$0xff]  ;;  %v3877_v25 = vld [vmem:[%s4353_s9 + $0x58] sm:$0xff] }
 0x168   :  { %601 = vmatpush.msra.mxu2 %v566_v48  ;;  %621 = vmatpush.msra.mxu3 %v582_v49  ;;  %v3874_v24 = vld [vmem:[%s4353_s9 + $0xe0] sm:$0xff]  ;;  %v3882_v26 = vld [vmem:[%s4353_s9 + $0xd8] sm:$0xff]  ;;  %v3885_v27 = vld [vmem:[%s4353_s9 + $0x50] sm:$0xff] }
 0x169   :  { %533 = vmatpush.msra.mxu0 %v492_v42  ;;  %553 = vmatpush.msra.mxu1 %v493_v43  ;;  %v3890_v28 = vld [vmem:[%s4353_s9 + $0xd0] sm:$0xff]  ;;  %v3893_v29 = vld [vmem:[%s4353_s9 + $0x48] sm:$0xff]  ;;  %v3901_v33 = vld [vmem:[%s4353_s9 + $0x40] sm:$0xff] }
 0x16a   :  { %602 = vmatpush.msra.mxu2 %v565_v53  ;;  %622 = vmatpush.msra.mxu3 %v581_v54  ;;  %v3898_v31 = vld [vmem:[%s4353_s9 + $0xc8] sm:$0xff]  ;;  %v3906_v34 = vld [vmem:[%s4353_s9 + $0xc0] sm:$0xff]  ;;  %v3909_v36 = vld [vmem:[%s4353_s9 + $0x38] sm:$0xff] }
 0x16b   :  { %534 = vmatpush.msra.mxu0 %v490_v46  ;;  %554 = vmatpush.msra.mxu1 %v491_v47  ;;  %v3914_v38 = vld [vmem:[%s4353_s9 + $0xb8] sm:$0xff]  ;;  %v3917_v41 = vld [vmem:[%s4353_s9 + $0x30] sm:$0xff]  ;;  %v3925_v44 = vld [vmem:[%s4353_s9 + $0x28] sm:$0xff] }
 0x16c   :  { %603 = vmatpush.msra.mxu2 %v564_v55  ;;  %623 = vmatpush.msra.mxu3 %v580_v56  ;;  %v3922_v42 = vld [vmem:[%s4353_s9 + $0xb0] sm:$0xff]  ;;  %v3930_v47 = vld [vmem:[%s4353_s9 + $0x20] sm:$0xff]  ;;  %v3950_v53 = vld [vmem:[%s4353_s9 + $0xa8] sm:$0xff] }
 0x16d   :  { %535 = vmatpush.msra.mxu0 %v488_v50  ;;  %555 = vmatpush.msra.mxu1 %v489_v51  ;;  %v3936_v50 = vld [vmem:[%s4353_s9 + $0x18] sm:$0xff]  ;;  %v3941_v51 = vld [vmem:[%s4353_s9 + $0x10] sm:$0xff]  ;;  %v3955_v54 = vld [vmem:[%s4353_s9] sm:$0xff] }
 0x16e   :  { %536 = vmatmul.f32.vlgmr.msra.gmra.mxu0 %v487_v52  ;;  %556 = vmatmul.f32.vlgmr.msra.gmra.mxu1 %v487_v52  ;;  %v3947_v52 = vld [vmem:[%s4353_s9 + $0x8] sm:$0xff]  ;;  %v3958_v55 = vld [vmem:[%s4353_s9 + $0xa0] sm:$0xff]  ;;  %v3963_v56 = vld [vmem:[%s4353_s9 + $0x98] sm:$0xff] }
 0x16f   :  { %604 = vmatpush.msra.mxu2 %v563_v57  ;;  %624 = vmatpush.msra.mxu3 %v579_v58  ;;  %v3966_v57 = vld [vmem:[%s4353_s9 + $0x90] sm:$0xff]  ;;  %v3971_v58 = vld [vmem:[%s4353_s9 + $0x88] sm:$0xff] }
 0x170   :  { %674 = vmatpush.msrb.mxu1 %v3835_v12 }
 0x171   :  { %605 = vmatpush.msra.mxu2 %v562_v59  ;;  %625 = vmatpush.msra.mxu3 %v578_v60  ;;  %v3975_v59 = vld [vmem:[%s4353_s9 + $0x80] sm:$0xff] }
 0x172   :  { %675 = vmatpush.msrb.mxu1 %v3837_v13 }
 0x173   :  { %606 = vmatpush.msra.mxu2 %v561_v61  ;;  %626 = vmatpush.msra.mxu3 %v577_v62 }
 0x174   :  { %694 = vmatpush.msra.mxu1 %v3841_v14 }
 0x175   :  { %607 = vmatpush.msra.mxu2 %v560_v63  ;;  %627 = vmatpush.msra.mxu3 %v576_v0  ;;  %v743_v0 = vld [vmem:[%s4354_s16 + $0x8] sm:$0xff] }
 0x176   :  { %695 = vmatpush.msra.mxu1 %v3843_v15  ;;  %765 = vmatpush.msrb.mxu0 %v743_v0 }
 0x177   :  { %702 = vmatpush.msrb.mxu2 %v3848_v16  ;;  %722 = vmatpush.msrb.mxu3 %v3855_v18 }
 0x179   :  { %703 = vmatpush.msrb.mxu2 %v3851_v17  ;;  %723 = vmatpush.msrb.mxu3 %v3862_v20 }
 0x17b   :  { %704 = vmatpush.msrb.mxu2 %v3858_v19  ;;  %724 = vmatpush.msrb.mxu3 %v3866_v21 }
 0x17d   :  { %705 = vmatpush.msrb.mxu2 %v3869_v23  ;;  %725 = vmatpush.msrb.mxu3 %v3874_v24 }
 0x17f   :  { %706 = vmatpush.msrb.mxu2 %v3877_v25  ;;  %726 = vmatpush.msrb.mxu3 %v3882_v26 }
 0x181   :  { %707 = vmatpush.msrb.mxu2 %v3885_v27  ;;  %727 = vmatpush.msrb.mxu3 %v3890_v28 }
 0x183   :  { %708 = vmatpush.msrb.mxu2 %v3893_v29  ;;  %728 = vmatpush.msrb.mxu3 %v3898_v31 }
 0x185   :  { %709 = vmatpush.msrb.mxu2 %v3901_v33  ;;  %729 = vmatpush.msrb.mxu3 %v3906_v34 }
 0x187   :  { %710 = vmatpush.msrb.mxu2 %v3909_v36  ;;  %730 = vmatpush.msrb.mxu3 %v3914_v38 }
 0x189   :  { %711 = vmatpush.msrb.mxu2 %v3917_v41  ;;  %731 = vmatpush.msrb.mxu3 %v3922_v42 }
 0x18b   :  { %712 = vmatpush.msrb.mxu2 %v3925_v44  ;;  %732 = vmatpush.msrb.mxu3 %v3950_v53 }
 0x18d   :  { %713 = vmatpush.msrb.mxu2 %v3930_v47  ;;  %733 = vmatpush.msrb.mxu3 %v3958_v55 }
 0x18f   :  { %714 = vmatpush.msrb.mxu2 %v3936_v50  ;;  %734 = vmatpush.msrb.mxu3 %v3963_v56 }
 0x191   :  { %715 = vmatpush.msrb.mxu2 %v3941_v51  ;;  %735 = vmatpush.msrb.mxu3 %v3966_v57 }
 0x193   :  { %716 = vmatpush.msrb.mxu2 %v3947_v52  ;;  %736 = vmatpush.msrb.mxu3 %v3971_v58 }
 0x195   :  { %717 = vmatpush.msrb.mxu2 %v3955_v54  ;;  %737 = vmatpush.msrb.mxu3 %v3975_v59 }
 0x1eb   :  { %v3824_v1 = vpop.f32.mrf.mxu0  ;;  %v3826_v2 = vpop.f32.mrf.mxu1 }
 0x1ec   :  { %608 = vmatmul.f32.vlgmr.msra.gmra.mxu2 %v3824_v1  ;;  %628 = vmatmul.f32.vlgmr.msra.gmra.mxu3 %v3826_v2 }
 0x26f   :  { %v609_v3 = vpop.f32.mrf.mxu2  ;;  %v629_v4 = vpop.f32.mrf.mxu3 }
 0x270   :  { %v630_v5 = vadd.f32 %v629_v4, %v609_v3  ;;  %v742_v3 = vld [vmem:[%s4354_s16] sm:$0xff] }
 0x271   :  { %766 = vmatpush.msrb.mxu0 %v742_v3 }
 0x272   :  { %v633_v6 = vsel %vm632_vm0, %v630_v5, -inf }
 0x273   :  { %634 = vmax.xlane.f32.xlu0 %v633_v6 }
 0x2e6   :  { %v635_v7 = vpop.xlane.xlu0 %634 }
 0x2e7   :  { %v636_v8 = vsub.f32 %v630_v5, %v635_v7  ;;  %v2816_v7 = vld [vmem:[#allocation11] ss:$0 sm:$0xff] }
 0x2e9   :  { %v637_v9 = vmul.f32 1.442695, %v636_v8 }
 0x2eb   :  { %2834 = vpow2.f32 %v637_v9 }
 0x2f1   :  { %v3831_v10 = vpop.eup %2834 }
 0x2f2   :  { %v639_v11 = vsel %vm632_vm0, %v3831_v10, 0.0 }
 0x2f3   :  { %640 = vadd.xlane.f32.xlu0 %v639_v11  ;;  %v3469_v11 = vmov 2.0  }
 0x366   :  { %v641_v22 = vpop.xlane.xlu0 %640 }
 0x367   :  { %2836 = vrcp.f32 %v641_v22  ;;  %v653_v37 = vand.u32 2147483648, %v641_v22  ;;  %v651_v40 = vand.u32 2147483647, %v641_v22  ;;  %vm647_vm2 = vweird.f32 %v641_v22 }
 0x368   :  { %2838 = vrcp.f32 %v3469_v11 }
 0x369   :  { %v654_v45 = vor.u32 1.1754944e-38, %v653_v37  ;;  %vm652_vm4 = vcmp.eq.f32.partialorder %v651_v40, 8.507059e+37 }
 0x36d   :  { %v2837_v30 = vpop.eup %2836 }
 0x36e   :  { %v643_v32 = vmul.f32 %v2837_v30, %v641_v22  ;;  %vm648_vm1 = vweird.f32 %v2837_v30  ;;  %v2839_v22 = vpop.eup %2838 }
 0x36f   :  { %vm649_vm3 = vmor %vm647_vm2, %vm648_vm1  ;;  %vm780_vm6 = vweird.f32 %v2839_v22 }
 0x370   :  { %v644_v35 = vsub.f32 1.0, %v643_v32 }
 0x372   :  { %v645_v39 = vmul.f32 %v2837_v30, %v644_v35 }
 0x374   :  { %v646_v43 = vadd.f32 %v2837_v30, %v645_v39 }
 0x376   :  { %v650_v46 = vsel %vm649_vm3, %v2837_v30, %v646_v43  ;;  %v776_v30 = vmul.f32 2.0, %v2839_v22  ;;  %vm2555_vm3 = vcmask 64512  }
 0x377   :  { %v655_v48 = vsel %vm652_vm4, %v654_v45, %v650_v46  ;;  %vm2579_vm4 = vcmask 56320  }
 0x378   :  { %v656_v49 = vmul.f32 %v3831_v10, %v655_v48  ;;  %v777_v32 = vsub.f32 1.0, %v776_v30 }
 0x37a   :  { %2639 = vmatmul.msk.f32.vlgmr.msrb.gmra.mxu1 %vm632_vm0, %v656_v49  ;;  %v778_v35 = vmul.f32 %v2839_v22, %v777_v32  ;;  %v3991_v32 = vld [vmem:[#allocation10 + $0x10] sm:$0xff] }
 0x37b   :  { %861 = vmatpush.msra.mxu0 %v3991_v32 }
 0x37c   :  { %v779_v37 = vadd.f32 %v2839_v22, %v778_v35  ;;  %v3993_v35 = vld [vmem:[#allocation10 + $0x18] sm:$0xff] }
 0x37e   :  { %v3984_v39 = vsel %vm780_vm6, %v2839_v22, %v779_v37  ;;  %v3997_v37 = vld [vmem:[#allocation10] sm:$0xff] }
 0x37f   :  { %862 = vmatpush.msra.mxu0 %v3997_v37 }
 0x382   :  { %2640 = vmatmul.msk.f32.vlgmr.msra.gmra.mxu1 %vm632_vm0, %v656_v49  ;;  %v812_v49 = vld [vmem:[#allocation16] sm:$0x3] }
 0x383   :  { %2642 = vmatpush.msk.msrb.mxu1 %vm820_vm7, %v812_v49  ;;  %v904_v49 = vld [vmem:[%s4355_s8 + $0x68] sm:$0xff] }
 0x385   :  { %881 = vmatpush.msra.mxu1 %v3993_v35 }
 0x3f7   :  { %v677_v60 = vpop.f32.mrf.mxu1 }
 0x3f8   :  { %v700_v61 = vmul.f32 %v677_v60, %v3824_v1 }
 0x3fa   :  { %718 = vmatmul.f32.vlgmr.msrb.gmra.mxu2 %v700_v61 }
 0x3ff   :  { %v697_v62 = vpop.f32.mrf.mxu1 }
 0x400   :  { %v701_v63 = vmul.f32 %v697_v62, %v3826_v2 }
 0x402   :  { %738 = vmatmul.f32.vlgmr.msrb.gmra.mxu3 %v701_v63 }
 0x47d   :  { %v719_v4 = vpop.f32.mrf.mxu2 }
 0x485   :  { %v739_v5 = vpop.f32.mrf.mxu3 }
 0x486   :  { %v740_v6 = vadd.f32 %v739_v5, %v719_v4 }
 0x488   :  { %2641 = vmatmul.msk.f32.vlgmr.msrb.gmra.mxu0 %vm632_vm0, %v740_v6 }
 0x505   :  { %v768_v8 = vpop.f32.mrf.mxu0 }
 0x506   :  { %v769_v9 = vadd.f32 %v2816_v7, %v768_v8  ;;  %v2817_v7 = vld [vmem:[#allocation13] ss:$0 sm:$0xff] }
 0x508   :  { %v772_v10 = vsel %vm771_vm5, %v769_v9, 0.0 }
 0x509   :  { %773 = vadd.xlane.f32.xlu1 %v772_v10  ;;  %v2818_v10 = vld [vmem:[#allocation14] ss:$0 sm:$0xff] }
 0x57c   :  { %v774_v40 = vpop.xlane.xlu1 %773 }
 0x57d   :  { %v782_v43 = vmul.f32 %v3984_v39, %v774_v40  ;;  %v3999_v40 = vld [vmem:[#allocation10 + $0x8] sm:$0xff] }
 0x57e   :  { %882 = vmatpush.msra.mxu1 %v3999_v40 }
 0x57f   :  { %v783_v45 = vsub.f32 %v769_v9, %v782_v43  ;;  %v906_v43 = vld [vmem:[%s4355_s8 + $0x78] sm:$0xff] }
 0x580   :  { %927 = vmatpush.msrb.mxu0 %v906_v43  ;;  %v912_v43 = vld [vmem:[%s4355_s8 + $0xa8] sm:$0xff] }
 0x581   :  { %v784_v46 = vmul.f32 %v783_v45, %v783_v45 }
 0x583   :  { %v785_v48 = vsel %vm771_vm5, %v784_v46, 0.0  ;;  %v905_v46 = vld [vmem:[%s4355_s8 + $0x70] sm:$0xff] }
 0x584   :  { %786 = vadd.xlane.f32.xlu1 %v785_v48  ;;  %v921_v48 = vld [vmem:[%s4355_s8 + $0xf0] sm:$0xff]  ;;  %928 = vmatpush.msrb.mxu0 %v905_v46  ;;  %v911_v46 = vld [vmem:[%s4355_s8 + $0xa0] sm:$0xff] }
 0x586   :  { %929 = vmatpush.msrb.mxu0 %v904_v49  ;;  %v910_v49 = vld [vmem:[%s4355_s8 + $0x98] sm:$0xff] }
 0x5f7   :  { %v787_v60 = vpop.xlane.xlu1 %786 }
 0x5f8   :  { %v788_v61 = vmul.f32 %v787_v60, %v3984_v39  ;;  %v920_v60 = vld [vmem:[%s4355_s8 + $0xe8] sm:$0xff] }
 0x5fa   :  { %v789_v62 = vadd.f32 1e-05, %v788_v61  ;;  %v903_v61 = vld [vmem:[%s4355_s8 + $0x60] sm:$0xff] }
 0x5fb   :  { %930 = vmatpush.msrb.mxu0 %v903_v61 }
 0x5fc   :  { %2840 = vrsqrt.f32 %v789_v62  ;;  %vm796_vm9 = vweird.f32 %v789_v62 }
 0x602   :  { %v2841_v63 = vpop.eup %2840 }
 0x603   :  { %v791_v0 = vmul.f32 %v2841_v63, %v789_v62  ;;  %vm797_vm8 = vweird.f32 %v2841_v63  ;;  %v919_v62 = vld [vmem:[%s4355_s8 + $0xe0] sm:$0xff] }
 0x604   :  { %vm798_vm10 = vmor %vm796_vm9, %vm797_vm8 }
 0x605   :  { %v792_v3 = vmul.f32 %v2841_v63, %v791_v0  ;;  %v918_v0 = vld [vmem:[%s4355_s8 + $0xd8] sm:$0xff] }
 0x607   :  { %v793_v4 = vmul.f32 0.5, %v792_v3  ;;  %v901_v3 = vld [vmem:[%s4355_s8 + $0x50] sm:$0xff] }
 0x609   :  { %v794_v5 = vsub.f32 1.5, %v793_v4  ;;  %v917_v4 = vld [vmem:[%s4355_s8 + $0xd0] sm:$0xff] }
 0x60b   :  { %v795_v6 = vmul.f32 %v2841_v63, %v794_v5  ;;  %v900_v5 = vld [vmem:[%s4355_s8 + $0x48] sm:$0xff] }
 0x60d   :  { %v799_v8 = vsel %vm798_vm10, %v2841_v63, %v795_v6  ;;  %v902_v63 = vld [vmem:[%s4355_s8 + $0x58] sm:$0xff]  ;;  %v916_v6 = vld [vmem:[%s4355_s8 + $0xc8] sm:$0xff] }
 0x60e   :  { %v800_v9 = vmul.f32 %v799_v8, %v783_v45  ;;  %v922_v45 = vld [vmem:[%s4355_s8 + $0xf8] sm:$0xff]  ;;  %931 = vmatpush.msrb.mxu0 %v902_v63  ;;  %v915_v8 = vld [vmem:[%s4355_s8 + $0xc0] sm:$0xff]  ;;  %v893_v63 = vld [vmem:[%s4355_s8 + $0x10] sm:$0xff] }
 0x610   :  { %v805_v11 = vmul.f32 %v2817_v7, %v800_v9  ;;  %932 = vmatpush.msrb.mxu0 %v901_v3  ;;  %v899_v7 = vld [vmem:[%s4355_s8 + $0x40] sm:$0xff]  ;;  %v898_v9 = vld [vmem:[%s4355_s8 + $0x38] sm:$0xff]  ;;  %v892_v3 = vld [vmem:[%s4355_s8 + $0x8] sm:$0xff] }
 0x612   :  { %v810_v22 = vadd.f32 %v2818_v10, %v805_v11  ;;  %933 = vmatpush.msrb.mxu0 %v900_v5  ;;  %v914_v10 = vld [vmem:[%s4355_s8 + $0xb8] sm:$0xff]  ;;  %v897_v11 = vld [vmem:[%s4355_s8 + $0x30] sm:$0xff]  ;;  %v891_v5 = vld [vmem:[%s4355_s8] sm:$0xff] }
 0x614   :  { %v811_v30 = vmax.f32 %v810_v22, 0.0  ;;  %934 = vmatpush.msrb.mxu0 %v899_v7  ;;  %v913_v22 = vld [vmem:[%s4355_s8 + $0xb0] sm:$0xff] }
 0x615   :  { %v983_v7 = vld [vmem:[#allocation20 + $0x78] sm:$0xff] }
 0x616   :  { %2643 = vmatmul.msk.f32.vlgmr.msrb.gmra.mxu1 %vm771_vm5, %v811_v30  ;;  %935 = vmatpush.msrb.mxu0 %v898_v9  ;;  %v896_v30 = vld [vmem:[%s4355_s8 + $0x28] sm:$0xff]  ;;  %v981_v9 = vld [vmem:[#allocation20 + $0x68] sm:$0xff] }
 0x617   :  { %947 = vmatpush.msrb.mxu1 %v922_v45  ;;  %v895_v45 = vld [vmem:[%s4355_s8 + $0x20] sm:$0xff]  ;;  %988 = vmatpush.msra.mxu2 %v983_v7  ;;  %v968_v7 = vld [vmem:[#allocation20] sm:$0xff] }
 0x618   :  { %936 = vmatpush.msrb.mxu0 %v897_v11  ;;  %v979_v11 = vld [vmem:[#allocation20 + $0x58] sm:$0xff] }
 0x619   :  { %948 = vmatpush.msrb.mxu1 %v921_v48  ;;  %v894_v48 = vld [vmem:[%s4355_s8 + $0x18] sm:$0xff] }
 0x61a   :  { %937 = vmatpush.msrb.mxu0 %v896_v30  ;;  %v977_v30 = vld [vmem:[#allocation20 + $0x48] sm:$0xff] }
 0x61b   :  { %949 = vmatpush.msrb.mxu1 %v920_v60  ;;  %v2819_v60 = vld [vmem:[#allocation17] ss:$0 sm:$0xff] }
 0x61c   :  { %938 = vmatpush.msrb.mxu0 %v895_v45  ;;  %v975_v45 = vld [vmem:[#allocation20 + $0x38] sm:$0xff] }
 0x61d   :  { %950 = vmatpush.msrb.mxu1 %v919_v62 }
 0x61e   :  { %939 = vmatpush.msrb.mxu0 %v894_v48  ;;  %v973_v48 = vld [vmem:[#allocation20 + $0x28] sm:$0xff] }
 0x61f   :  { %951 = vmatpush.msrb.mxu1 %v918_v0  ;;  %v909_v0 = vld [vmem:[%s4355_s8 + $0x90] sm:$0xff] }
 0x620   :  { %940 = vmatpush.msrb.mxu0 %v893_v63 }
 0x621   :  { %952 = vmatpush.msrb.mxu1 %v917_v4  ;;  %v908_v4 = vld [vmem:[%s4355_s8 + $0x88] sm:$0xff] }
 0x622   :  { %941 = vmatpush.msrb.mxu0 %v892_v3 }
 0x623   :  { %953 = vmatpush.msrb.mxu1 %v916_v6  ;;  %v907_v6 = vld [vmem:[%s4355_s8 + $0x80] sm:$0xff] }
 0x624   :  { %942 = vmatpush.msrb.mxu0 %v891_v5  ;;  %v970_v5 = vld [vmem:[#allocation20 + $0x10] sm:$0xff] }
 0x625   :  { %954 = vmatpush.msrb.mxu1 %v915_v8  ;;  %v982_v8 = vld [vmem:[#allocation20 + $0x70] sm:$0xff] }
 0x626   :  { %989 = vmatpush.msra.mxu2 %v982_v8  ;;  %v1024_v8 = vld [vmem:[#allocation23 + $0x78] sm:$0xff] }
 0x627   :  { %955 = vmatpush.msrb.mxu1 %v914_v10  ;;  %v980_v10 = vld [vmem:[#allocation20 + $0x60] sm:$0xff]  ;;  %1029 = vmatpush.msra.mxu3 %v1024_v8 }
 0x628   :  { %990 = vmatpush.msra.mxu2 %v981_v9  ;;  %v1023_v9 = vld [vmem:[#allocation23 + $0x70] sm:$0xff]  ;;  %v1009_v8 = vld [vmem:[#allocation23] sm:$0xff] }
 0x629   :  { %956 = vmatpush.msrb.mxu1 %v913_v22  ;;  %v978_v22 = vld [vmem:[#allocation20 + $0x50] sm:$0xff]  ;;  %1030 = vmatpush.msra.mxu3 %v1023_v9  ;;  %v1080_v9 = vld [vmem:[%s4356_s2 + $0xf0] sm:$0xff] }
 0x62a   :  { %991 = vmatpush.msra.mxu2 %v980_v10  ;;  %v1022_v10 = vld [vmem:[#allocation23 + $0x68] sm:$0xff] }
 0x62b   :  { %957 = vmatpush.msrb.mxu1 %v912_v43  ;;  %v976_v43 = vld [vmem:[#allocation20 + $0x40] sm:$0xff]  ;;  %1031 = vmatpush.msra.mxu3 %v1022_v10 }
 0x62c   :  { %992 = vmatpush.msra.mxu2 %v979_v11  ;;  %v1021_v11 = vld [vmem:[#allocation23 + $0x60] sm:$0xff] }
 0x62d   :  { %958 = vmatpush.msrb.mxu1 %v911_v46  ;;  %v974_v46 = vld [vmem:[#allocation20 + $0x30] sm:$0xff]  ;;  %1032 = vmatpush.msra.mxu3 %v1021_v11  ;;  %v1081_v10 = vld [vmem:[%s4356_s2 + $0xf8] sm:$0xff] }
 0x62e   :  { %993 = vmatpush.msra.mxu2 %v978_v22  ;;  %v1020_v22 = vld [vmem:[#allocation23 + $0x58] sm:$0xff]  ;;  %v1078_v11 = vld [vmem:[%s4356_s2 + $0xe0] sm:$0xff] }
 0x62f   :  { %959 = vmatpush.msrb.mxu1 %v910_v49  ;;  %v972_v49 = vld [vmem:[#allocation20 + $0x20] sm:$0xff]  ;;  %1033 = vmatpush.msra.mxu3 %v1020_v22  ;;  %v1079_v22 = vld [vmem:[%s4356_s2 + $0xe8] sm:$0xff] }
 0x630   :  { %994 = vmatpush.msra.mxu2 %v977_v30  ;;  %v1019_v30 = vld [vmem:[#allocation23 + $0x50] sm:$0xff] }
 0x631   :  { %960 = vmatpush.msrb.mxu1 %v909_v0  ;;  %1034 = vmatpush.msra.mxu3 %v1019_v30  ;;  %v1076_v30 = vld [vmem:[%s4356_s2 + $0xd0] sm:$0xff] }
 0x632   :  { %995 = vmatpush.msra.mxu2 %v976_v43  ;;  %v1018_v43 = vld [vmem:[#allocation23 + $0x48] sm:$0xff] }
 0x633   :  { %961 = vmatpush.msrb.mxu1 %v908_v4  ;;  %v971_v4 = vld [vmem:[#allocation20 + $0x18] sm:$0xff]  ;;  %1035 = vmatpush.msra.mxu3 %v1018_v43  ;;  %v1077_v43 = vld [vmem:[%s4356_s2 + $0xd8] sm:$0xff] }
 0x634   :  { %996 = vmatpush.msra.mxu2 %v975_v45  ;;  %v1017_v45 = vld [vmem:[#allocation23 + $0x40] sm:$0xff] }
 0x635   :  { %962 = vmatpush.msrb.mxu1 %v907_v6  ;;  %v969_v6 = vld [vmem:[#allocation20 + $0x8] sm:$0xff]  ;;  %1036 = vmatpush.msra.mxu3 %v1017_v45 }
 0x636   :  { %997 = vmatpush.msra.mxu2 %v974_v46  ;;  %v1016_v46 = vld [vmem:[#allocation23 + $0x38] sm:$0xff]  ;;  %v1074_v45 = vld [vmem:[%s4356_s2 + $0xc0] sm:$0xff] }
 0x637   :  { %1037 = vmatpush.msra.mxu3 %v1016_v46  ;;  %v1075_v46 = vld [vmem:[%s4356_s2 + $0xc8] sm:$0xff] }
 0x638   :  { %998 = vmatpush.msra.mxu2 %v973_v48  ;;  %v1015_v48 = vld [vmem:[#allocation23 + $0x30] sm:$0xff] }
 0x639   :  { %1038 = vmatpush.msra.mxu3 %v1015_v48  ;;  %v1072_v48 = vld [vmem:[%s4356_s2 + $0xb0] sm:$0xff] }
 0x63a   :  { %999 = vmatpush.msra.mxu2 %v972_v49  ;;  %v1014_v49 = vld [vmem:[#allocation23 + $0x28] sm:$0xff] }
 0x63b   :  { %1039 = vmatpush.msra.mxu3 %v1014_v49  ;;  %v1073_v49 = vld [vmem:[%s4356_s2 + $0xb8] sm:$0xff] }
 0x63c   :  { %1000 = vmatpush.msra.mxu2 %v971_v4 }
 0x63e   :  { %1001 = vmatpush.msra.mxu2 %v970_v5 }
 0x640   :  { %1002 = vmatpush.msra.mxu2 %v969_v6  ;;  %v1011_v6 = vld [vmem:[#allocation23 + $0x10] sm:$0xff] }
 0x642   :  { %1003 = vmatpush.msra.mxu2 %v968_v7  ;;  %v1010_v7 = vld [vmem:[#allocation23 + $0x8] sm:$0xff] }
 0x693   :  { %v841_v61 = vpop.f32.mrf.mxu1 }
 0x694   :  { %v842_v62 = vadd.f32 %v2819_v60, %v841_v61 }
 0x696   :  { %2644 = vmatmul.msk.f32.vlgmr.msra.gmra.mxu0 %vm632_vm0, %v842_v62  ;;  %2645 = vmatmul.msk.f32.vlgmr.msra.gmra.mxu1 %vm632_vm0, %v842_v62 }
 0x697   :  { %1088 = vmatpush.msra.mxu0 %v1080_v9  ;;  %1108 = vmatpush.msra.mxu1 %v1081_v10  ;;  %v1061_v9 = vld [vmem:[%s4356_s2 + $0x58] sm:$0xff]  ;;  %v1058_v10 = vld [vmem:[%s4356_s2 + $0x40] sm:$0xff] }
 0x699   :  { %1089 = vmatpush.msra.mxu0 %v1078_v11  ;;  %1109 = vmatpush.msra.mxu1 %v1079_v22  ;;  %v1059_v11 = vld [vmem:[%s4356_s2 + $0x48] sm:$0xff]  ;;  %v1056_v22 = vld [vmem:[%s4356_s2 + $0x30] sm:$0xff] }
 0x69b   :  { %1090 = vmatpush.msra.mxu0 %v1076_v30  ;;  %1110 = vmatpush.msra.mxu1 %v1077_v43  ;;  %v1057_v30 = vld [vmem:[%s4356_s2 + $0x38] sm:$0xff]  ;;  %v2821_v43 = vld [vmem:[#allocation22] ss:$0 sm:$0xff] }
 0x69d   :  { %1091 = vmatpush.msra.mxu0 %v1074_v45  ;;  %1111 = vmatpush.msra.mxu1 %v1075_v46 }
 0x69f   :  { %1092 = vmatpush.msra.mxu0 %v1072_v48  ;;  %1112 = vmatpush.msra.mxu1 %v1073_v49  ;;  %v1054_v49 = vld [vmem:[%s4356_s2 + $0x20] sm:$0xff] }
 0x713   :  { %v864_v60 = vpop.f32.mrf.mxu0  ;;  %v884_v61 = vpop.f32.mrf.mxu1 }
 0x714   :  { %v887_v62 = vadd.f32 %v864_v60, %v3824_v1  ;;  %v888_v63 = vadd.f32 %v884_v61, %v3826_v2  ;;  %v1013_v60 = vld [vmem:[#allocation23 + $0x20] sm:$0xff]  ;;  %v2820_v61 = vld [vmem:[#allocation19] ss:$0 sm:$0xff] }
 0x715   :  { %1040 = vmatpush.msra.mxu3 %v1013_v60  ;;  %v1070_v60 = vld [vmem:[%s4356_s2 + $0xa0] sm:$0xff] }
 0x716   :  { %v889_v0 = vadd.f32 %v887_v62, %v3824_v1  ;;  %v890_v3 = vadd.f32 %v888_v63, %v3826_v2  ;;  %v1012_v62 = vld [vmem:[#allocation23 + $0x18] sm:$0xff]  ;;  %1093 = vmatpush.msra.mxu0 %v1070_v60  ;;  %v1055_v60 = vld [vmem:[%s4356_s2 + $0x28] sm:$0xff] }
 0x717   :  { %1041 = vmatpush.msra.mxu3 %v1012_v62  ;;  %v1068_v62 = vld [vmem:[%s4356_s2 + $0x90] sm:$0xff] }
 0x718   :  { %943 = vmatmul.f32.vlgmr.msrb.gmra.mxu0 %v889_v0  ;;  %963 = vmatmul.f32.vlgmr.msrb.gmra.mxu1 %v890_v3 }
 0x719   :  { %1042 = vmatpush.msra.mxu3 %v1011_v6  ;;  %1094 = vmatpush.msra.mxu0 %v1068_v62  ;;  %v1062_v6 = vld [vmem:[%s4356_s2 + $0x60] sm:$0xff]  ;;  %v1053_v62 = vld [vmem:[%s4356_s2 + $0x18] sm:$0xff] }
 0x71b   :  { %1043 = vmatpush.msra.mxu3 %v1010_v7  ;;  %v1063_v7 = vld [vmem:[%s4356_s2 + $0x68] sm:$0xff] }
 0x71d   :  { %1044 = vmatpush.msra.mxu3 %v1009_v8  ;;  %v1060_v8 = vld [vmem:[%s4356_s2 + $0x50] sm:$0xff] }
 0x795   :  { %v944_v63 = vpop.f32.mrf.mxu0  ;;  %v964_v3 = vpop.f32.mrf.mxu1 }
 0x796   :  { %v945_v0 = vadd.f32 %v2820_v61, %v944_v63  ;;  %v1071_v61 = vld [vmem:[%s4356_s2 + $0xa8] sm:$0xff]  ;;  %v1069_v63 = vld [vmem:[%s4356_s2 + $0x98] sm:$0xff] }
 0x797   :  { %1113 = vmatpush.msra.mxu1 %v1071_v61  ;;  %v1052_v61 = vld [vmem:[%s4356_s2 + $0x10] sm:$0xff] }
 0x798   :  { %v965_v4 = vadd.f32 %v964_v3, %v945_v0  ;;  %v1066_v0 = vld [vmem:[%s4356_s2 + $0x80] sm:$0xff]  ;;  %v1067_v3 = vld [vmem:[%s4356_s2 + $0x88] sm:$0xff] }
 0x799   :  { %1114 = vmatpush.msra.mxu1 %v1069_v63  ;;  %1095 = vmatpush.msra.mxu0 %v1066_v0  ;;  %v1050_v63 = vld [vmem:[%s4356_s2] sm:$0xff]  ;;  %v1051_v0 = vld [vmem:[%s4356_s2 + $0x8] sm:$0xff] }
 0x79a   :  { %v967_v5 = vmax.f32 %v965_v4, 0.0  ;;  %v1064_v4 = vld [vmem:[%s4356_s2 + $0x70] sm:$0xff] }
 0x79b   :  { %1115 = vmatpush.msra.mxu1 %v1067_v3  ;;  %1096 = vmatpush.msra.mxu0 %v1064_v4  ;;  %v2661_v3 = vld [vmem:[%s4352_s12 + $0x178] sm:$0xff] }
 0x79c   :  { %1004 = vmatmul.f32.vlgmr.msra.gmra.mxu2 %v967_v5  ;;  %v1065_v5 = vld [vmem:[%s4356_s2 + $0x78] sm:$0xff] }
 0x79d   :  { %1116 = vmatpush.msra.mxu1 %v1065_v5  ;;  %1097 = vmatpush.msra.mxu0 %v1062_v6  ;;  %v2677_v4 = vld [vmem:[%s4352_s12 + $0x1f8] sm:$0xff]  ;;  %v2660_v5 = vld [vmem:[%s4352_s12 + $0x170] sm:$0xff] }
 0x79e   :  { %1165 = vmatpush.msrb.mxu2 %v2661_v3  ;;  %1185 = vmatpush.msrb.mxu3 %v2677_v4  ;;  %v2676_v6 = vld [vmem:[%s4352_s12 + $0x1f0] sm:$0xff] }
 0x79f   :  { %1117 = vmatpush.msra.mxu1 %v1063_v7  ;;  %1098 = vmatpush.msra.mxu0 %v1060_v8  ;;  %v2659_v7 = vld [vmem:[%s4352_s12 + $0x168] sm:$0xff] }
 0x7a0   :  { %v2675_v8 = vld [vmem:[%s4352_s12 + $0x1e8] sm:$0xff]  ;;  %1166 = vmatpush.msrb.mxu2 %v2660_v5  ;;  %1186 = vmatpush.msrb.mxu3 %v2676_v6 }
 0x7a1   :  { %1118 = vmatpush.msra.mxu1 %v1061_v9  ;;  %1099 = vmatpush.msra.mxu0 %v1058_v10  ;;  %v2658_v9 = vld [vmem:[%s4352_s12 + $0x160] sm:$0xff]  ;;  %v2673_v10 = vld [vmem:[%s4352_s12 + $0x1d8] sm:$0xff] }
 0x7a2   :  { %1167 = vmatpush.msrb.mxu2 %v2659_v7  ;;  %1187 = vmatpush.msrb.mxu3 %v2675_v8 }
 0x7a3   :  { %1119 = vmatpush.msra.mxu1 %v1059_v11  ;;  %1100 = vmatpush.msra.mxu0 %v1056_v22  ;;  %v2656_v11 = vld [vmem:[%s4352_s12 + $0x150] sm:$0xff]  ;;  %v2671_v22 = vld [vmem:[%s4352_s12 + $0x1c8] sm:$0xff] }
 0x7a4   :  { %1168 = vmatpush.msrb.mxu2 %v2658_v9 }
 0x7a5   :  { %1120 = vmatpush.msra.mxu1 %v1057_v30  ;;  %1101 = vmatpush.msra.mxu0 %v1054_v49  ;;  %v2654_v30 = vld [vmem:[%s4352_s12 + $0x140] sm:$0xff]  ;;  %v2668_v49 = vld [vmem:[%s4352_s12 + $0x1b0] sm:$0xff] }
 0x7a7   :  { %1121 = vmatpush.msra.mxu1 %v1055_v60  ;;  %1102 = vmatpush.msra.mxu0 %v1052_v61  ;;  %v2651_v60 = vld [vmem:[%s4352_s12 + $0x128] sm:$0xff] }
 0x7a8   :  { %v2667_v61 = vld [vmem:[%s4352_s12 + $0x1a8] sm:$0xff] }
 0x7a9   :  { %1122 = vmatpush.msra.mxu1 %v1053_v62  ;;  %1103 = vmatpush.msra.mxu0 %v1050_v63  ;;  %v2650_v62 = vld [vmem:[%s4352_s12 + $0x120] sm:$0xff] }
 0x7aa   :  { %v2666_v63 = vld [vmem:[%s4352_s12 + $0x1a0] sm:$0xff] }
 0x7ab   :  { %1123 = vmatpush.msra.mxu1 %v1051_v0  ;;  %1246 = vmatpush.msrb.mxu0 %v3835_v12  ;;  %v2674_v12 = vld [vmem:[%s4352_s12 + $0x1e0] sm:$0xff]  ;;  %v2822_v0 = vld [vmem:[#allocation25] ss:$0 sm:$0xff] }
 0x7ac   :  { %1188 = vmatpush.msrb.mxu3 %v2674_v12 }
 0x7ad   :  { %1266 = vmatpush.msrb.mxu1 %v3841_v14  ;;  %1247 = vmatpush.msrb.mxu0 %v3837_v13  ;;  %v2657_v14 = vld [vmem:[%s4352_s12 + $0x158] sm:$0xff]  ;;  %v2672_v13 = vld [vmem:[%s4352_s12 + $0x1d0] sm:$0xff] }
 0x7ae   :  { %1169 = vmatpush.msrb.mxu2 %v2657_v14  ;;  %1189 = vmatpush.msrb.mxu3 %v2673_v10 }
 0x7af   :  { %1267 = vmatpush.msrb.mxu1 %v3843_v15  ;;  %v2655_v15 = vld [vmem:[%s4352_s12 + $0x148] sm:$0xff] }
 0x7b0   :  { %1170 = vmatpush.msrb.mxu2 %v2656_v11  ;;  %1190 = vmatpush.msrb.mxu3 %v2672_v13 }
 0x7b2   :  { %1171 = vmatpush.msrb.mxu2 %v2655_v15  ;;  %1191 = vmatpush.msrb.mxu3 %v2671_v22  ;;  %v2681_v22 = vld [vmem:[%s4354_s16 + $0x18] sm:$0xff] }
 0x7b4   :  { %1172 = vmatpush.msrb.mxu2 %v2654_v30  ;;  %v2680_v30 = vld [vmem:[%s4354_s16 + $0x10] sm:$0xff] }
 0x81f   :  { %v1005_v45 = vpop.f32.mrf.mxu2 }
 0x820   :  { %v1006_v46 = vadd.f32 %v2821_v43, %v1005_v45  ;;  %v2670_v43 = vld [vmem:[%s4352_s12 + $0x1c0] sm:$0xff]  ;;  %v2653_v45 = vld [vmem:[%s4352_s12 + $0x138] sm:$0xff] }
 0x821   :  { %1192 = vmatpush.msrb.mxu3 %v2670_v43  ;;  %1173 = vmatpush.msrb.mxu2 %v2653_v45 }
 0x822   :  { %v1008_v48 = vmax.f32 %v1006_v46, 0.0  ;;  %v2669_v46 = vld [vmem:[%s4352_s12 + $0x1b8] sm:$0xff] }
 0x823   :  { %1193 = vmatpush.msrb.mxu3 %v2669_v46 }
 0x824   :  { %1045 = vmatmul.f32.vlgmr.msra.gmra.mxu3 %v1008_v48  ;;  %v2652_v48 = vld [vmem:[%s4352_s12 + $0x130] sm:$0xff] }
 0x825   :  { %1174 = vmatpush.msrb.mxu2 %v2652_v48  ;;  %1194 = vmatpush.msrb.mxu3 %v2668_v49  ;;  %v2823_v48 = vld [vmem:[#allocation11 + $0x1] ss:$0 sm:$0xff] }
 0x827   :  { %1175 = vmatpush.msrb.mxu2 %v2651_v60  ;;  %1195 = vmatpush.msrb.mxu3 %v2667_v61 }
 0x829   :  { %1176 = vmatpush.msrb.mxu2 %v2650_v62  ;;  %1196 = vmatpush.msrb.mxu3 %v2666_v63 }
 0x8a7   :  { %v1046_v3 = vpop.f32.mrf.mxu3 }
 0x8a8   :  { %v1047_v4 = vadd.f32 %v2822_v0, %v1046_v3 }
 0x8aa   :  { %v1049_v5 = vmax.f32 %v1047_v4, 0.0 }
 0x8ac   :  { %1104 = vmatmul.f32.vlgmr.msra.gmra.mxu0 %v1049_v5  ;;  %1124 = vmatmul.f32.vlgmr.msra.gmra.mxu1 %v1049_v5 }
 0x8ad   :  { %1274 = vmatpush.msra.mxu0 %v3848_v16  ;;  %1294 = vmatpush.msra.mxu1 %v3855_v18  ;;  %v2649_v16 = vld [vmem:[%s4352_s12 + $0x118] sm:$0xff]  ;;  %v2648_v18 = vld [vmem:[%s4352_s12 + $0x110] sm:$0xff] }
 0x8ae   :  { %1177 = vmatpush.msrb.mxu2 %v2649_v16 }
 0x8af   :  { %1275 = vmatpush.msra.mxu0 %v3851_v17  ;;  %1295 = vmatpush.msra.mxu1 %v3862_v20  ;;  %v2665_v17 = vld [vmem:[%s4352_s12 + $0x198] sm:$0xff]  ;;  %v2647_v20 = vld [vmem:[%s4352_s12 + $0x108] sm:$0xff] }
 0x8b0   :  { %1197 = vmatpush.msrb.mxu3 %v2665_v17  ;;  %1178 = vmatpush.msrb.mxu2 %v2648_v18 }
 0x8b1   :  { %1276 = vmatpush.msra.mxu0 %v3858_v19  ;;  %1296 = vmatpush.msra.mxu1 %v3866_v21  ;;  %v2664_v19 = vld [vmem:[%s4352_s12 + $0x190] sm:$0xff]  ;;  %v2663_v21 = vld [vmem:[%s4352_s12 + $0x188] sm:$0xff] }
 0x8b2   :  { %1198 = vmatpush.msrb.mxu3 %v2664_v19  ;;  %1179 = vmatpush.msrb.mxu2 %v2647_v20 }
 0x8b3   :  { %1277 = vmatpush.msra.mxu0 %v3869_v23  ;;  %1297 = vmatpush.msra.mxu1 %v3874_v24  ;;  %v2646_v23 = vld [vmem:[%s4352_s12 + $0x100] sm:$0xff] }
 0x8b4   :  { %1199 = vmatpush.msrb.mxu3 %v2663_v21  ;;  %v2662_v24 = vld [vmem:[%s4352_s12 + $0x180] sm:$0xff]  ;;  %1180 = vmatpush.msrb.mxu2 %v2646_v23 }
 0x8b5   :  { %1278 = vmatpush.msra.mxu0 %v3877_v25  ;;  %1298 = vmatpush.msra.mxu1 %v3882_v26  ;;  %v1082_v25 = vld [vmem:[#allocation26] sm:$0x3] }
 0x8b6   :  { %1200 = vmatpush.msrb.mxu3 %v2662_v24  ;;  %v1084_v26 = vperm.slane %v1082_v25, 0  ;;  %1339 = vmatpush.msra.mxu2 %v2681_v22  ;;  %v2825_v24 = vld [vmem:[#allocation14 + $0x1] ss:$0 sm:$0xff] }
 0x8b7   :  { %1279 = vmatpush.msra.mxu0 %v3885_v27  ;;  %1299 = vmatpush.msra.mxu1 %v3890_v28  ;;  %v1085_v27 = vperm.slane %v1082_v25, 1  ;;  %v2688_v22 = vld [vmem:[%s4355_s8 + $0x108] sm:$0xff] }
 0x8b8   :  { %1340 = vmatpush.msra.mxu2 %v2680_v30  ;;  %v2704_v30 = vld [vmem:[%s4355_s8 + $0x188] sm:$0xff] }
 0x8b9   :  { %1280 = vmatpush.msra.mxu0 %v3893_v29  ;;  %1300 = vmatpush.msra.mxu1 %v3898_v31 }
 0x8bb   :  { %1281 = vmatpush.msra.mxu0 %v3901_v33  ;;  %1301 = vmatpush.msra.mxu1 %v3906_v34 }
 0x8bd   :  { %1282 = vmatpush.msra.mxu0 %v3909_v36  ;;  %1302 = vmatpush.msra.mxu1 %v3914_v38 }
 0x8bf   :  { %1283 = vmatpush.msra.mxu0 %v3917_v41  ;;  %1303 = vmatpush.msra.mxu1 %v3922_v42 }
 0x8c1   :  { %1284 = vmatpush.msra.mxu0 %v3925_v44  ;;  %1304 = vmatpush.msra.mxu1 %v3950_v53 }
 0x8c3   :  { %1285 = vmatpush.msra.mxu0 %v3930_v47  ;;  %1305 = vmatpush.msra.mxu1 %v3958_v55 }
 0x8c5   :  { %1286 = vmatpush.msra.mxu0 %v3936_v50  ;;  %1306 = vmatpush.msra.mxu1 %v3963_v56 }
 0x8c7   :  { %1287 = vmatpush.msra.mxu0 %v3941_v51  ;;  %1307 = vmatpush.msra.mxu1 %v3966_v57 }
 0x8c9   :  { %1288 = vmatpush.msra.mxu0 %v3947_v52  ;;  %1308 = vmatpush.msra.mxu1 %v3971_v58 }
 0x8cb   :  { %1289 = vmatpush.msra.mxu0 %v3955_v54  ;;  %1309 = vmatpush.msra.mxu1 %v3975_v59 }
 0x929   :  { %v1105_v28 = vpop.f32.mrf.mxu0  ;;  %v1125_v29 = vpop.f32.mrf.mxu1 }
 0x92a   :  { %v1106_v31 = vadd.f32 %v1105_v28, %v1084_v26  ;;  %v1126_v33 = vadd.f32 %v1125_v29, %v1085_v27  ;;  %v2702_v28 = vld [vmem:[%s4355_s8 + $0x178] sm:$0xff] }
 0x92b   :  { %v2718_v29 = vld [vmem:[%s4355_s8 + $0x1f8] sm:$0xff] }
 0x92c   :  { %v1128_v34 = vmax.f32 %v1106_v31, 0.0  ;;  %v1129_v36 = vmax.f32 %v1126_v33, 0.0  ;;  %v2701_v31 = vld [vmem:[%s4355_s8 + $0x170] sm:$0xff] }
 0x92d   :  { %v2717_v33 = vld [vmem:[%s4355_s8 + $0x1f0] sm:$0xff] }
 0x92e   :  { %v4142_v38 = vadd.f32 %v1128_v34, %v3824_v1  ;;  %v4145_v41 = vadd.f32 %v1129_v36, %v3826_v2  ;;  %v2700_v34 = vld [vmem:[%s4355_s8 + $0x168] sm:$0xff] }
 0x92f   :  { %v2716_v36 = vld [vmem:[%s4355_s8 + $0x1e8] sm:$0xff] }
 0x930   :  { %1181 = vmatmul.f32.vlgmr.msrb.gmra.mxu2 %v4142_v38  ;;  %1201 = vmatmul.f32.vlgmr.msrb.gmra.mxu3 %v4145_v41 }
 0x931   :  { %1430 = vmatpush.msrb.mxu2 %v3991_v32 }
 0x933   :  { %1431 = vmatpush.msrb.mxu2 %v3997_v37  ;;  %v1381_v37 = vld [vmem:[#allocation16 + $0x2] sm:$0x3] }
 0x934   :  { %2683 = vmatpush.msk.msra.mxu3 %vm820_vm7, %v1381_v37  ;;  %v1545_v37 = vld [vmem:[#allocation20 + $0xa8] sm:$0xff] }
 0x936   :  { %1450 = vmatpush.msrb.mxu3 %v3993_v35  ;;  %v2824_v35 = vld [vmem:[#allocation13 + $0x1] ss:$0 sm:$0xff] }
 0x938   :  { %1451 = vmatpush.msrb.mxu3 %v3999_v40 }
 0x9b3   :  { %v1182_v42 = vpop.f32.mrf.mxu2  ;;  %v1202_v44 = vpop.f32.mrf.mxu3 }
 0x9b4   :  { %v1203_v47 = vadd.f32 %v1202_v44, %v1182_v42  ;;  %v2699_v42 = vld [vmem:[%s4355_s8 + $0x160] sm:$0xff] }
 0x9b5   :  { %v2715_v44 = vld [vmem:[%s4355_s8 + $0x1e0] sm:$0xff] }
 0x9b6   :  { %v1205_v50 = vsel %vm632_vm0, %v1203_v47, -inf }
 0x9b7   :  { %1206 = vmax.xlane.f32.xlu2 %v1205_v50  ;;  %v2714_v50 = vld [vmem:[%s4355_s8 + $0x1d8] sm:$0xff] }
 0xa2a   :  { %v1207_v51 = vpop.xlane.xlu2 %1206 }
 0xa2b   :  { %v1208_v52 = vsub.f32 %v1203_v47, %v1207_v51  ;;  %v2698_v47 = vld [vmem:[%s4355_s8 + $0x158] sm:$0xff]  ;;  %v2697_v51 = vld [vmem:[%s4355_s8 + $0x150] sm:$0xff] }
 0xa2d   :  { %v1209_v53 = vmul.f32 1.442695, %v1208_v52  ;;  %v2713_v52 = vld [vmem:[%s4355_s8 + $0x1d0] sm:$0xff] }
 0xa2f   :  { %2842 = vpow2.f32 %v1209_v53  ;;  %v2696_v53 = vld [vmem:[%s4355_s8 + $0x148] sm:$0xff] }
 0xa35   :  { %v2843_v54 = vpop.eup %2842 }
 0xa36   :  { %v1211_v1 = vsel %vm632_vm0, %v2843_v54, 0.0 }
 0xa37   :  { %1212 = vadd.xlane.f32.xlu2 %v1211_v1  ;;  %v2695_v1 = vld [vmem:[%s4355_s8 + $0x140] sm:$0xff] }
 0xaaa   :  { %v1213_v2 = vpop.xlane.xlu2 %1212 }
 0xaab   :  { %2844 = vrcp.f32 %v1213_v2  ;;  %v1225_v58 = vand.u32 2147483648, %v1213_v2  ;;  %v1223_v6 = vand.u32 2147483647, %v1213_v2  ;;  %vm1219_vm12 = vweird.f32 %v1213_v2 }
 0xaad   :  { %v1226_v8 = vor.u32 1.1754944e-38, %v1225_v58  ;;  %vm1224_vm14 = vcmp.eq.f32.partialorder %v1223_v6, 8.507059e+37  ;;  %v2709_v58 = vld [vmem:[%s4355_s8 + $0x1b0] sm:$0xff]  ;;  %v2708_v6 = vld [vmem:[%s4355_s8 + $0x1a8] sm:$0xff] }
 0xab1   :  { %v2845_v55 = vpop.eup %2844 }
 0xab2   :  { %v1215_v56 = vmul.f32 %v2845_v55, %v1213_v2  ;;  %vm1220_vm11 = vweird.f32 %v2845_v55  ;;  %v2711_v2 = vld [vmem:[%s4355_s8 + $0x1c0] sm:$0xff] }
 0xab3   :  { %vm1221_vm13 = vmor %vm1219_vm12, %vm1220_vm11 }
 0xab4   :  { %v1216_v57 = vsub.f32 1.0, %v1215_v56  ;;  %v2710_v56 = vld [vmem:[%s4355_s8 + $0x1b8] sm:$0xff] }
 0xab6   :  { %v1217_v59 = vmul.f32 %v2845_v55, %v1216_v57  ;;  %v2693_v57 = vld [vmem:[%s4355_s8 + $0x130] sm:$0xff] }
 0xab8   :  { %v1218_v7 = vadd.f32 %v2845_v55, %v1217_v59  ;;  %v2692_v59 = vld [vmem:[%s4355_s8 + $0x128] sm:$0xff] }
 0xaba   :  { %v1222_v9 = vsel %vm1221_vm13, %v2845_v55, %v1218_v7  ;;  %v2694_v55 = vld [vmem:[%s4355_s8 + $0x138] sm:$0xff]  ;;  %v2691_v7 = vld [vmem:[%s4355_s8 + $0x120] sm:$0xff] }
 0xabb   :  { %v1227_v12 = vsel %vm1224_vm14, %v1226_v8, %v1222_v9  ;;  %v2707_v8 = vld [vmem:[%s4355_s8 + $0x1a0] sm:$0xff]  ;;  %v2690_v9 = vld [vmem:[%s4355_s8 + $0x118] sm:$0xff] }
 0xabc   :  { %v1228_v14 = vmul.f32 %v2843_v54, %v1227_v12  ;;  %v2712_v54 = vld [vmem:[%s4355_s8 + $0x1c8] sm:$0xff]  ;;  %v2706_v12 = vld [vmem:[%s4355_s8 + $0x198] sm:$0xff] }
 0xabe   :  { %2678 = vmatmul.msk.f32.vlgmr.msrb.gmra.mxu0 %vm632_vm0, %v1228_v14  ;;  %2679 = vmatmul.msk.f32.vlgmr.msrb.gmra.mxu1 %vm632_vm0, %v1228_v14  ;;  %v2826_v14 = vld [vmem:[#allocation17 + $0x1] ss:$0 sm:$0xff] }
 0xb3b   :  { %v1249_v10 = vpop.f32.mrf.mxu0  ;;  %v1269_v11 = vpop.f32.mrf.mxu1 }
 0xb3c   :  { %v1272_v13 = vmul.f32 %v1249_v10, %v4142_v38  ;;  %v1273_v15 = vmul.f32 %v1269_v11, %v4145_v41 }
 0xb3e   :  { %1290 = vmatmul.f32.vlgmr.msra.gmra.mxu0 %v1272_v13  ;;  %1310 = vmatmul.f32.vlgmr.msra.gmra.mxu1 %v1273_v15  ;;  %v2689_v13 = vld [vmem:[%s4355_s8 + $0x110] sm:$0xff] }
 0xb3f   :  { %v2705_v15 = vld [vmem:[%s4355_s8 + $0x190] sm:$0xff] }
 0xbbb   :  { %v1291_v43 = vpop.f32.mrf.mxu0  ;;  %v1311_v45 = vpop.f32.mrf.mxu1 }
 0xbbc   :  { %v1312_v46 = vadd.f32 %v1311_v45, %v1291_v43  ;;  %v2687_v43 = vld [vmem:[%s4355_s8 + $0x100] sm:$0xff] }
 0xbbd   :  { %v2703_v45 = vld [vmem:[%s4355_s8 + $0x180] sm:$0xff] }
 0xbbe   :  { %2682 = vmatmul.msk.f32.vlgmr.msra.gmra.mxu2 %vm632_vm0, %v1312_v46  ;;  %v1555_v46 = vld [vmem:[#allocation20 + $0xf8] sm:$0xff] }
 0xbbf   :  { %1498 = vmatpush.msra.mxu2 %v2702_v28  ;;  %1561 = vmatpush.msrb.mxu0 %v1555_v46  ;;  %v1593_v28 = vld [vmem:[#allocation23 + $0xd0] sm:$0xff]  ;;  %v2731_v46 = vld [vmem:[%s4356_s2 + $0x160] sm:$0xff] }
 0xbc1   :  { %1499 = vmatpush.msra.mxu2 %v2701_v31  ;;  %v1591_v31 = vld [vmem:[#allocation23 + $0xc0] sm:$0xff] }
 0xbc3   :  { %1500 = vmatpush.msra.mxu2 %v2700_v34  ;;  %v1589_v34 = vld [vmem:[#allocation23 + $0xb0] sm:$0xff] }
 0xbc5   :  { %1501 = vmatpush.msra.mxu2 %v2699_v42  ;;  %v1587_v42 = vld [vmem:[#allocation23 + $0xa0] sm:$0xff] }
 0xbc7   :  { %1502 = vmatpush.msra.mxu2 %v2698_v47  ;;  %v1586_v47 = vld [vmem:[#allocation23 + $0x98] sm:$0xff] }
 0xbc9   :  { %1503 = vmatpush.msra.mxu2 %v2697_v51 }
 0xbcb   :  { %1504 = vmatpush.msra.mxu2 %v2696_v53 }
 0xbcd   :  { %1505 = vmatpush.msra.mxu2 %v2695_v1  ;;  %v1585_v1 = vld [vmem:[#allocation23 + $0x90] sm:$0xff] }
 0xbcf   :  { %1506 = vmatpush.msra.mxu2 %v2694_v55  ;;  %v1583_v55 = vld [vmem:[#allocation23 + $0x80] sm:$0xff] }
 0xbd1   :  { %1507 = vmatpush.msra.mxu2 %v2693_v57  ;;  %v2750_v57 = vld [vmem:[%s4356_s2 + $0x1f8] sm:$0xff] }
 0xbd3   :  { %1508 = vmatpush.msra.mxu2 %v2692_v59  ;;  %v2748_v59 = vld [vmem:[%s4356_s2 + $0x1e8] sm:$0xff] }
 0xbd5   :  { %1509 = vmatpush.msra.mxu2 %v2691_v7  ;;  %v2746_v7 = vld [vmem:[%s4356_s2 + $0x1d8] sm:$0xff] }
 0xbd7   :  { %1510 = vmatpush.msra.mxu2 %v2690_v9  ;;  %v2744_v9 = vld [vmem:[%s4356_s2 + $0x1c8] sm:$0xff] }
 0xbd9   :  { %1511 = vmatpush.msra.mxu2 %v2689_v13  ;;  %v2737_v13 = vld [vmem:[%s4356_s2 + $0x190] sm:$0xff] }
 0xbdb   :  { %1512 = vmatpush.msra.mxu2 %v2688_v22  ;;  %v2735_v22 = vld [vmem:[%s4356_s2 + $0x180] sm:$0xff] }
 0xbdd   :  { %1513 = vmatpush.msra.mxu2 %v2687_v43  ;;  %v2733_v43 = vld [vmem:[%s4356_s2 + $0x170] sm:$0xff] }
 0xc41   :  { %v1342_v49 = vpop.f32.mrf.mxu2 }
 0xc42   :  { %v1343_v60 = vadd.f32 %v2823_v48, %v1342_v49  ;;  %v1554_v48 = vld [vmem:[#allocation20 + $0xf0] sm:$0xff]  ;;  %v1553_v49 = vld [vmem:[#allocation20 + $0xe8] sm:$0xff] }
 0xc43   :  { %1562 = vmatpush.msrb.mxu0 %v1554_v48  ;;  %v2732_v48 = vld [vmem:[%s4356_s2 + $0x168] sm:$0xff] }
 0xc44   :  { %v1345_v61 = vsel %vm771_vm5, %v1343_v60, 0.0 }
 0xc45   :  { %1346 = vadd.xlane.f32.xlu0 %v1345_v61  ;;  %1563 = vmatpush.msrb.mxu0 %v1553_v49  ;;  %v1551_v61 = vld [vmem:[#allocation20 + $0xd8] sm:$0xff] }
 0xc46   :  { %v2729_v49 = vld [vmem:[%s4356_s2 + $0x150] sm:$0xff] }
 0xcb8   :  { %v1347_v62 = vpop.xlane.xlu0 %1346 }
 0xcb9   :  { %v1348_v63 = vmul.f32 %v1347_v62, %v3984_v39  ;;  %v1550_v62 = vld [vmem:[#allocation20 + $0xd0] sm:$0xff] }
 0xcbb   :  { %v1349_v0 = vsub.f32 %v1343_v60, %v1348_v63  ;;  %v1552_v60 = vld [vmem:[#allocation20 + $0xe0] sm:$0xff]  ;;  %v1549_v63 = vld [vmem:[#allocation20 + $0xc8] sm:$0xff] }
 0xcbc   :  { %1564 = vmatpush.msrb.mxu0 %v1552_v60  ;;  %v2730_v60 = vld [vmem:[%s4356_s2 + $0x158] sm:$0xff] }
 0xcbd   :  { %v1350_v3 = vmul.f32 %v1349_v0, %v1349_v0 }
 0xcbe   :  { %1565 = vmatpush.msrb.mxu0 %v1551_v61  ;;  %v2727_v61 = vld [vmem:[%s4356_s2 + $0x140] sm:$0xff] }
 0xcbf   :  { %v1351_v32 = vsel %vm771_vm5, %v1350_v3, 0.0  ;;  %v1547_v3 = vld [vmem:[#allocation20 + $0xb8] sm:$0xff] }
 0xcc0   :  { %1352 = vadd.xlane.f32.xlu1 %v1351_v32  ;;  %1566 = vmatpush.msrb.mxu0 %v1550_v62  ;;  %v1546_v32 = vld [vmem:[#allocation20 + $0xb0] sm:$0xff] }
 0xcc1   :  { %v2728_v62 = vld [vmem:[%s4356_s2 + $0x148] sm:$0xff] }
 0xcc2   :  { %1567 = vmatpush.msrb.mxu0 %v1549_v63  ;;  %v2725_v63 = vld [vmem:[%s4356_s2 + $0x130] sm:$0xff] }
 0xd33   :  { %v1353_v4 = vpop.xlane.xlu1 %1352 }
 0xd34   :  { %v1354_v5 = vmul.f32 %v1353_v4, %v3984_v39  ;;  %v1544_v4 = vld [vmem:[#allocation20 + $0xa0] sm:$0xff] }
 0xd36   :  { %v1355_v16 = vadd.f32 1e-05, %v1354_v5 }
 0xd38   :  { %2846 = vrsqrt.f32 %v1355_v16  ;;  %vm1362_vm1 = vweird.f32 %v1355_v16 }
 0xd3e   :  { %v2847_v17 = vpop.eup %2846 }
 0xd3f   :  { %v1357_v18 = vmul.f32 %v2847_v17, %v1355_v16  ;;  %vm1363_vm15 = vweird.f32 %v2847_v17 }
 0xd40   :  { %vm1364_vm2 = vmor %vm1362_vm1, %vm1363_vm15 }
 0xd41   :  { %v1358_v19 = vmul.f32 %v2847_v17, %v1357_v18 }
 0xd43   :  { %v1359_v20 = vmul.f32 0.5, %v1358_v19 }
 0xd45   :  { %v1360_v21 = vsub.f32 1.5, %v1359_v20 }
 0xd47   :  { %v1361_v23 = vmul.f32 %v2847_v17, %v1360_v21  ;;  %v1543_v21 = vld [vmem:[#allocation20 + $0x98] sm:$0xff] }
 0xd49   :  { %v1365_v40 = vsel %vm1364_vm2, %v2847_v17, %v1361_v23  ;;  %v1542_v23 = vld [vmem:[#allocation20 + $0x90] sm:$0xff] }
 0xd4a   :  { %v1366_v39 = vmul.f32 %v1365_v40, %v1349_v0  ;;  %v1548_v0 = vld [vmem:[#allocation20 + $0xc0] sm:$0xff] }
 0xd4b   :  { %1568 = vmatpush.msrb.mxu0 %v1548_v0  ;;  %v1540_v40 = vld [vmem:[#allocation20 + $0x80] sm:$0xff] }
 0xd4c   :  { %v1372_v25 = vmul.f32 %v2824_v35, %v1366_v39  ;;  %v1541_v35 = vld [vmem:[#allocation20 + $0x88] sm:$0xff]  ;;  %v1598_v39 = vld [vmem:[#allocation23 + $0xf8] sm:$0xff] }
 0xd4d   :  { %1569 = vmatpush.msrb.mxu0 %v1547_v3  ;;  %1604 = vmatpush.msrb.mxu1 %v1598_v39  ;;  %v2726_v0 = vld [vmem:[%s4356_s2 + $0x138] sm:$0xff]  ;;  %v2828_v3 = vld [vmem:[#allocation22 + $0x1] ss:$0 sm:$0xff] }
 0xd4e   :  { %v1378_v26 = vadd.f32 %v2825_v24, %v1372_v25  ;;  %v1597_v24 = vld [vmem:[#allocation23 + $0xf0] sm:$0xff]  ;;  %v1596_v25 = vld [vmem:[#allocation23 + $0xe8] sm:$0xff] }
 0xd4f   :  { %1570 = vmatpush.msrb.mxu0 %v1546_v32  ;;  %1605 = vmatpush.msrb.mxu1 %v1597_v24  ;;  %v1821_v39 = vld [vmem:[#allocation28 + $0x380] sm:$0xff] }
 0xd50   :  { %v1379_v27 = vmax.f32 %v1378_v26, 0.0  ;;  %v1595_v26 = vld [vmem:[#allocation23 + $0xe0] sm:$0xff] }
 0xd51   :  { %1571 = vmatpush.msrb.mxu0 %v1545_v37  ;;  %1606 = vmatpush.msrb.mxu1 %v1596_v25  ;;  %v1949_v24 = vld [vmem:[#allocation28 + $0x780] sm:$0xff]  ;;  %v1822_v25 = vld [vmem:[#allocation28 + $0x388] sm:$0xff] }
 0xd52   :  { %2684 = vmatmul.msk.f32.vlgmr.msra.gmra.mxu3 %vm771_vm5, %v1379_v27  ;;  %v1594_v27 = vld [vmem:[#allocation23 + $0xd8] sm:$0xff] }
 0xd53   :  { %1518 = vmatpush.msra.mxu3 %v2718_v29  ;;  %1572 = vmatpush.msrb.mxu0 %v1544_v4  ;;  %v1592_v29 = vld [vmem:[#allocation23 + $0xc8] sm:$0xff] }
 0xd54   :  { %1607 = vmatpush.msrb.mxu1 %v1595_v26  ;;  %v1950_v26 = vld [vmem:[#allocation28 + $0x788] sm:$0xff] }
 0xd55   :  { %1519 = vmatpush.msra.mxu3 %v2717_v33  ;;  %1573 = vmatpush.msrb.mxu0 %v1543_v21  ;;  %v1590_v33 = vld [vmem:[#allocation23 + $0xb8] sm:$0xff]  ;;  %v1829_v21 = vld [vmem:[#allocation28 + $0x3c0] sm:$0xff] }
 0xd56   :  { %1608 = vmatpush.msrb.mxu1 %v1594_v27  ;;  %v1813_v27 = vld [vmem:[#allocation28 + $0x340] sm:$0xff] }
 0xd57   :  { %1520 = vmatpush.msra.mxu3 %v2716_v36  ;;  %1574 = vmatpush.msrb.mxu0 %v1542_v23  ;;  %v1588_v36 = vld [vmem:[#allocation23 + $0xa8] sm:$0xff] }
 0xd58   :  { %1609 = vmatpush.msrb.mxu1 %v1593_v28  ;;  %v1957_v23 = vld [vmem:[#allocation28 + $0x7c0] sm:$0xff] }
 0xd59   :  { %1521 = vmatpush.msra.mxu3 %v2715_v44  ;;  %1575 = vmatpush.msrb.mxu0 %v1541_v35  ;;  %v2827_v44 = vld [vmem:[#allocation19 + $0x1] ss:$0 sm:$0xff]  ;;  %v1830_v35 = vld [vmem:[#allocation28 + $0x3c8] sm:$0xff]  ;;  %v1941_v28 = vld [vmem:[#allocation28 + $0x740] sm:$0xff] }
 0xd5a   :  { %1610 = vmatpush.msrb.mxu1 %v1592_v29  ;;  %v1814_v29 = vld [vmem:[#allocation28 + $0x348] sm:$0xff] }
 0xd5b   :  { %1522 = vmatpush.msra.mxu3 %v2714_v50  ;;  %1576 = vmatpush.msrb.mxu0 %v1540_v40  ;;  %v1958_v40 = vld [vmem:[#allocation28 + $0x7c8] sm:$0xff] }
 0xd5c   :  { %1611 = vmatpush.msrb.mxu1 %v1591_v31  ;;  %v1942_v31 = vld [vmem:[#allocation28 + $0x748] sm:$0xff] }
 0xd5d   :  { %1523 = vmatpush.msra.mxu3 %v2713_v52  ;;  %1983 = vmatpush.msra.mxu0 %v1829_v21 }
 0xd5e   :  { %1612 = vmatpush.msrb.mxu1 %v1590_v33  ;;  %v1805_v33 = vld [vmem:[#allocation28 + $0x300] sm:$0xff] }
 0xd5f   :  { %1524 = vmatpush.msra.mxu3 %v2712_v54  ;;  %1984 = vmatpush.msra.mxu0 %v1821_v39  ;;  %v1710_v39 = vld [vmem:[#allocation28 + $0x8] sm:$0xff] }
 0xd60   :  { %1613 = vmatpush.msrb.mxu1 %v1589_v34  ;;  %v1933_v34 = vld [vmem:[#allocation28 + $0x700] sm:$0xff] }
 0xd61   :  { %1525 = vmatpush.msra.mxu3 %v2711_v2  ;;  %v1584_v2 = vld [vmem:[#allocation23 + $0x88] sm:$0xff]  ;;  %1985 = vmatpush.msra.mxu0 %v1813_v27  ;;  %v1832_v27 = vld [vmem:[#allocation28 + $0x3d8] sm:$0xff] }
 0xd62   :  { %1614 = vmatpush.msrb.mxu1 %v1588_v36  ;;  %v1806_v36 = vld [vmem:[#allocation28 + $0x308] sm:$0xff] }
 0xd63   :  { %1526 = vmatpush.msra.mxu3 %v2710_v56  ;;  %v2749_v56 = vld [vmem:[%s4356_s2 + $0x1f0] sm:$0xff]  ;;  %1986 = vmatpush.msra.mxu0 %v1805_v33 }
 0xd64   :  { %1615 = vmatpush.msrb.mxu1 %v1587_v42  ;;  %v1934_v42 = vld [vmem:[#allocation28 + $0x708] sm:$0xff]  ;;  %v1824_v33 = vld [vmem:[#allocation28 + $0x398] sm:$0xff] }
 0xd65   :  { %1527 = vmatpush.msra.mxu3 %v2709_v58  ;;  %v2747_v58 = vld [vmem:[%s4356_s2 + $0x1e0] sm:$0xff] }
 0xd66   :  { %1616 = vmatpush.msrb.mxu1 %v1586_v47  ;;  %v1925_v47 = vld [vmem:[#allocation28 + $0x6c0] sm:$0xff] }
 0xd67   :  { %1528 = vmatpush.msra.mxu3 %v2708_v6  ;;  %v2745_v6 = vld [vmem:[%s4356_s2 + $0x1d0] sm:$0xff] }
 0xd68   :  { %1617 = vmatpush.msrb.mxu1 %v1585_v1  ;;  %v1918_v1 = vld [vmem:[#allocation28 + $0x688] sm:$0xff] }
 0xd69   :  { %1529 = vmatpush.msra.mxu3 %v2707_v8  ;;  %v2743_v8 = vld [vmem:[%s4356_s2 + $0x1c0] sm:$0xff] }
 0xd6a   :  { %1618 = vmatpush.msrb.mxu1 %v1584_v2  ;;  %v1781_v2 = vld [vmem:[#allocation28 + $0x240] sm:$0xff] }
 0xd6b   :  { %1530 = vmatpush.msra.mxu3 %v2706_v12  ;;  %v2741_v12 = vld [vmem:[%s4356_s2 + $0x1b0] sm:$0xff] }
 0xd6c   :  { %1619 = vmatpush.msrb.mxu1 %v1583_v55  ;;  %v1909_v55 = vld [vmem:[#allocation28 + $0x640] sm:$0xff] }
 0xd6d   :  { %1531 = vmatpush.msra.mxu3 %v2705_v15  ;;  %v2738_v15 = vld [vmem:[%s4356_s2 + $0x198] sm:$0xff] }
 0xd6e   :  { %2003 = vmatpush.msra.mxu1 %v1957_v23  ;;  %v1709_v23 = vld [vmem:[#allocation28] sm:$0xff] }
 0xd6f   :  { %1532 = vmatpush.msra.mxu3 %v2704_v30  ;;  %v2736_v30 = vld [vmem:[%s4356_s2 + $0x188] sm:$0xff] }
 0xd70   :  { %2004 = vmatpush.msra.mxu1 %v1949_v24  ;;  %v1838_v24 = vld [vmem:[#allocation28 + $0x408] sm:$0xff] }
 0xd71   :  { %1533 = vmatpush.msra.mxu3 %v2703_v45  ;;  %v2734_v45 = vld [vmem:[%s4356_s2 + $0x178] sm:$0xff] }
 0xd72   :  { %2005 = vmatpush.msra.mxu1 %v1941_v28  ;;  %v1960_v28 = vld [vmem:[#allocation28 + $0x7d8] sm:$0xff] }
 0xd74   :  { %2006 = vmatpush.msra.mxu1 %v1933_v34  ;;  %v1952_v34 = vld [vmem:[#allocation28 + $0x798] sm:$0xff] }
 0xd76   :  { %2007 = vmatpush.msra.mxu1 %v1925_v47  ;;  %v1944_v47 = vld [vmem:[#allocation28 + $0x758] sm:$0xff] }
 0xdd5   :  { %v1410_v10 = vpop.f32.mrf.mxu3 }
 0xdd6   :  { %v1411_v11 = vadd.f32 %v2826_v14, %v1410_v10  ;;  %v2742_v14 = vld [vmem:[%s4356_s2 + $0x1b8] sm:$0xff]  ;;  %v2739_v10 = vld [vmem:[%s4356_s2 + $0x1a0] sm:$0xff] }
 0xdd8   :  { %2685 = vmatmul.msk.f32.vlgmr.msrb.gmra.mxu2 %vm632_vm0, %v1411_v11  ;;  %2686 = vmatmul.msk.f32.vlgmr.msrb.gmra.mxu3 %vm632_vm0, %v1411_v11  ;;  %v2740_v11 = vld [vmem:[%s4356_s2 + $0x1a8] sm:$0xff]  ;;  %vm2525_vm0 = vcmask 261120  }
 0xdd9   :  { %1665 = vmatpush.msrb.mxu2 %v2749_v56  ;;  %1685 = vmatpush.msrb.mxu3 %v2750_v57  ;;  %v1782_v56 = vld [vmem:[#allocation28 + $0x248] sm:$0xff] }
 0xdda   :  { %v1910_v57 = vld [vmem:[#allocation28 + $0x648] sm:$0xff] }
 0xddb   :  { %1666 = vmatpush.msrb.mxu2 %v2747_v58  ;;  %1686 = vmatpush.msrb.mxu3 %v2748_v59  ;;  %v1773_v58 = vld [vmem:[#allocation28 + $0x200] sm:$0xff] }
 0xddc   :  { %v1901_v59 = vld [vmem:[#allocation28 + $0x600] sm:$0xff] }
 0xddd   :  { %1667 = vmatpush.msrb.mxu2 %v2745_v6  ;;  %1687 = vmatpush.msrb.mxu3 %v2746_v7  ;;  %v1774_v6 = vld [vmem:[#allocation28 + $0x208] sm:$0xff] }
 0xdde   :  { %v1902_v7 = vld [vmem:[#allocation28 + $0x608] sm:$0xff] }
 0xddf   :  { %1668 = vmatpush.msrb.mxu2 %v2743_v8  ;;  %1688 = vmatpush.msrb.mxu3 %v2744_v9  ;;  %v1765_v8 = vld [vmem:[#allocation28 + $0x1c0] sm:$0xff] }
 0xde0   :  { %v1893_v9 = vld [vmem:[#allocation28 + $0x5c0] sm:$0xff] }
 0xde1   :  { %1669 = vmatpush.msrb.mxu2 %v2741_v12  ;;  %1689 = vmatpush.msrb.mxu3 %v2742_v14  ;;  %v1766_v12 = vld [vmem:[#allocation28 + $0x1c8] sm:$0xff] }
 0xde2   :  { %v1894_v14 = vld [vmem:[#allocation28 + $0x5c8] sm:$0xff] }
 0xde3   :  { %1670 = vmatpush.msrb.mxu2 %v2739_v10  ;;  %1690 = vmatpush.msrb.mxu3 %v2740_v11  ;;  %v1757_v10 = vld [vmem:[#allocation28 + $0x180] sm:$0xff] }
 0xde4   :  { %v1885_v11 = vld [vmem:[#allocation28 + $0x580] sm:$0xff] }
 0xde5   :  { %1671 = vmatpush.msrb.mxu2 %v2737_v13  ;;  %1691 = vmatpush.msrb.mxu3 %v2738_v15  ;;  %v1758_v13 = vld [vmem:[#allocation28 + $0x188] sm:$0xff] }
 0xde6   :  { %v1886_v15 = vld [vmem:[#allocation28 + $0x588] sm:$0xff] }
 0xde7   :  { %1672 = vmatpush.msrb.mxu2 %v2735_v22  ;;  %1692 = vmatpush.msrb.mxu3 %v2736_v30  ;;  %v1749_v22 = vld [vmem:[#allocation28 + $0x140] sm:$0xff] }
 0xde8   :  { %v1877_v30 = vld [vmem:[#allocation28 + $0x540] sm:$0xff] }
 0xde9   :  { %1673 = vmatpush.msrb.mxu2 %v2733_v43  ;;  %1693 = vmatpush.msrb.mxu3 %v2734_v45  ;;  %v1750_v43 = vld [vmem:[#allocation28 + $0x148] sm:$0xff] }
 0xdea   :  { %v1878_v45 = vld [vmem:[#allocation28 + $0x548] sm:$0xff] }
 0xdeb   :  { %1674 = vmatpush.msrb.mxu2 %v2731_v46  ;;  %1694 = vmatpush.msrb.mxu3 %v2732_v48  ;;  %v1741_v46 = vld [vmem:[#allocation28 + $0x100] sm:$0xff] }
 0xdec   :  { %v1869_v48 = vld [vmem:[#allocation28 + $0x500] sm:$0xff] }
 0xded   :  { %1675 = vmatpush.msrb.mxu2 %v2729_v49  ;;  %1695 = vmatpush.msrb.mxu3 %v2730_v60  ;;  %v1742_v49 = vld [vmem:[#allocation28 + $0x108] sm:$0xff] }
 0xdee   :  { %v1870_v60 = vld [vmem:[#allocation28 + $0x508] sm:$0xff] }
 0xdef   :  { %1676 = vmatpush.msrb.mxu2 %v2727_v61  ;;  %1696 = vmatpush.msrb.mxu3 %v2728_v62  ;;  %v1733_v61 = vld [vmem:[#allocation28 + $0xc0] sm:$0xff] }
 0xdf0   :  { %v1861_v62 = vld [vmem:[#allocation28 + $0x4c0] sm:$0xff] }
 0xdf1   :  { %1677 = vmatpush.msrb.mxu2 %v2725_v63  ;;  %1697 = vmatpush.msrb.mxu3 %v2726_v0  ;;  %v1734_v63 = vld [vmem:[#allocation28 + $0xc8] sm:$0xff] }
 0xdf2   :  { %v1862_v0 = vld [vmem:[#allocation28 + $0x4c8] sm:$0xff] }
 0xe5b   :  { %v1433_v5 = vpop.f32.mrf.mxu2  ;;  %v1453_v16 = vpop.f32.mrf.mxu3 }
 0xe5c   :  { %v1456_v17 = vadd.f32 %v1433_v5, %v4142_v38  ;;  %v1457_v18 = vadd.f32 %v1453_v16, %v4145_v41  ;;  %v2723_v5 = vld [vmem:[%s4356_s2 + $0x120] sm:$0xff]  ;;  %v2724_v16 = vld [vmem:[%s4356_s2 + $0x128] sm:$0xff] }
 0xe5d   :  { %1678 = vmatpush.msrb.mxu2 %v2723_v5  ;;  %1698 = vmatpush.msrb.mxu3 %v2724_v16  ;;  %v1854_v5 = vld [vmem:[#allocation28 + $0x488] sm:$0xff]  ;;  %v1717_v16 = vld [vmem:[#allocation28 + $0x40] sm:$0xff] }
 0xe5e   :  { %v1458_v19 = vadd.f32 %v1456_v17, %v4142_v38  ;;  %v1459_v20 = vadd.f32 %v1457_v18, %v4145_v41  ;;  %v2721_v17 = vld [vmem:[%s4356_s2 + $0x110] sm:$0xff]  ;;  %v2722_v18 = vld [vmem:[%s4356_s2 + $0x118] sm:$0xff] }
 0xe5f   :  { %1679 = vmatpush.msrb.mxu2 %v2721_v17  ;;  %1699 = vmatpush.msrb.mxu3 %v2722_v18  ;;  %v1845_v17 = vld [vmem:[#allocation28 + $0x440] sm:$0xff] }
 0xe60   :  { %1514 = vmatmul.f32.vlgmr.msra.gmra.mxu2 %v1458_v19  ;;  %1534 = vmatmul.f32.vlgmr.msra.gmra.mxu3 %v1459_v20  ;;  %v2719_v19 = vld [vmem:[%s4356_s2 + $0x100] sm:$0xff]  ;;  %v2720_v20 = vld [vmem:[%s4356_s2 + $0x108] sm:$0xff] }
 0xe61   :  { %1680 = vmatpush.msrb.mxu2 %v2719_v19  ;;  %1700 = vmatpush.msrb.mxu3 %v2720_v20  ;;  %v1718_v19 = vld [vmem:[#allocation28 + $0x48] sm:$0xff] }
 0xe62   :  { %v1846_v20 = vld [vmem:[#allocation28 + $0x448] sm:$0xff] }
 0xe63   :  { %2023 = vmatpush.msra.mxu2 %v1830_v35  ;;  %2043 = vmatpush.msra.mxu3 %v1958_v40  ;;  %v1837_v35 = vld [vmem:[#allocation28 + $0x400] sm:$0xff] }
 0xe65   :  { %2024 = vmatpush.msra.mxu2 %v1822_v25  ;;  %2044 = vmatpush.msra.mxu3 %v1950_v26  ;;  %v1831_v25 = vld [vmem:[#allocation28 + $0x3d0] sm:$0xff] }
 0xe66   :  { %v1959_v26 = vld [vmem:[#allocation28 + $0x7d0] sm:$0xff] }
 0xe67   :  { %2025 = vmatpush.msra.mxu2 %v1814_v29  ;;  %2045 = vmatpush.msra.mxu3 %v1942_v31  ;;  %v1823_v29 = vld [vmem:[#allocation28 + $0x390] sm:$0xff] }
 0xe68   :  { %v1951_v31 = vld [vmem:[#allocation28 + $0x790] sm:$0xff] }
 0xe69   :  { %2026 = vmatpush.msra.mxu2 %v1806_v36  ;;  %2046 = vmatpush.msra.mxu3 %v1934_v42  ;;  %v1815_v36 = vld [vmem:[#allocation28 + $0x350] sm:$0xff] }
 0xe6a   :  { %v1943_v42 = vld [vmem:[#allocation28 + $0x750] sm:$0xff] }
 0xee3   :  { %v1515_v50 = vpop.f32.mrf.mxu2  ;;  %v1535_v52 = vpop.f32.mrf.mxu3 }
 0xee4   :  { %v1516_v51 = vadd.f32 %v2827_v44, %v1515_v50  ;;  %v1797_v44 = vld [vmem:[#allocation28 + $0x2c0] sm:$0xff]  ;;  %v1798_v50 = vld [vmem:[#allocation28 + $0x2c8] sm:$0xff] }
 0xee5   :  { %1987 = vmatpush.msra.mxu0 %v1797_v44  ;;  %2027 = vmatpush.msra.mxu2 %v1798_v50  ;;  %v1816_v44 = vld [vmem:[#allocation28 + $0x358] sm:$0xff]  ;;  %v1807_v50 = vld [vmem:[#allocation28 + $0x310] sm:$0xff] }
 0xee6   :  { %v1536_v53 = vadd.f32 %v1535_v52, %v1516_v51  ;;  %v1926_v51 = vld [vmem:[#allocation28 + $0x6c8] sm:$0xff]  ;;  %v1789_v52 = vld [vmem:[#allocation28 + $0x280] sm:$0xff] }
 0xee7   :  { %2047 = vmatpush.msra.mxu3 %v1926_v51  ;;  %1988 = vmatpush.msra.mxu0 %v1789_v52  ;;  %v1935_v51 = vld [vmem:[#allocation28 + $0x710] sm:$0xff]  ;;  %v1808_v52 = vld [vmem:[#allocation28 + $0x318] sm:$0xff] }
 0xee8   :  { %v1538_v54 = vmax.f32 %v1536_v53, 0.0  ;;  %v1917_v53 = vld [vmem:[#allocation28 + $0x680] sm:$0xff] }
 0xee9   :  { %2008 = vmatpush.msra.mxu1 %v1917_v53  ;;  %2048 = vmatpush.msra.mxu3 %v1918_v1  ;;  %v1936_v53 = vld [vmem:[#allocation28 + $0x718] sm:$0xff]  ;;  %v1927_v1 = vld [vmem:[#allocation28 + $0x6d0] sm:$0xff] }
 0xeea   :  { %1577 = vmatmul.f32.vlgmr.msrb.gmra.mxu0 %v1538_v54  ;;  %v1790_v54 = vld [vmem:[#allocation28 + $0x288] sm:$0xff] }
 0xeeb   :  { %2028 = vmatpush.msra.mxu2 %v1790_v54  ;;  %1989 = vmatpush.msra.mxu0 %v1781_v2  ;;  %v1799_v54 = vld [vmem:[#allocation28 + $0x2d0] sm:$0xff]  ;;  %v1800_v2 = vld [vmem:[#allocation28 + $0x2d8] sm:$0xff] }
 0xeec   :  { %2009 = vmatpush.msra.mxu1 %v1909_v55  ;;  %2049 = vmatpush.msra.mxu3 %v1910_v57  ;;  %v1928_v55 = vld [vmem:[#allocation28 + $0x6d8] sm:$0xff]  ;;  %v1919_v57 = vld [vmem:[#allocation28 + $0x690] sm:$0xff] }
 0xeed   :  { %2029 = vmatpush.msra.mxu2 %v1782_v56  ;;  %1990 = vmatpush.msra.mxu0 %v1773_v58  ;;  %v1791_v56 = vld [vmem:[#allocation28 + $0x290] sm:$0xff]  ;;  %v1792_v58 = vld [vmem:[#allocation28 + $0x298] sm:$0xff] }
 0xeee   :  { %2010 = vmatpush.msra.mxu1 %v1901_v59  ;;  %2050 = vmatpush.msra.mxu3 %v1902_v7  ;;  %v1920_v59 = vld [vmem:[#allocation28 + $0x698] sm:$0xff]  ;;  %v1911_v7 = vld [vmem:[#allocation28 + $0x650] sm:$0xff] }
 0xeef   :  { %2030 = vmatpush.msra.mxu2 %v1774_v6  ;;  %1991 = vmatpush.msra.mxu0 %v1765_v8  ;;  %v1783_v6 = vld [vmem:[#allocation28 + $0x250] sm:$0xff]  ;;  %v1784_v8 = vld [vmem:[#allocation28 + $0x258] sm:$0xff] }
 0xef0   :  { %2011 = vmatpush.msra.mxu1 %v1893_v9  ;;  %2051 = vmatpush.msra.mxu3 %v1894_v14  ;;  %v1912_v9 = vld [vmem:[#allocation28 + $0x658] sm:$0xff]  ;;  %v1903_v14 = vld [vmem:[#allocation28 + $0x610] sm:$0xff] }
 0xef1   :  { %2031 = vmatpush.msra.mxu2 %v1766_v12  ;;  %1992 = vmatpush.msra.mxu0 %v1757_v10  ;;  %v1775_v12 = vld [vmem:[#allocation28 + $0x210] sm:$0xff]  ;;  %v1776_v10 = vld [vmem:[#allocation28 + $0x218] sm:$0xff] }
 0xef2   :  { %2012 = vmatpush.msra.mxu1 %v1885_v11  ;;  %2052 = vmatpush.msra.mxu3 %v1886_v15  ;;  %v1904_v11 = vld [vmem:[#allocation28 + $0x618] sm:$0xff]  ;;  %v1895_v15 = vld [vmem:[#allocation28 + $0x5d0] sm:$0xff] }
 0xef3   :  { %2032 = vmatpush.msra.mxu2 %v1758_v13  ;;  %1993 = vmatpush.msra.mxu0 %v1749_v22  ;;  %v1767_v13 = vld [vmem:[#allocation28 + $0x1d0] sm:$0xff]  ;;  %v1768_v22 = vld [vmem:[#allocation28 + $0x1d8] sm:$0xff] }
 0xef4   :  { %2013 = vmatpush.msra.mxu1 %v1877_v30  ;;  %2053 = vmatpush.msra.mxu3 %v1878_v45  ;;  %v1896_v30 = vld [vmem:[#allocation28 + $0x5d8] sm:$0xff]  ;;  %v1887_v45 = vld [vmem:[#allocation28 + $0x590] sm:$0xff] }
 0xef5   :  { %2033 = vmatpush.msra.mxu2 %v1750_v43  ;;  %1994 = vmatpush.msra.mxu0 %v1741_v46  ;;  %v1759_v43 = vld [vmem:[#allocation28 + $0x190] sm:$0xff]  ;;  %v1760_v46 = vld [vmem:[#allocation28 + $0x198] sm:$0xff] }
 0xef6   :  { %2014 = vmatpush.msra.mxu1 %v1869_v48  ;;  %2054 = vmatpush.msra.mxu3 %v1870_v60  ;;  %v1888_v48 = vld [vmem:[#allocation28 + $0x598] sm:$0xff]  ;;  %v1879_v60 = vld [vmem:[#allocation28 + $0x550] sm:$0xff] }
 0xef7   :  { %2034 = vmatpush.msra.mxu2 %v1742_v49  ;;  %1995 = vmatpush.msra.mxu0 %v1733_v61  ;;  %v1751_v49 = vld [vmem:[#allocation28 + $0x150] sm:$0xff]  ;;  %v1752_v61 = vld [vmem:[#allocation28 + $0x158] sm:$0xff] }
 0xef8   :  { %2015 = vmatpush.msra.mxu1 %v1861_v62  ;;  %2055 = vmatpush.msra.mxu3 %v1862_v0  ;;  %v1880_v62 = vld [vmem:[#allocation28 + $0x558] sm:$0xff]  ;;  %v1871_v0 = vld [vmem:[#allocation28 + $0x510] sm:$0xff] }
 0xef9   :  { %2035 = vmatpush.msra.mxu2 %v1734_v63  ;;  %v1743_v63 = vld [vmem:[#allocation28 + $0x110] sm:$0xff] }
 0xefa   :  { %2056 = vmatpush.msra.mxu3 %v1854_v5  ;;  %v1736_v5 = vld [vmem:[#allocation28 + $0xd8] sm:$0xff] }
 0xefc   :  { %2057 = vmatpush.msra.mxu3 %v1846_v20  ;;  %v1856_v20 = vld [vmem:[#allocation28 + $0x498] sm:$0xff] }
 0xefe   :  { %2058 = vmatpush.msra.mxu3 %v1838_v24  ;;  %v1839_v24 = vld [vmem:[#allocation28 + $0x410] sm:$0xff] }
 0xf67   :  { %v1578_v32 = vpop.f32.mrf.mxu0 }
 0xf68   :  { %v1579_v37 = vadd.f32 %v2828_v3, %v1578_v32  ;;  %v2829_v3 = vld [vmem:[#allocation25 + $0x1] ss:$0 sm:$0xff]  ;;  %v1725_v32 = vld [vmem:[#allocation28 + $0x80] sm:$0xff] }
 0xf69   :  { %1996 = vmatpush.msra.mxu0 %v1725_v32  ;;  %v1872_v32 = vld [vmem:[#allocation28 + $0x518] sm:$0xff] }
 0xf6a   :  { %v1581_v4 = vmax.f32 %v1579_v37, 0.0  ;;  %v1853_v37 = vld [vmem:[#allocation28 + $0x480] sm:$0xff] }
 0xf6b   :  { %2016 = vmatpush.msra.mxu1 %v1853_v37  ;;  %1997 = vmatpush.msra.mxu0 %v1717_v16  ;;  %v1735_v37 = vld [vmem:[#allocation28 + $0xd0] sm:$0xff]  ;;  %v1864_v16 = vld [vmem:[#allocation28 + $0x4d8] sm:$0xff] }
 0xf6c   :  { %1620 = vmatmul.f32.vlgmr.msrb.gmra.mxu1 %v1581_v4  ;;  %v1726_v4 = vld [vmem:[#allocation28 + $0x88] sm:$0xff] }
 0xf6d   :  { %2036 = vmatpush.msra.mxu2 %v1726_v4  ;;  %2017 = vmatpush.msra.mxu1 %v1845_v17  ;;  %v1863_v4 = vld [vmem:[#allocation28 + $0x4d0] sm:$0xff] }
 0xf6e   :  { %1998 = vmatpush.msra.mxu0 %v1709_v23  ;;  %v1727_v17 = vld [vmem:[#allocation28 + $0x90] sm:$0xff] }
 0xf6f   :  { %2037 = vmatpush.msra.mxu2 %v1718_v19  ;;  %2018 = vmatpush.msra.mxu1 %v1837_v35  ;;  %v1728_v19 = vld [vmem:[#allocation28 + $0x98] sm:$0xff]  ;;  %v1847_v23 = vld [vmem:[#allocation28 + $0x450] sm:$0xff] }
 0xf70   :  { %2063 = vmatpush.msrb.mxu0 %v1831_v25  ;;  %v1720_v35 = vld [vmem:[#allocation28 + $0x58] sm:$0xff] }
 0xf71   :  { %2038 = vmatpush.msra.mxu2 %v1710_v39  ;;  %2083 = vmatpush.msrb.mxu1 %v1959_v26  ;;  %v1711_v39 = vld [vmem:[#allocation28 + $0x10] sm:$0xff]  ;;  %v1712_v25 = vld [vmem:[#allocation28 + $0x18] sm:$0xff] }
 0xf72   :  { %2064 = vmatpush.msrb.mxu0 %v1823_v29  ;;  %v1840_v26 = vld [vmem:[#allocation28 + $0x418] sm:$0xff] }
 0xf73   :  { %2084 = vmatpush.msrb.mxu1 %v1951_v31 }
 0xf74   :  { %2065 = vmatpush.msrb.mxu0 %v1815_v36 }
 0xf75   :  { %2085 = vmatpush.msrb.mxu1 %v1943_v42 }
 0xf76   :  { %2066 = vmatpush.msrb.mxu0 %v1807_v50 }
 0xf77   :  { %2086 = vmatpush.msrb.mxu1 %v1935_v51  ;;  %v1833_v51 = vld [vmem:[#allocation28 + $0x3e0] sm:$0xff] }
 0xf78   :  { %2067 = vmatpush.msrb.mxu0 %v1799_v54  ;;  %v1962_v54 = vld [vmem:[#allocation28 + $0x7e8] sm:$0xff] }
 0xf79   :  { %2087 = vmatpush.msrb.mxu1 %v1927_v1  ;;  %v1825_v1 = vld [vmem:[#allocation28 + $0x3a0] sm:$0xff] }
 0xf7a   :  { %2068 = vmatpush.msrb.mxu0 %v1791_v56  ;;  %v1945_v56 = vld [vmem:[#allocation28 + $0x760] sm:$0xff] }
 0xf7b   :  { %2088 = vmatpush.msrb.mxu1 %v1919_v57  ;;  %v1818_v57 = vld [vmem:[#allocation28 + $0x368] sm:$0xff] }
 0xf7c   :  { %2069 = vmatpush.msrb.mxu0 %v1783_v6  ;;  %v1937_v6 = vld [vmem:[#allocation28 + $0x720] sm:$0xff] }
 0xf7d   :  { %2089 = vmatpush.msrb.mxu1 %v1911_v7  ;;  %v1810_v7 = vld [vmem:[#allocation28 + $0x328] sm:$0xff] }
 0xf7e   :  { %2070 = vmatpush.msrb.mxu0 %v1775_v12  ;;  %v1929_v12 = vld [vmem:[#allocation28 + $0x6e0] sm:$0xff] }
 0xf7f   :  { %2090 = vmatpush.msrb.mxu1 %v1903_v14  ;;  %v1802_v14 = vld [vmem:[#allocation28 + $0x2e8] sm:$0xff] }
 0xf80   :  { %2071 = vmatpush.msrb.mxu0 %v1767_v13  ;;  %v1921_v13 = vld [vmem:[#allocation28 + $0x6a0] sm:$0xff] }
 0xf81   :  { %2091 = vmatpush.msrb.mxu1 %v1895_v15  ;;  %v1794_v15 = vld [vmem:[#allocation28 + $0x2a8] sm:$0xff] }
 0xf82   :  { %2072 = vmatpush.msrb.mxu0 %v1759_v43  ;;  %v1913_v43 = vld [vmem:[#allocation28 + $0x660] sm:$0xff] }
 0xf83   :  { %2092 = vmatpush.msrb.mxu1 %v1887_v45  ;;  %v1786_v45 = vld [vmem:[#allocation28 + $0x268] sm:$0xff] }
 0xf84   :  { %2073 = vmatpush.msrb.mxu0 %v1751_v49  ;;  %v1905_v49 = vld [vmem:[#allocation28 + $0x620] sm:$0xff] }
 0xf85   :  { %2093 = vmatpush.msrb.mxu1 %v1879_v60  ;;  %v1778_v60 = vld [vmem:[#allocation28 + $0x228] sm:$0xff] }
 0xf86   :  { %2074 = vmatpush.msrb.mxu0 %v1743_v63  ;;  %v1897_v63 = vld [vmem:[#allocation28 + $0x5e0] sm:$0xff] }
 0xf87   :  { %2094 = vmatpush.msrb.mxu1 %v1871_v0  ;;  %v1770_v0 = vld [vmem:[#allocation28 + $0x1e8] sm:$0xff] }
 0xf88   :  { %2075 = vmatpush.msrb.mxu0 %v1735_v37  ;;  %v1889_v37 = vld [vmem:[#allocation28 + $0x5a0] sm:$0xff] }
 0xf89   :  { %2095 = vmatpush.msrb.mxu1 %v1863_v4  ;;  %v1762_v4 = vld [vmem:[#allocation28 + $0x1a8] sm:$0xff] }
 0xf8a   :  { %2076 = vmatpush.msrb.mxu0 %v1727_v17  ;;  %v1881_v17 = vld [vmem:[#allocation28 + $0x560] sm:$0xff] }
 0xfe9   :  { %v1621_v18 = vpop.f32.mrf.mxu1 }
 0xfea   :  { %v1622_v21 = vadd.f32 %v2829_v3, %v1621_v18  ;;  %v1744_v3 = vld [vmem:[#allocation28 + $0x118] sm:$0xff]  ;;  %v1855_v18 = vld [vmem:[#allocation28 + $0x490] sm:$0xff] }
 0xfeb   :  { %2096 = vmatpush.msrb.mxu1 %v1855_v18  ;;  %v1754_v18 = vld [vmem:[#allocation28 + $0x168] sm:$0xff] }
 0xfec   :  { %v1624_v40 = vmax.f32 %v1622_v21, 0.0  ;;  %v1719_v21 = vld [vmem:[#allocation28 + $0x50] sm:$0xff] }
 0xfed   :  { %2077 = vmatpush.msrb.mxu0 %v1719_v21  ;;  %2097 = vmatpush.msrb.mxu1 %v1847_v23  ;;  %v1873_v21 = vld [vmem:[#allocation28 + $0x520] sm:$0xff]  ;;  %v1746_v23 = vld [vmem:[#allocation28 + $0x128] sm:$0xff] }
 0xfee   :  { %1681 = vmatmul.f32.vlgmr.msrb.gmra.mxu2 %v1624_v40  ;;  %1701 = vmatmul.f32.vlgmr.msrb.gmra.mxu3 %v1624_v40  ;;  %v1848_v40 = vld [vmem:[#allocation28 + $0x458] sm:$0xff] }
 0xfef   :  { %2103 = vmatpush.msrb.mxu2 %v1832_v27  ;;  %2123 = vmatpush.msrb.mxu3 %v1960_v28  ;;  %v1659_v27 = vld [vmem:[#allocation26 + $0x2] sm:$0x3] }
 0xff0   :  { %2078 = vmatpush.msrb.mxu0 %v1711_v39  ;;  %2098 = vmatpush.msrb.mxu1 %v1839_v24  ;;  %v1661_v28 = vperm.slane %v1659_v27, 0  ;;  %v1662_v29 = vperm.slane %v1659_v27, 1  ;;  %v1865_v39 = vld [vmem:[#allocation28 + $0x4e0] sm:$0xff]  ;;  %v1738_v24 = vld [vmem:[#allocation28 + $0xe8] sm:$0xff] }
 0xff1   :  { %2104 = vmatpush.msrb.mxu2 %v1824_v33  ;;  %2124 = vmatpush.msrb.mxu3 %v1952_v34  ;;  %v1857_v27 = vld [vmem:[#allocation28 + $0x4a0] sm:$0xff] }
 0xff3   :  { %2105 = vmatpush.msrb.mxu2 %v1816_v44  ;;  %2125 = vmatpush.msrb.mxu3 %v1944_v47 }
 0xff5   :  { %2106 = vmatpush.msrb.mxu2 %v1808_v52  ;;  %2126 = vmatpush.msrb.mxu3 %v1936_v53  ;;  %v1961_v52 = vld [vmem:[#allocation28 + $0x7e0] sm:$0xff]  ;;  %v1834_v53 = vld [vmem:[#allocation28 + $0x3e8] sm:$0xff] }
 0xff7   :  { %2107 = vmatpush.msrb.mxu2 %v1800_v2  ;;  %2127 = vmatpush.msrb.mxu3 %v1928_v55  ;;  %v1953_v2 = vld [vmem:[#allocation28 + $0x7a0] sm:$0xff]  ;;  %v1954_v55 = vld [vmem:[#allocation28 + $0x7a8] sm:$0xff] }
 0xff9   :  { %2108 = vmatpush.msrb.mxu2 %v1792_v58  ;;  %2128 = vmatpush.msrb.mxu3 %v1920_v59  ;;  %v1946_v58 = vld [vmem:[#allocation28 + $0x768] sm:$0xff]  ;;  %v1809_v59 = vld [vmem:[#allocation28 + $0x320] sm:$0xff] }
 0xffb   :  { %2109 = vmatpush.msrb.mxu2 %v1784_v8  ;;  %2129 = vmatpush.msrb.mxu3 %v1912_v9  ;;  %v1938_v8 = vld [vmem:[#allocation28 + $0x728] sm:$0xff]  ;;  %v1801_v9 = vld [vmem:[#allocation28 + $0x2e0] sm:$0xff] }
 0xffd   :  { %2110 = vmatpush.msrb.mxu2 %v1776_v10  ;;  %2130 = vmatpush.msrb.mxu3 %v1904_v11  ;;  %v1930_v10 = vld [vmem:[#allocation28 + $0x6e8] sm:$0xff]  ;;  %v1793_v11 = vld [vmem:[#allocation28 + $0x2a0] sm:$0xff] }
 0xfff   :  { %2111 = vmatpush.msrb.mxu2 %v1768_v22  ;;  %2131 = vmatpush.msrb.mxu3 %v1896_v30  ;;  %v1922_v22 = vld [vmem:[#allocation28 + $0x6a8] sm:$0xff]  ;;  %v1785_v30 = vld [vmem:[#allocation28 + $0x260] sm:$0xff] }
0x1001   :  { %2112 = vmatpush.msrb.mxu2 %v1760_v46  ;;  %2132 = vmatpush.msrb.mxu3 %v1888_v48  ;;  %v1914_v46 = vld [vmem:[#allocation28 + $0x668] sm:$0xff]  ;;  %v1777_v48 = vld [vmem:[#allocation28 + $0x220] sm:$0xff] }
0x1003   :  { %2113 = vmatpush.msrb.mxu2 %v1752_v61  ;;  %2133 = vmatpush.msrb.mxu3 %v1880_v62  ;;  %v1906_v61 = vld [vmem:[#allocation28 + $0x628] sm:$0xff]  ;;  %v1769_v62 = vld [vmem:[#allocation28 + $0x1e0] sm:$0xff] }
0x1005   :  { %2114 = vmatpush.msrb.mxu2 %v1744_v3  ;;  %2134 = vmatpush.msrb.mxu3 %v1872_v32  ;;  %v1898_v3 = vld [vmem:[#allocation28 + $0x5e8] sm:$0xff]  ;;  %v1761_v32 = vld [vmem:[#allocation28 + $0x1a0] sm:$0xff] }
0x1007   :  { %2115 = vmatpush.msrb.mxu2 %v1736_v5  ;;  %2135 = vmatpush.msrb.mxu3 %v1864_v16  ;;  %v1890_v5 = vld [vmem:[#allocation28 + $0x5a8] sm:$0xff]  ;;  %v1753_v16 = vld [vmem:[#allocation28 + $0x160] sm:$0xff] }
0x1009   :  { %2116 = vmatpush.msrb.mxu2 %v1728_v19  ;;  %2136 = vmatpush.msrb.mxu3 %v1856_v20  ;;  %v1882_v19 = vld [vmem:[#allocation28 + $0x568] sm:$0xff]  ;;  %v1745_v20 = vld [vmem:[#allocation28 + $0x120] sm:$0xff] }
0x100b   :  { %2117 = vmatpush.msrb.mxu2 %v1720_v35  ;;  %2137 = vmatpush.msrb.mxu3 %v1848_v40  ;;  %v1874_v35 = vld [vmem:[#allocation28 + $0x528] sm:$0xff]  ;;  %v1737_v40 = vld [vmem:[#allocation28 + $0xe0] sm:$0xff] }
0x100d   :  { %2118 = vmatpush.msrb.mxu2 %v1712_v25  ;;  %2138 = vmatpush.msrb.mxu3 %v1840_v26  ;;  %v1866_v25 = vld [vmem:[#allocation28 + $0x4e8] sm:$0xff]  ;;  %v1729_v26 = vld [vmem:[#allocation28 + $0xa0] sm:$0xff] }
0x1071   :  { %v1682_v31 = vpop.f32.mrf.mxu2  ;;  %v1702_v33 = vpop.f32.mrf.mxu3 }
0x1072   :  { %v1683_v34 = vadd.f32 %v1682_v31, %v1661_v28  ;;  %v1703_v36 = vadd.f32 %v1702_v33, %v1662_v29  ;;  %v1730_v28 = vld [vmem:[#allocation28 + $0xa8] sm:$0xff]  ;;  %v1721_v31 = vld [vmem:[#allocation28 + $0x60] sm:$0xff] }
0x1073   :  { %v1858_v29 = vld [vmem:[#allocation28 + $0x4a8] sm:$0xff]  ;;  %v1849_v33 = vld [vmem:[#allocation28 + $0x460] sm:$0xff] }
0x1074   :  { %v1705_v42 = vmax.f32 %v1683_v34, 0.0  ;;  %v1706_v44 = vmax.f32 %v1703_v36, 0.0  ;;  %v1722_v34 = vld [vmem:[#allocation28 + $0x68] sm:$0xff] }
0x1075   :  { %v1850_v36 = vld [vmem:[#allocation28 + $0x468] sm:$0xff] }
0x1076   :  { %v4239_v47 = vadd.f32 %v1705_v42, %v4142_v38  ;;  %v4242_v50 = vadd.f32 %v1706_v44, %v4145_v41  ;;  %v1826_v38 = vld [vmem:[#allocation28 + $0x3a8] sm:$0xff]  ;;  %v1817_v41 = vld [vmem:[#allocation28 + $0x360] sm:$0xff] }
0x1077   :  { %v1713_v42 = vld [vmem:[#allocation28 + $0x20] sm:$0xff] }
0x1078   :  { %1999 = vmatmul.f32.vlgmr.msra.gmra.mxu0 %v4239_v47  ;;  %2019 = vmatmul.f32.vlgmr.msra.gmra.mxu1 %v4242_v50  ;;  %v1841_v44 = vld [vmem:[#allocation28 + $0x420] sm:$0xff] }
0x1079   :  { %2039 = vmatmul.f32.vlgmr.msra.gmra.mxu2 %v4239_v47  ;;  %2059 = vmatmul.f32.vlgmr.msra.gmra.mxu3 %v4242_v50 }
0x107a   :  { %2143 = vmatpush.msra.mxu0 %v1833_v51  ;;  %2163 = vmatpush.msra.mxu1 %v1961_v52  ;;  %v1714_v51 = vld [vmem:[#allocation28 + $0x28] sm:$0xff] }
0x107b   :  { %2183 = vmatpush.msra.mxu2 %v1834_v53  ;;  %2203 = vmatpush.msra.mxu3 %v1962_v54  ;;  %v1842_v52 = vld [vmem:[#allocation28 + $0x428] sm:$0xff]  ;;  %v1835_v53 = vld [vmem:[#allocation28 + $0x3f0] sm:$0xff] }
0x107c   :  { %2144 = vmatpush.msra.mxu0 %v1825_v1  ;;  %2164 = vmatpush.msra.mxu1 %v1953_v2  ;;  %v1963_v54 = vld [vmem:[#allocation28 + $0x7f0] sm:$0xff]  ;;  %v1836_v1 = vld [vmem:[#allocation28 + $0x3f8] sm:$0xff] }
0x107d   :  { %2184 = vmatpush.msra.mxu2 %v1826_v38  ;;  %2204 = vmatpush.msra.mxu3 %v1954_v55  ;;  %v1964_v2 = vld [vmem:[#allocation28 + $0x7f8] sm:$0xff]  ;;  %v1827_v38 = vld [vmem:[#allocation28 + $0x3b0] sm:$0xff] }
0x107e   :  { %2145 = vmatpush.msra.mxu0 %v1817_v41  ;;  %2165 = vmatpush.msra.mxu1 %v1945_v56  ;;  %v1955_v55 = vld [vmem:[#allocation28 + $0x7b0] sm:$0xff]  ;;  %v1828_v41 = vld [vmem:[#allocation28 + $0x3b8] sm:$0xff] }
0x107f   :  { %2185 = vmatpush.msra.mxu2 %v1818_v57  ;;  %2205 = vmatpush.msra.mxu3 %v1946_v58  ;;  %v1956_v56 = vld [vmem:[#allocation28 + $0x7b8] sm:$0xff]  ;;  %v1819_v57 = vld [vmem:[#allocation28 + $0x370] sm:$0xff] }
0x1080   :  { %2146 = vmatpush.msra.mxu0 %v1809_v59  ;;  %2166 = vmatpush.msra.mxu1 %v1937_v6  ;;  %v1947_v58 = vld [vmem:[#allocation28 + $0x770] sm:$0xff]  ;;  %v1820_v59 = vld [vmem:[#allocation28 + $0x378] sm:$0xff] }
0x1081   :  { %2186 = vmatpush.msra.mxu2 %v1810_v7  ;;  %2206 = vmatpush.msra.mxu3 %v1938_v8  ;;  %v1948_v6 = vld [vmem:[#allocation28 + $0x778] sm:$0xff]  ;;  %v1811_v7 = vld [vmem:[#allocation28 + $0x330] sm:$0xff] }
0x1082   :  { %2079 = vmatmul.f32.vlgmr.msrb.gmra.mxu0 %v4239_v47  ;;  %2099 = vmatmul.f32.vlgmr.msrb.gmra.mxu1 %v4242_v50  ;;  %v1939_v8 = vld [vmem:[#allocation28 + $0x730] sm:$0xff] }
0x1083   :  { %2119 = vmatmul.f32.vlgmr.msrb.gmra.mxu2 %v4239_v47  ;;  %2139 = vmatmul.f32.vlgmr.msrb.gmra.mxu3 %v4242_v50 }
0x1084   :  { %2147 = vmatpush.msra.mxu0 %v1801_v9  ;;  %2167 = vmatpush.msra.mxu1 %v1929_v12  ;;  %v1812_v9 = vld [vmem:[#allocation28 + $0x338] sm:$0xff] }
0x1085   :  { %2187 = vmatpush.msra.mxu2 %v1802_v14  ;;  %2207 = vmatpush.msra.mxu3 %v1930_v10  ;;  %v1940_v12 = vld [vmem:[#allocation28 + $0x738] sm:$0xff]  ;;  %v1803_v14 = vld [vmem:[#allocation28 + $0x2f0] sm:$0xff] }
0x1086   :  { %2148 = vmatpush.msra.mxu0 %v1793_v11  ;;  %2168 = vmatpush.msra.mxu1 %v1921_v13  ;;  %v1931_v10 = vld [vmem:[#allocation28 + $0x6f0] sm:$0xff]  ;;  %v1804_v11 = vld [vmem:[#allocation28 + $0x2f8] sm:$0xff] }
0x1087   :  { %2188 = vmatpush.msra.mxu2 %v1794_v15  ;;  %2208 = vmatpush.msra.mxu3 %v1922_v22  ;;  %v1932_v13 = vld [vmem:[#allocation28 + $0x6f8] sm:$0xff]  ;;  %v1795_v15 = vld [vmem:[#allocation28 + $0x2b0] sm:$0xff] }
0x1088   :  { %2149 = vmatpush.msra.mxu0 %v1785_v30  ;;  %2169 = vmatpush.msra.mxu1 %v1913_v43  ;;  %v1923_v22 = vld [vmem:[#allocation28 + $0x6b0] sm:$0xff]  ;;  %v1796_v30 = vld [vmem:[#allocation28 + $0x2b8] sm:$0xff] }
0x1089   :  { %2189 = vmatpush.msra.mxu2 %v1786_v45  ;;  %2209 = vmatpush.msra.mxu3 %v1914_v46  ;;  %v1924_v43 = vld [vmem:[#allocation28 + $0x6b8] sm:$0xff]  ;;  %v1787_v45 = vld [vmem:[#allocation28 + $0x270] sm:$0xff] }
0x108a   :  { %2150 = vmatpush.msra.mxu0 %v1777_v48  ;;  %2170 = vmatpush.msra.mxu1 %v1905_v49  ;;  %v1915_v46 = vld [vmem:[#allocation28 + $0x670] sm:$0xff]  ;;  %v1788_v48 = vld [vmem:[#allocation28 + $0x278] sm:$0xff] }
0x108b   :  { %2190 = vmatpush.msra.mxu2 %v1778_v60  ;;  %2210 = vmatpush.msra.mxu3 %v1906_v61  ;;  %v1916_v49 = vld [vmem:[#allocation28 + $0x678] sm:$0xff]  ;;  %v1779_v60 = vld [vmem:[#allocation28 + $0x230] sm:$0xff] }
0x108c   :  { %2151 = vmatpush.msra.mxu0 %v1769_v62  ;;  %2171 = vmatpush.msra.mxu1 %v1897_v63  ;;  %v1907_v61 = vld [vmem:[#allocation28 + $0x630] sm:$0xff]  ;;  %v1780_v62 = vld [vmem:[#allocation28 + $0x238] sm:$0xff] }
0x108d   :  { %2191 = vmatpush.msra.mxu2 %v1770_v0  ;;  %2211 = vmatpush.msra.mxu3 %v1898_v3  ;;  %v1908_v63 = vld [vmem:[#allocation28 + $0x638] sm:$0xff]  ;;  %v1771_v0 = vld [vmem:[#allocation28 + $0x1f0] sm:$0xff] }
0x108e   :  { %2152 = vmatpush.msra.mxu0 %v1761_v32  ;;  %2172 = vmatpush.msra.mxu1 %v1889_v37  ;;  %v1899_v3 = vld [vmem:[#allocation28 + $0x5f0] sm:$0xff]  ;;  %v1772_v32 = vld [vmem:[#allocation28 + $0x1f8] sm:$0xff] }
0x108f   :  { %2192 = vmatpush.msra.mxu2 %v1762_v4  ;;  %2212 = vmatpush.msra.mxu3 %v1890_v5  ;;  %v1900_v37 = vld [vmem:[#allocation28 + $0x5f8] sm:$0xff]  ;;  %v1763_v4 = vld [vmem:[#allocation28 + $0x1b0] sm:$0xff] }
0x1090   :  { %2153 = vmatpush.msra.mxu0 %v1753_v16  ;;  %2173 = vmatpush.msra.mxu1 %v1881_v17  ;;  %v1891_v5 = vld [vmem:[#allocation28 + $0x5b0] sm:$0xff]  ;;  %v1764_v16 = vld [vmem:[#allocation28 + $0x1b8] sm:$0xff] }
0x1091   :  { %2193 = vmatpush.msra.mxu2 %v1754_v18  ;;  %2213 = vmatpush.msra.mxu3 %v1882_v19  ;;  %v1892_v17 = vld [vmem:[#allocation28 + $0x5b8] sm:$0xff]  ;;  %v1755_v18 = vld [vmem:[#allocation28 + $0x170] sm:$0xff] }
0x1092   :  { %2154 = vmatpush.msra.mxu0 %v1745_v20  ;;  %2174 = vmatpush.msra.mxu1 %v1873_v21  ;;  %v1883_v19 = vld [vmem:[#allocation28 + $0x570] sm:$0xff]  ;;  %v1756_v20 = vld [vmem:[#allocation28 + $0x178] sm:$0xff] }
0x1093   :  { %2194 = vmatpush.msra.mxu2 %v1746_v23  ;;  %2214 = vmatpush.msra.mxu3 %v1874_v35  ;;  %v1884_v21 = vld [vmem:[#allocation28 + $0x578] sm:$0xff]  ;;  %v1747_v23 = vld [vmem:[#allocation28 + $0x130] sm:$0xff] }
0x1094   :  { %2155 = vmatpush.msra.mxu0 %v1737_v40  ;;  %2175 = vmatpush.msra.mxu1 %v1865_v39  ;;  %v1875_v35 = vld [vmem:[#allocation28 + $0x530] sm:$0xff]  ;;  %v1748_v40 = vld [vmem:[#allocation28 + $0x138] sm:$0xff] }
0x1095   :  { %2195 = vmatpush.msra.mxu2 %v1738_v24  ;;  %2215 = vmatpush.msra.mxu3 %v1866_v25  ;;  %v1876_v39 = vld [vmem:[#allocation28 + $0x538] sm:$0xff]  ;;  %v1739_v24 = vld [vmem:[#allocation28 + $0xf0] sm:$0xff] }
0x1096   :  { %2156 = vmatpush.msra.mxu0 %v1729_v26  ;;  %2176 = vmatpush.msra.mxu1 %v1857_v27  ;;  %v1867_v25 = vld [vmem:[#allocation28 + $0x4f0] sm:$0xff]  ;;  %v1740_v26 = vld [vmem:[#allocation28 + $0xf8] sm:$0xff] }
0x1097   :  { %2196 = vmatpush.msra.mxu2 %v1730_v28  ;;  %2216 = vmatpush.msra.mxu3 %v1858_v29  ;;  %v1868_v27 = vld [vmem:[#allocation28 + $0x4f8] sm:$0xff]  ;;  %v1731_v28 = vld [vmem:[#allocation28 + $0xb0] sm:$0xff] }
0x1098   :  { %2157 = vmatpush.msra.mxu0 %v1721_v31  ;;  %2177 = vmatpush.msra.mxu1 %v1849_v33  ;;  %v1859_v29 = vld [vmem:[#allocation28 + $0x4b0] sm:$0xff]  ;;  %v1732_v31 = vld [vmem:[#allocation28 + $0xb8] sm:$0xff] }
0x1099   :  { %2197 = vmatpush.msra.mxu2 %v1722_v34  ;;  %2217 = vmatpush.msra.mxu3 %v1850_v36  ;;  %v1860_v33 = vld [vmem:[#allocation28 + $0x4b8] sm:$0xff]  ;;  %v1723_v34 = vld [vmem:[#allocation28 + $0x70] sm:$0xff] }
0x109a   :  { %2158 = vmatpush.msra.mxu0 %v1713_v42  ;;  %2178 = vmatpush.msra.mxu1 %v1841_v44  ;;  %v1851_v36 = vld [vmem:[#allocation28 + $0x470] sm:$0xff]  ;;  %v1724_v42 = vld [vmem:[#allocation28 + $0x78] sm:$0xff] }
0x109b   :  { %2198 = vmatpush.msra.mxu2 %v1714_v51  ;;  %2218 = vmatpush.msra.mxu3 %v1842_v52  ;;  %v1852_v44 = vld [vmem:[#allocation28 + $0x478] sm:$0xff]  ;;  %v1715_v51 = vld [vmem:[#allocation28 + $0x30] sm:$0xff] }
0x109c   :  { %2159 = vmatmul.f32.vlgmr.msra.gmra.mxu0 %v4239_v47  ;;  %2179 = vmatmul.f32.vlgmr.msra.gmra.mxu1 %v4242_v50  ;;  %v1843_v52 = vld [vmem:[#allocation28 + $0x430] sm:$0xff] }
0x109d   :  { %2199 = vmatmul.f32.vlgmr.msra.gmra.mxu2 %v4239_v47  ;;  %2219 = vmatmul.f32.vlgmr.msra.gmra.mxu3 %v4242_v50 }
0x109e   :  { %2223 = vmatpush.msrb.mxu0 %v1835_v53  ;;  %2243 = vmatpush.msrb.mxu1 %v1963_v54  ;;  %v1716_v53 = vld [vmem:[#allocation28 + $0x38] sm:$0xff] }
0x109f   :  { %2263 = vmatpush.msrb.mxu2 %v1836_v1  ;;  %2283 = vmatpush.msrb.mxu3 %v1964_v2  ;;  %v1844_v54 = vld [vmem:[#allocation28 + $0x438] sm:$0xff]  ;;  %v2342_v1 = vld [vmem:[#allocation31 + $0x78] sm:$0xff] }
0x10a0   :  { %2224 = vmatpush.msrb.mxu0 %v1827_v38  ;;  %2244 = vmatpush.msrb.mxu1 %v1955_v55  ;;  %v2341_v2 = vld [vmem:[#allocation31 + $0x70] sm:$0xff]  ;;  %v2358_v38 = vld [vmem:[#allocation31 + $0xf8] sm:$0xff]  ;;  %v2340_v55 = vld [vmem:[#allocation31 + $0x68] sm:$0xff] }
0x10a1   :  { %2264 = vmatpush.msrb.mxu2 %v1828_v41  ;;  %2284 = vmatpush.msrb.mxu3 %v1956_v56  ;;  %v2357_v41 = vld [vmem:[#allocation31 + $0xf0] sm:$0xff]  ;;  %v2356_v56 = vld [vmem:[#allocation31 + $0xe8] sm:$0xff] }
0x10a2   :  { %2225 = vmatpush.msrb.mxu0 %v1819_v57  ;;  %2245 = vmatpush.msrb.mxu1 %v1947_v58  ;;  %v2339_v57 = vld [vmem:[#allocation31 + $0x60] sm:$0xff]  ;;  %v2338_v58 = vld [vmem:[#allocation31 + $0x58] sm:$0xff] }
0x10a3   :  { %2265 = vmatpush.msrb.mxu2 %v1820_v59  ;;  %2285 = vmatpush.msrb.mxu3 %v1948_v6  ;;  %v2337_v59 = vld [vmem:[#allocation31 + $0x50] sm:$0xff]  ;;  %v2335_v6 = vld [vmem:[#allocation31 + $0x40] sm:$0xff] }
0x10a4   :  { %2226 = vmatpush.msrb.mxu0 %v1811_v7  ;;  %2246 = vmatpush.msrb.mxu1 %v1939_v8  ;;  %v2354_v7 = vld [vmem:[#allocation31 + $0xd8] sm:$0xff] }
0x10a5   :  { %2266 = vmatpush.msrb.mxu2 %v1812_v9  ;;  %2286 = vmatpush.msrb.mxu3 %v1940_v12  ;;  %v2334_v8 = vld [vmem:[#allocation31 + $0x38] sm:$0xff]  ;;  %v2353_v9 = vld [vmem:[#allocation31 + $0xd0] sm:$0xff] }
0x10a6   :  { %2227 = vmatpush.msrb.mxu0 %v1803_v14  ;;  %2247 = vmatpush.msrb.mxu1 %v1931_v10  ;;  %v2333_v12 = vld [vmem:[#allocation31 + $0x30] sm:$0xff]  ;;  %v2352_v14 = vld [vmem:[#allocation31 + $0xc8] sm:$0xff] }
0x10a7   :  { %2267 = vmatpush.msrb.mxu2 %v1804_v11  ;;  %2287 = vmatpush.msrb.mxu3 %v1932_v13  ;;  %v2332_v10 = vld [vmem:[#allocation31 + $0x28] sm:$0xff]  ;;  %v2351_v11 = vld [vmem:[#allocation31 + $0xc0] sm:$0xff] }
0x10a8   :  { %2228 = vmatpush.msrb.mxu0 %v1795_v15  ;;  %2248 = vmatpush.msrb.mxu1 %v1923_v22  ;;  %v2331_v15 = vld [vmem:[#allocation31 + $0x20] sm:$0xff]  ;;  %v2350_v22 = vld [vmem:[#allocation31 + $0xb8] sm:$0xff] }
0x10a9   :  { %2268 = vmatpush.msrb.mxu2 %v1796_v30  ;;  %2288 = vmatpush.msrb.mxu3 %v1924_v43  ;;  %v2330_v43 = vld [vmem:[#allocation31 + $0x18] sm:$0xff] }
0x10aa   :  { %2229 = vmatpush.msrb.mxu0 %v1787_v45  ;;  %2249 = vmatpush.msrb.mxu1 %v1915_v46  ;;  %v2349_v45 = vld [vmem:[#allocation31 + $0xb0] sm:$0xff] }
0x10ab   :  { %2269 = vmatpush.msrb.mxu2 %v1788_v48  ;;  %2289 = vmatpush.msrb.mxu3 %v1916_v49  ;;  %v2329_v46 = vld [vmem:[#allocation31 + $0x10] sm:$0xff]  ;;  %v2348_v48 = vld [vmem:[#allocation31 + $0xa8] sm:$0xff] }
0x10ac   :  { %2230 = vmatpush.msrb.mxu0 %v1779_v60  ;;  %2250 = vmatpush.msrb.mxu1 %v1907_v61  ;;  %v2328_v49 = vld [vmem:[#allocation31 + $0x8] sm:$0xff]  ;;  %v2347_v60 = vld [vmem:[#allocation31 + $0xa0] sm:$0xff] }
0x10ad   :  { %2270 = vmatpush.msrb.mxu2 %v1780_v62  ;;  %2290 = vmatpush.msrb.mxu3 %v1908_v63  ;;  %v2327_v62 = vld [vmem:[#allocation31] sm:$0xff]  ;;  %v2346_v63 = vld [vmem:[#allocation31 + $0x98] sm:$0xff] }
0x10ae   :  { %2231 = vmatpush.msrb.mxu0 %v1771_v0  ;;  %2251 = vmatpush.msrb.mxu1 %v1899_v3  ;;  %v2374_v3 = vld [vmem:[#allocation31 + $0x178] sm:$0xff] }
0x10af   :  { %2271 = vmatpush.msrb.mxu2 %v1772_v32  ;;  %2291 = vmatpush.msrb.mxu3 %v1900_v37  ;;  %v2345_v32 = vld [vmem:[#allocation31 + $0x90] sm:$0xff] }
0x10b0   :  { %2232 = vmatpush.msrb.mxu0 %v1763_v4  ;;  %2252 = vmatpush.msrb.mxu1 %v1891_v5  ;;  %v2373_v37 = vld [vmem:[#allocation31 + $0x170] sm:$0xff]  ;;  %v2344_v5 = vld [vmem:[#allocation31 + $0x88] sm:$0xff] }
0x10b1   :  { %2272 = vmatpush.msrb.mxu2 %v1764_v16  ;;  %2292 = vmatpush.msrb.mxu3 %v1892_v17  ;;  %v2372_v16 = vld [vmem:[#allocation31 + $0x168] sm:$0xff] }
0x10b2   :  { %2233 = vmatpush.msrb.mxu0 %v1755_v18  ;;  %2253 = vmatpush.msrb.mxu1 %v1883_v19  ;;  %v2343_v18 = vld [vmem:[#allocation31 + $0x80] sm:$0xff] }
0x10b3   :  { %2273 = vmatpush.msrb.mxu2 %v1756_v20  ;;  %2293 = vmatpush.msrb.mxu3 %v1884_v21  ;;  %v2371_v19 = vld [vmem:[#allocation31 + $0x160] sm:$0xff]  ;;  %v2390_v20 = vld [vmem:[#allocation31 + $0x1f8] sm:$0xff] }
0x10b4   :  { %2234 = vmatpush.msrb.mxu0 %v1747_v23  ;;  %2254 = vmatpush.msrb.mxu1 %v1875_v35  ;;  %v4272_v21 = vld [vmem:[#allocation29] sm:$0xff]  ;;  %v2389_v23 = vld [vmem:[#allocation31 + $0x1f0] sm:$0xff] }
0x10b5   :  { %2274 = vmatpush.msrb.mxu2 %v1748_v40  ;;  %2294 = vmatpush.msrb.mxu3 %v1876_v39  ;;  %v1971_v35 = vperm.slane %v4272_v21, 4  ;;  %v2370_v40 = vld [vmem:[#allocation31 + $0x158] sm:$0xff]  ;;  %v2388_v39 = vld [vmem:[#allocation31 + $0x1e8] sm:$0xff] }
0x10b6   :  { %2235 = vmatpush.msrb.mxu0 %v1739_v24  ;;  %2255 = vmatpush.msrb.mxu1 %v1867_v25  ;;  %v2369_v25 = vld [vmem:[#allocation31 + $0x150] sm:$0xff] }
0x10b7   :  { %2275 = vmatpush.msrb.mxu2 %v1740_v26  ;;  %2295 = vmatpush.msrb.mxu3 %v1868_v27 }
0x10b8   :  { %2236 = vmatpush.msrb.mxu0 %v1731_v28  ;;  %2256 = vmatpush.msrb.mxu1 %v1859_v29 }
0x10b9   :  { %2276 = vmatpush.msrb.mxu2 %v1732_v31  ;;  %2296 = vmatpush.msrb.mxu3 %v1860_v33  ;;  %v2368_v33 = vld [vmem:[#allocation31 + $0x148] sm:$0xff] }
0x10ba   :  { %2237 = vmatpush.msrb.mxu0 %v1723_v34  ;;  %2257 = vmatpush.msrb.mxu1 %v1851_v36  ;;  %v2387_v34 = vld [vmem:[#allocation31 + $0x1e0] sm:$0xff]  ;;  %v1972_v36 = vperm.slane %v4272_v21, 5 }
0x10bb   :  { %2277 = vmatpush.msrb.mxu2 %v1724_v42  ;;  %2297 = vmatpush.msrb.mxu3 %v1852_v44  ;;  %v2367_v44 = vld [vmem:[#allocation31 + $0x140] sm:$0xff] }
0x10bc   :  { %2238 = vmatpush.msrb.mxu0 %v1715_v51  ;;  %2258 = vmatpush.msrb.mxu1 %v1843_v52  ;;  %v2386_v51 = vld [vmem:[#allocation31 + $0x1d8] sm:$0xff] }
0x10bd   :  { %2278 = vmatpush.msrb.mxu2 %v1716_v53  ;;  %2298 = vmatpush.msrb.mxu3 %v1844_v54  ;;  %v2366_v54 = vld [vmem:[#allocation31 + $0x138] sm:$0xff] }
0x10be   :  { %2239 = vmatmul.f32.vlgmr.msrb.gmra.mxu0 %v4239_v47  ;;  %2259 = vmatmul.f32.vlgmr.msrb.gmra.mxu1 %v4242_v50 }
0x10bf   :  { %2279 = vmatmul.f32.vlgmr.msrb.gmra.mxu2 %v4239_v47  ;;  %2299 = vmatmul.f32.vlgmr.msrb.gmra.mxu3 %v4242_v50  ;;  %v2336_v47 = vld [vmem:[#allocation31 + $0x48] sm:$0xff]  ;;  %v2355_v50 = vld [vmem:[#allocation31 + $0xe0] sm:$0xff] }
0x10c0   :  { %2395 = vmatpush.msra.mxu0 %v2342_v1  ;;  %2415 = vmatpush.msra.mxu1 %v2358_v38  ;;  %v2385_v1 = vld [vmem:[#allocation31 + $0x1d0] sm:$0xff] }
0x10c1   :  { %2435 = vmatpush.msra.mxu2 %v2374_v3  ;;  %2455 = vmatpush.msra.mxu3 %v2390_v20 }
0x10c2   :  { %2396 = vmatpush.msra.mxu0 %v2341_v2  ;;  %2416 = vmatpush.msra.mxu1 %v2357_v41  ;;  %v1967_v2 = vperm.slane %v4272_v21, 0  ;;  %v2365_v41 = vld [vmem:[#allocation31 + $0x130] sm:$0xff] }
0x10c3   :  { %2436 = vmatpush.msra.mxu2 %v2373_v37  ;;  %2456 = vmatpush.msra.mxu3 %v2389_v23  ;;  %v2377_v37 = vld [vmem:[#allocation31 + $0x190] sm:$0xff] }
0x10c4   :  { %2397 = vmatpush.msra.mxu0 %v2340_v55  ;;  %2417 = vmatpush.msra.mxu1 %v2356_v56  ;;  %v2384_v56 = vld [vmem:[#allocation31 + $0x1c8] sm:$0xff] }
0x10c5   :  { %2437 = vmatpush.msra.mxu2 %v2372_v16  ;;  %2457 = vmatpush.msra.mxu3 %v2388_v39  ;;  %v2376_v16 = vld [vmem:[#allocation31 + $0x188] sm:$0xff] }
0x10c6   :  { %2398 = vmatpush.msra.mxu0 %v2339_v57  ;;  %2418 = vmatpush.msra.mxu1 %v2355_v50 }
0x10c7   :  { %2438 = vmatpush.msra.mxu2 %v2371_v19  ;;  %2458 = vmatpush.msra.mxu3 %v2387_v34 }
0x10c8   :  { %2399 = vmatpush.msra.mxu0 %v2338_v58  ;;  %2419 = vmatpush.msra.mxu1 %v2354_v7  ;;  %v2364_v58 = vld [vmem:[#allocation31 + $0x128] sm:$0xff]  ;;  %v2363_v7 = vld [vmem:[#allocation31 + $0x120] sm:$0xff] }
0x10c9   :  { %2439 = vmatpush.msra.mxu2 %v2370_v40  ;;  %2459 = vmatpush.msra.mxu3 %v2386_v51  ;;  %v1974_v40 = vperm.slane %v4272_v21, 7  ;;  %v1970_v51 = vperm.slane %v4272_v21, 3 }
0x10ca   :  { %2400 = vmatpush.msra.mxu0 %v2337_v59  ;;  %2420 = vmatpush.msra.mxu1 %v2353_v9  ;;  %v2383_v59 = vld [vmem:[#allocation31 + $0x1c0] sm:$0xff] }
0x10cb   :  { %2440 = vmatpush.msra.mxu2 %v2369_v25  ;;  %2460 = vmatpush.msra.mxu3 %v2385_v1 }
0x10cc   :  { %2401 = vmatpush.msra.mxu0 %v2336_v47  ;;  %2421 = vmatpush.msra.mxu1 %v2352_v14  ;;  %v1968_v14 = vperm.slane %v4272_v21, 1 }
0x10cd   :  { %2441 = vmatpush.msra.mxu2 %v2368_v33  ;;  %2461 = vmatpush.msra.mxu3 %v2384_v56  ;;  %v2489_v56 = vld [vmem:[%s4357_s18 + $0x68] sm:$0xff] }
0x10ce   :  { %2402 = vmatpush.msra.mxu0 %v2335_v6  ;;  %2422 = vmatpush.msra.mxu1 %v2351_v11  ;;  %v2315_v6 = vld [vmem:[#allocation5] sm:$0xff]  ;;  %v2381_v11 = vld [vmem:[#allocation31 + $0x1b0] sm:$0xff] }
0x10cf   :  { %2442 = vmatpush.msra.mxu2 %v2367_v44  ;;  %2462 = vmatpush.msra.mxu3 %v2383_v59  ;;  %v2484_v59 = vld [vmem:[%s4357_s18 + $0x40] sm:$0xff] }
0x10d0   :  { %2403 = vmatpush.msra.mxu0 %v2334_v8  ;;  %2423 = vmatpush.msra.mxu1 %v2350_v22  ;;  %v2382_v8 = vld [vmem:[#allocation31 + $0x1b8] sm:$0xff] }
0x10d1   :  { %2443 = vmatpush.msra.mxu2 %v2366_v54  ;;  %2463 = vmatpush.msra.mxu3 %v2382_v8  ;;  %v2479_v8 = vld [vmem:[%s4357_s18 + $0x18] sm:$0xff] }
0x10d2   :  { %2404 = vmatpush.msra.mxu0 %v2333_v12  ;;  %2424 = vmatpush.msra.mxu1 %v2349_v45 }
0x10d3   :  { %2444 = vmatpush.msra.mxu2 %v2365_v41  ;;  %2464 = vmatpush.msra.mxu3 %v2381_v11  ;;  %v2490_v41 = vld [vmem:[%s4357_s18 + $0x70] sm:$0xff] }
0x10d4   :  { %2405 = vmatpush.msra.mxu0 %v2332_v10  ;;  %2425 = vmatpush.msra.mxu1 %v2348_v48  ;;  %v2362_v10 = vld [vmem:[#allocation31 + $0x118] sm:$0xff]  ;;  %v2360_v48 = vld [vmem:[#allocation31 + $0x108] sm:$0xff] }
0x10d5   :  { %2445 = vmatpush.msra.mxu2 %v2364_v58  ;;  %v2486_v58 = vld [vmem:[%s4357_s18 + $0x50] sm:$0xff] }
0x10d6   :  { %2406 = vmatpush.msra.mxu0 %v2331_v15  ;;  %2426 = vmatpush.msra.mxu1 %v2347_v60  ;;  %v2316_v60 = vld [vmem:[#allocation5 + $0x8] sm:$0xff] }
0x10d7   :  { %2446 = vmatpush.msra.mxu2 %v2363_v7  ;;  %v2480_v7 = vld [vmem:[%s4357_s18 + $0x20] sm:$0xff]  ;;  %v2519_v11 = vld [vmem:[%s4358_s17 + $0x10] sm:$0xff] }
0x10d8   :  { %2407 = vmatpush.msra.mxu0 %v2330_v43  ;;  %2427 = vmatpush.msra.mxu1 %v2346_v63  ;;  %v2380_v43 = vld [vmem:[#allocation31 + $0x1a8] sm:$0xff]  ;;  %v2378_v63 = vld [vmem:[#allocation31 + $0x198] sm:$0xff] }
0x10d9   :  { %2447 = vmatpush.msra.mxu2 %v2362_v10  ;;  %2465 = vmatpush.msra.mxu3 %v2380_v43  ;;  %v2520_v10 = vld [vmem:[%s4358_s17 + $0x18] sm:$0xff] }
0x10da   :  { %2408 = vmatpush.msra.mxu0 %v2329_v46  ;;  %2428 = vmatpush.msra.mxu1 %v2345_v32 }
0x10dc   :  { %2409 = vmatpush.msra.mxu0 %v2328_v49  ;;  %2429 = vmatpush.msra.mxu1 %v2344_v5  ;;  %v2379_v49 = vld [vmem:[#allocation31 + $0x1a0] sm:$0xff] }
0x10dd   :  { %2466 = vmatpush.msra.mxu3 %v2379_v49 }
0x10de   :  { %2410 = vmatpush.msra.mxu0 %v2327_v62  ;;  %2430 = vmatpush.msra.mxu1 %v2343_v18  ;;  %v2359_v62 = vld [vmem:[#allocation31 + $0x100] sm:$0xff] }
0x10df   :  { %2467 = vmatpush.msra.mxu3 %v2378_v63  ;;  %v2375_v18 = vld [vmem:[#allocation31 + $0x180] sm:$0xff] }
0x10e0   :  { %2541 = vmatpush.msrb.mxu1 %v2520_v10  ;;  %v2518_v63 = vld [vmem:[%s4358_s17 + $0x8] sm:$0xff] }
0x10e1   :  { %2468 = vmatpush.msra.mxu3 %v2377_v37 }
0x10e2   :  { %2542 = vmatpush.msrb.mxu1 %v2519_v11 }
0x10e3   :  { %2469 = vmatpush.msra.mxu3 %v2376_v16 }
0x10e4   :  { %2543 = vmatpush.msrb.mxu1 %v2518_v63 }
0x10e5   :  { %2470 = vmatpush.msra.mxu3 %v2375_v18  ;;  %v2832_v18 = vld [vmem:[%s3619_s27] ss:$0 sm:$0xff]  ;;  %s3374_s27 = scalar_lea.hbm %s3373_s0, 8 }
0x10e6   :  { %p3375_p7 = scmp.ne.s32.totalorder %s3373_s0, %s3374_s27  ;;  %p3378_p9 = scmp.lt.s32.totalorder %s3376_s5, %s3374_s27 }
0x10e8   :  { %p3379_p10 = por %p3378_p9, %p3377_p8 }
0x10ea   :  { %p3380_p11 = pnand %p3379_p10, %p3375_p7 }
0x10f5   :  { %v4260_v13 = vpop.f32.mrf.mxu0  ;;  %v4262_v30 = vpop.f32.mrf.mxu1 }
0x10f6   :  { %v2001_v47 = vadd.f32 %v4260_v13, %v1967_v2  ;;  %v2361_v13 = vld [vmem:[#allocation31 + $0x110] sm:$0xff]  ;;  %v2318_v2 = vld [vmem:[#allocation5 + $0x18] sm:$0xff] }
0x10f7   :  { %2448 = vmatpush.msra.mxu2 %v2361_v13 }
0x10f8   :  { %v2021_v15 = vadd.f32 %v4262_v30, %v2001_v47  ;;  %v2483_v47 = vld [vmem:[%s4357_s18 + $0x38] sm:$0xff] }
0x10f9   :  { %2449 = vmatpush.msra.mxu2 %v2360_v48 }
0x10fb   :  { %2450 = vmatpush.msra.mxu2 %v2359_v62 }
0x10fc   :  { %v4264_v61 = vpop.f32.mrf.mxu2  ;;  %v4266_v0 = vpop.f32.mrf.mxu3 }
0x10fd   :  { %v2041_v46 = vadd.f32 %v4264_v61, %v1968_v14  ;;  %v1973_v61 = vperm.slane %v4272_v21, 6  ;;  %v2476_v14 = vld [vmem:[%s4357_s18] sm:$0xff] }
0x10ff   :  { %v4268_v4 = vpop.f32.mrf.mxu0  ;;  %v4270_v17 = vpop.f32.mrf.mxu1  ;;  %v2061_v3 = vadd.f32 %v4266_v0, %v2041_v46 }
0x1106   :  { %v4275_v24 = vpop.f32.mrf.mxu2  ;;  %v4277_v27 = vpop.f32.mrf.mxu3 }
0x1107   :  { %v2121_v1 = vadd.f32 %v4275_v24, %v1970_v51  ;;  %v2488_v24 = vld [vmem:[%s4357_s18 + $0x60] sm:$0xff] }
0x1119   :  { %v2160_v26 = vpop.f32.mrf.mxu0  ;;  %v2180_v29 = vpop.f32.mrf.mxu1 }
0x111a   :  { %v2161_v28 = vadd.f32 %v2160_v26, %v1971_v35  ;;  %v1969_v26 = vperm.slane %v4272_v21, 2 }
0x111c   :  { %v2181_v31 = vadd.f32 %v2180_v29, %v2161_v28  ;;  %v2081_v33 = vadd.f32 %v4268_v4, %v1969_v26 }
0x111e   :  { %v2303_v42 = vmul.f32 0.5, %v2181_v31 }
0x1120   :  { %v2307_v52 = vmul.f32 1.442695, %v2303_v42  ;;  %v2200_v53 = vpop.f32.mrf.mxu2  ;;  %v2220_v55 = vpop.f32.mrf.mxu3 }
0x1121   :  { %v2201_v38 = vadd.f32 %v2200_v53, %v1972_v36  ;;  %v2317_v36 = vld [vmem:[#allocation5 + $0x10] sm:$0xff] }
0x1122   :  { %2848 = vpow2.f32 %v2307_v52  ;;  %v2101_v52 = vadd.f32 %v4270_v17, %v2081_v33  ;;  %v2491_v17 = vld [vmem:[%s4357_s18 + $0x78] sm:$0xff] }
0x1123   :  { %v2221_v57 = vadd.f32 %v2220_v55, %v2201_v38  ;;  %v2141_v38 = vadd.f32 %v4277_v27, %v2121_v1  ;;  %2496 = vmatpush.msrb.mxu0 %v2491_v17  ;;  %v2485_v27 = vld [vmem:[%s4357_s18 + $0x48] sm:$0xff] }
0x1125   :  { %v2304_v50 = vmul.f32 0.5, %v2221_v57  ;;  %2497 = vmatpush.msrb.mxu0 %v2490_v41  ;;  %v2487_v57 = vld [vmem:[%s4357_s18 + $0x58] sm:$0xff] }
0x1127   :  { %v2309_v9 = vmul.f32 1.442695, %v2304_v50  ;;  %2498 = vmatpush.msrb.mxu0 %v2489_v56  ;;  %v2482_v50 = vld [vmem:[%s4357_s18 + $0x30] sm:$0xff] }
0x1128   :  { %v2849_v12 = vpop.eup %2848 }
0x1129   :  { %v2319_v22 = vmul.f32 %v2849_v12, %v2315_v6  ;;  %2850 = vpow2.f32 %v2309_v9  ;;  %2499 = vmatpush.msrb.mxu0 %v2488_v24  ;;  %v2481_v6 = vld [vmem:[%s4357_s18 + $0x28] sm:$0xff]  ;;  %v2478_v9 = vld [vmem:[%s4357_s18 + $0x10] sm:$0xff] }
0x112a   :  { %v2477_v12 = vld [vmem:[%s4357_s18 + $0x8] sm:$0xff] }
0x112b   :  { %v2323_v45 = vadd.f32 %v2319_v22, %v2021_v15  ;;  %2500 = vmatpush.msrb.mxu0 %v2487_v57  ;;  %v2830_v15 = vld [vmem:[%s4359_s29] ss:$0 sm:$0xff] }
0x112d   :  { %2411 = vmatmul.f32.vlgmr.msra.gmra.mxu0 %v2323_v45 }
0x112e   :  { %2501 = vmatpush.msrb.mxu0 %v2486_v58 }
0x112f   :  { %v2851_v30 = vpop.eup %2850 }
0x1130   :  { %v2320_v32 = vmul.f32 %v2851_v30, %v2316_v60  ;;  %2502 = vmatpush.msrb.mxu0 %v2485_v27  ;;  %v2517_v30 = vld [vmem:[%s4358_s17] sm:$0xff] }
0x1131   :  { %2544 = vmatpush.msrb.mxu1 %v2517_v30 }
0x1132   :  { %v2324_v5 = vadd.f32 %v2320_v32, %v2061_v3  ;;  %2503 = vmatpush.msrb.mxu0 %v2484_v59  ;;  %v2550_v3 = vld [vmem:[#allocation32] sm:$0xff]  ;;  %v2831_v32 = vld [vmem:[%s4360_s11] ss:$0 sm:$0xff] }
0x1134   :  { %2431 = vmatmul.f32.vlgmr.msra.gmra.mxu1 %v2324_v5  ;;  %2504 = vmatpush.msrb.mxu0 %v2483_v47 }
0x1135   :  { %2574 = vmatpush.msra.mxu1 %v2550_v3 }
0x1136   :  { %2505 = vmatpush.msrb.mxu0 %v2482_v50 }
0x1138   :  { %2506 = vmatpush.msrb.mxu0 %v2481_v6 }
0x113a   :  { %2507 = vmatpush.msrb.mxu0 %v2480_v7 }
0x113b   :  { %v2240_v19 = vpop.f32.mrf.mxu0  ;;  %v2260_v23 = vpop.f32.mrf.mxu1 }
0x113c   :  { %v2241_v20 = vadd.f32 %v2240_v19, %v1973_v61  ;;  %2508 = vmatpush.msrb.mxu0 %v2479_v8 }
0x113e   :  { %v2261_v35 = vadd.f32 %v2260_v23, %v2241_v20  ;;  %2509 = vmatpush.msrb.mxu0 %v2478_v9  ;;  %v2833_v23 = vld [vmem:[#allocation34] ss:$0 sm:$0xff] }
0x1140   :  { %v2305_v39 = vmul.f32 0.5, %v2261_v35  ;;  %2510 = vmatpush.msrb.mxu0 %v2477_v12 }
0x1142   :  { %v2311_v0 = vmul.f32 1.442695, %v2305_v39  ;;  %v2280_v25 = vpop.f32.mrf.mxu2  ;;  %v2300_v29 = vpop.f32.mrf.mxu3  ;;  %2511 = vmatpush.msrb.mxu0 %v2476_v14 }
0x1143   :  { %v2281_v28 = vadd.f32 %v2280_v25, %v1974_v40 }
0x1144   :  { %2852 = vpow2.f32 %v2311_v0 }
0x1145   :  { %v2301_v31 = vadd.f32 %v2300_v29, %v2281_v28 }
0x1147   :  { %v2306_v34 = vmul.f32 0.5, %v2301_v31 }
0x1149   :  { %v2313_v42 = vmul.f32 1.442695, %v2306_v34 }
0x114a   :  { %v2853_v44 = vpop.eup %2852 }
0x114b   :  { %v2321_v53 = vmul.f32 %v2853_v44, %v2317_v36  ;;  %2854 = vpow2.f32 %v2313_v42 }
0x114d   :  { %v2325_v54 = vadd.f32 %v2321_v53, %v2101_v52 }
0x114f   :  { %2451 = vmatmul.f32.vlgmr.msra.gmra.mxu2 %v2325_v54 }
0x1151   :  { %v2855_v4 = vpop.eup %2854 }
0x1152   :  { %v2322_v55 = vmul.f32 %v2855_v4, %v2318_v2 }
0x1154   :  { %v2326_v21 = vadd.f32 %v2322_v55, %v2141_v38 }
0x1156   :  { %2471 = vmatmul.f32.vlgmr.msra.gmra.mxu3 %v2326_v21 }
0x11aa   :  { %v2412_v22 = vpop.f32.mrf.mxu0 }
0x11ab   :  { %v2413_v43 = vadd.f32 %v2830_v15, %v2412_v22 }
0x11b1   :  { %v2432_v13 = vpop.f32.mrf.mxu1 }
0x11b2   :  { %v2433_v46 = vadd.f32 %v2432_v13, %v2413_v43 }
0x11d2   :  { %v2452_v45 = vpop.f32.mrf.mxu2 }
0x11d3   :  { %v2453_v48 = vadd.f32 %v2452_v45, %v2433_v46 }
0x11d9   :  { %v2472_v49 = vpop.f32.mrf.mxu3 }
0x11da   :  { %v2473_v60 = vadd.f32 %v2472_v49, %v2453_v48 }
0x11dc   :  { %v2475_v62 = vmax.f32 %v2473_v60, 0.0 }
0x11de   :  { %2512 = vmatmul.f32.vlgmr.msrb.gmra.mxu0 %v2475_v62 }
0x125b   :  { %v2513_v37 = vpop.f32.mrf.mxu0 }
0x125c   :  { %v2514_v5 = vadd.f32 %v2831_v32, %v2513_v37 }
0x125e   :  { %v2516_v16 = vmax.f32 %v2514_v5, 0.0 }
0x1260   :  { %2751 = vmatmul.msk.f32.vlgmr.msrb.gmra.mxu1 %vm2525_vm0, %v2516_v16 }
0x12dd   :  { %v2546_v61 = vpop.f32.mrf.mxu1 }
0x12de   :  { %v2547_v19 = vadd.f32 %v2832_v18, %v2546_v61 }
0x12e0   :  { %v2549_v20 = vmax.f32 %v2547_v19, 0.0 }
0x12e2   :  { %2752 = vmatmul.msk.f32.vlgmr.msra.gmra.mxu1 %vm2555_vm3, %v2549_v20 }
0x135f   :  { %v2576_v35 = vpop.f32.mrf.mxu1 }
0x1360   :  { %v2577_v40 = vadd.f32 %v2833_v23, %v2576_v35 }
0x1362   :  { %2580 = vst.msk [vmem:[#allocation35] sm:$0xff] %vm2579_vm4, %v2577_v40 }
0x1363   :  { %3383 = shalt.err (!%p3380_p11)
}
0x1364   :  { %2591 = dma.vmem_to_hbm [thread:$0]  %s2587_s23, 128, %s2589_s20, [#allocation4]  }
0x1365   :  { %3406 = dma.done.wait [#allocation4], 128  }
0x1366   :  { %3407 = vsyncadd [#allocation4], 4294967168 }
0x1367   :  { %2596 = vsyncpa [#allocation3], 1 }
0x1368   :  { %2597 = vsyncpa [#allocation6], 1 }
0x1369   :  { %2598 = vsyncpa [#allocation9], 1 }
0x136a   :  { %2599 = vsyncpa [#allocation12], 1 }
0x136b   :  { %2600 = vsyncpa [#allocation15], 1 }
0x136c   :  { %2601 = vsyncpa [#allocation18], 1 }
0x136d   :  { %2602 = vsyncpa [#allocation21], 1 }
0x136e   :  { %2603 = vsyncpa [#allocation24], 1 }
0x136f   :  { %2604 = vsyncpa [#allocation27], 1 }
0x1370   :  { %2605 = vsyncpa [#allocation30], 1 }
0x1371   :  { %2606 = vsyncpa [#allocation33], 1 }
0x1372   :  { %2607 = vsyncpa [#allocation4], 1 }

</bundles_post_ra>
